<compile_context>
chip_gen: v5e
topology: v5e:2x2
jax: 0.10.0
libtpu: 0.0.40
codegen_flags: <defaults>
</compile_context>

<pallas_src>
import functools

import jax
import jax.numpy as jnp
import numpy as np
from jax.experimental import pallas as pl
from jax.experimental.pallas import tpu as pltpu


def _pool_proj_kernel(feat_ref, w_ref, out_ref, *, inv_hw):
    """Fused global-average-pool (VPU, f32) + bias-free projection (MXU).

    feat_ref : [tb, HW, C]  bf16/f32  NHWC stage-4 feature rows for this tile
    w_ref    : [2*D, C]     bf16      proj weight, PyTorch layout, rows pre-permuted
    out_ref  : [tb, 2*D]    f32
    """
    # Pool first (f32 accumulation on the VPU): cuts the MXU problem from
    # [tb*HW, C] x [C, 2D] down to [tb, C] x [C, 2D] and avoids any large temp.
    pooled = jnp.sum(feat_ref[...], axis=1, dtype=jnp.float32) * inv_hw   # [tb, C]
    # Contract on C (the lane axis of BOTH operands); equivalent to pooled @ W.T.
    out_ref[...] = jax.lax.dot_general(
        pooled.astype(jnp.bfloat16),
        w_ref[...],
        dimension_numbers=(((1,), (1,)), ((), ())),
        preferred_element_type=jnp.float32,
    ).astype(out_ref.dtype)


def prepare_proj_weight(w_proj):
    """One-time (offline) prep of nn.Linear(2048, 2*d_model, bias=False).weight.

    Permutes output rows so the kernel's output columns are already ordered
    [pair0 | pair1] (the PyTorch reshape+permute epilogue becomes a free
    reshape) and casts to bf16 (halves its HBM traffic; accumulation stays f32).
    """
    d2, c = w_proj.shape
    d_model = d2 // 2
    # Row (p*d_model + m) of the permuted weight == row (2*m + p) of the original.
    w_perm = w_proj.reshape(d_model, 2, c).transpose(1, 0, 2).reshape(d2, c)
    return w_perm.astype(jnp.bfloat16)


def _choose_batch_tile(B, HW, C, feat_itemsize, tile_b, target_block_bytes=4 << 20):
    """Layout-legal batch tile: a multiple of 8 (masked tail tile if B % tb) or B."""
    if tile_b is None:
        per_row = HW * C * feat_itemsize
        tile_b = max(8, (target_block_bytes // per_row) // 8 * 8)
    tb = min(int(tile_b), B)
    if tb >= B:
        # One tile would cover everything; split in two when legal so
        # dimension_semantics=("parallel",) can use both v7x TensorCores.
        if B >= 16 and B % 16 == 0:
            return B // 2
        return B
    return max(8, (tb // 8) * 8)


@functools.partial(jax.jit, static_argnames=("tile_b",))
def image_embeddings(feat_nhwc, w_prepped, *, tile_b=None):
    """feat_nhwc: [B, H, W, C] stage-4 features, NHWC (channels-last so C=2048 is
    the lane axis), ideally bf16 straight from the producer (do NOT add a
    wrapper-side astype).  w_prepped: prepare_proj_weight(linear_weight)."""
    B, H, W, C = feat_nhwc.shape
    HW = H * W
    d2, Cw = w_prepped.shape
    assert Cw == C, "channel mismatch — features must be NHWC (channels-last)"

    feat_itemsize = jnp.dtype(feat_nhwc.dtype).itemsize
    tb = _choose_batch_tile(B, HW, C, feat_itemsize, tile_b)
    grid = (pl.cdiv(B, tb),)

    feat3d = feat_nhwc.reshape(B, HW, C)     # free row-major merge, no transpose

    # VMEM budget: 2 feature buffers + 2 weight buffers + 2 output buffers
    # (+ small temps); floor at the v5e scoped default, cap under v7x's 64 MiB.
    w_bytes = d2 * C * jnp.dtype(w_prepped.dtype).itemsize
    need = (2 * tb * HW * C * feat_itemsize + 2 * w_bytes + 2 * tb * d2 * 4
            + (2 << 20))
    vmem_limit = int(min(max(need, 16 << 20), 48 << 20))

    cost = pl.CostEstimate(
        flops=2 * B * C * d2 + B * HW * C,                  # matmul + pooling adds
        transcendentals=0,
        bytes_accessed=B * HW * C * feat_itemsize + w_bytes + B * d2 * 4,
    )

    proj = pl.pallas_call(
        functools.partial(_pool_proj_kernel, inv_hw=1.0 / HW),
        out_shape=jax.ShapeDtypeStruct((B, d2), jnp.float32),
        grid=grid,
        in_specs=[
            # Feature tile b streams in while tile b-1 computes.
            pl.BlockSpec((tb, HW, C), lambda b: (b, 0, 0)),
            # Weight: single block, resident across all grid steps.
            pl.BlockSpec((d2, C), lambda b: (0, 0)),
        ],
        out_specs=pl.BlockSpec((tb, d2), lambda b: (b, 0)),
        compiler_params=pltpu.CompilerParams(
            dimension_semantics=("parallel",),   # batch tiles independent (2 TCs on v7x)
            vmem_limit_bytes=vmem_limit,
        ),
        cost_estimate=cost,
    )(feat3d, w_prepped)

    # Free reshape: weight rows were pre-permuted, columns already [pair0|pair1].
    return proj.reshape(B, 2, d2 // 2)


def _reference(feat_nhwc_f32, w_proj, d_model):
    """Pure-JAX f32 reference matching the PyTorch module semantics."""
    B = feat_nhwc_f32.shape[0]
    pooled = jnp.mean(feat_nhwc_f32, axis=(1, 2))             # avgpool  [B, C]
    proj = pooled @ w_proj.T                                  # [B, 2*d_model]
    return proj.reshape(B, d_model, 2).transpose(0, 2, 1)     # [B, 2, d_model]


if __name__ == "__main__":
    key = jax.random.PRNGKey(0)
    k_feat, k_w = jax.random.split(key)

    batch = 32
    C = 2048            # fixed by resnet50 (proj = Linear(2048, d_model*2))
    Hf, Wf = 4, 4       # small stand-in for the 7x7 stage-4 spatial extent
    d_model = 32

    # TODO(synk): stand-in for the ResNet-50 stage-4 feature map (backbone not
    # translated); produced directly as NHWC bf16 per the producer contract.
    feat = jax.random.normal(k_feat, (batch, Hf, Wf, C), dtype=jnp.float32)
    feat_bf16 = feat.astype(jnp.bfloat16)
    w_proj = jax.random.normal(k_w, (2 * d_model, C), dtype=jnp.float32) * (
        1.0 / np.sqrt(C)
    )

    w_prepped = prepare_proj_weight(w_proj)     # one-time, offline

    # Default byte-aware tiling -> tb=16 here, 2-step grid.
    out = image_embeddings(feat_bf16, w_prepped)
    out = jax.block_until_ready(out)
    assert out.shape == (batch, 2, d_model), out.shape

    ref = _reference(feat_bf16.astype(jnp.float32), w_proj, d_model)
    # bf16 operands into the MXU (f32 pooling + accumulation) — loose tolerance.
    np.testing.assert_allclose(np.asarray(out), np.asarray(ref), rtol=2e-2, atol=1e-2)

    # Non-divisible batch: tb=16 with B=24 exercises the masked tail tile.
    out_tail = jax.block_until_ready(
        image_embeddings(feat_bf16[:24], w_prepped, tile_b=16))
    ref_tail = _reference(feat_bf16[:24].astype(jnp.float32), w_proj, d_model)
    np.testing.assert_allclose(np.asarray(out_tail), np.asarray(ref_tail),
                               rtol=2e-2, atol=1e-2)

    print("KERNEL_OK")
</pallas_src>

<mosaic_0001>
module attributes {stable_mosaic.version = 11 : i64} {
  func.func @_pool_proj_kernel(%arg0: i32, %arg1: memref<16x16x2048xbf16, #tpu.memory_space<vmem>>, %arg2: memref<64x2048xbf16, #tpu.memory_space<vmem>>, %arg3: memref<16x64xf32, #tpu.memory_space<vmem>>) attributes {dimension_semantics = [#tpu.dimension_semantics<parallel>], iteration_bounds = array<i64: 2>, scalar_prefetch = 0 : i64, scratch_operands = 0 : i64, tpu.core_type = #tpu.core_type<tc>, window_params = [{transform_indices = @transform_0, window_bounds = array<i64: 16, 16, 2048>}, {pipeline_mode = #tpu.pipeline_mode<synchronous>, transform_indices = @transform_1, window_bounds = array<i64: 64, 2048>}, {transform_indices = @transform_2, window_bounds = array<i64: 16, 64>}]} {
    %c0 = arith.constant 0 : index
    %c0_0 = arith.constant 0 : index
    %c0_1 = arith.constant 0 : index
    %0 = vector.load %arg1[%c0, %c0_0, %c0_1] : memref<16x16x2048xbf16, #tpu.memory_space<vmem>>, vector<16x16x2048xbf16>
    %1 = arith.extf %0 : vector<16x16x2048xbf16> to vector<16x16x2048xf32>
    %cst = arith.constant dense<0.000000e+00> : vector<16x2048xf32>
    %2 = vector.multi_reduction <add>, %1, %cst [1] : vector<16x16x2048xf32> to vector<16x2048xf32>
    %cst_2 = arith.constant 6.250000e-02 : f32
    %3 = vector.broadcast %cst_2 : f32 to vector<16x2048xf32>
    %4 = arith.mulf %2, %3 : vector<16x2048xf32>
    %5 = arith.truncf %4 : vector<16x2048xf32> to vector<16x2048xbf16>
    %c0_3 = arith.constant 0 : index
    %c0_4 = arith.constant 0 : index
    %6 = vector.load %arg2[%c0_3, %c0_4] : memref<64x2048xbf16, #tpu.memory_space<vmem>>, vector<64x2048xbf16>
    %cst_5 = arith.constant dense<0.000000e+00> : vector<16x64xf32>
    %7 = tpu.matmul %5, %6, %cst_5 {dimension_numbers = #tpu.dot_dimension_numbers<[1], [1], [0], [0], [0, 0, 1, 0], [], []>} : vector<16x2048xbf16>, vector<64x2048xbf16>, vector<16x64xf32> -> vector<16x64xf32>
    %c0_6 = arith.constant 0 : index
    %c0_7 = arith.constant 0 : index
    %8 = vector.load %arg3[%c0_6, %c0_7] : memref<16x64xf32, #tpu.memory_space<vmem>>, vector<16x64xf32>
    tpu.vector_store %arg3[%c0_6, %c0_7], %7 {strides = array<i32>} : memref<16x64xf32, #tpu.memory_space<vmem>>, vector<16x64xf32>,
    return
  }
  func.func @transform_0(%arg0: i32) -> (i32, i32, i32) {
    %c0_i32 = arith.constant 0 : i32
    %c0_i32_0 = arith.constant 0 : i32
    %c0_i32_1 = arith.constant 0 : i32
    return %arg0, %c0_i32, %c0_i32_0 : i32, i32, i32
  }
  func.func @transform_1(%arg0: i32) -> (i32, i32) {
    %c0_i32 = arith.constant 0 : i32
    %c0_i32_0 = arith.constant 0 : i32
    %c0_i32_1 = arith.constant 0 : i32
    return %c0_i32, %c0_i32_0 : i32, i32
  }
  func.func @transform_2(%arg0: i32) -> (i32, i32) {
    %c0_i32 = arith.constant 0 : i32
    %c0_i32_0 = arith.constant 0 : i32
    return %arg0, %c0_i32 : i32, i32
  }
}

</mosaic_0001>

<bundles_post_ra>
// kernel: image_embeddings.1
= control target key start
LH: loop header
LB: loop body
LE: loop exit
PB: predicated region body
PF: predicated region fallthrough
CT: control target
= control target key end

     0   :  { %s5033_s9 = smov 0   ;;  %s8061_s0 = inlined_call_operand.vmem [shape: bf16[32,16,2048], index: 0, kind: input, shape index: {}]   ;;  %s8062_s1 = inlined_call_operand.vmem [shape: bf16[64,2048], index: 1, kind: input, shape index: {}]   ;;  %s8063_s2 = inlined_call_operand.vmem [shape: f32[32,64], index: 2, kind: output, shape index: {}]  }
   0x1 LB: > { %s4665_s10 = sadd.s32 4294967295, %s5016_s9   ;;  %p4669_p0 = scmp.ge.s32.totalorder %s5016_s9, 1  ;;  %s5016_s9 = sphi %s5033_s9, %s12_s9  }
   0x2   : > { %p114_p1 = scmp.lt.s32.totalorder %s5016_s9, 3 }
   0x4   : > { %p115_p2 = pnand %p4669_p0, %p114_p1 }
   0x6   : > { %118 = sbr.rel (%p115_p2) target bundleno = 1027 (0x403), region = 28 }
   0xb   : > { %v4869_v0 = vld [vmem:[%s8062_s1 + $0x180] sm:$0xf]  ;;  %v4982_v2 = vld [vmem:[%s8062_s1 + $0x184] sm:$0xf]  ;;  %v4877_v5 = vld [vmem:[%s8062_s1 + $0x188] sm:$0xf] }
   0xc   : > { %v4990_v1 = vld [vmem:[%s8062_s1 + $0x1bc] sm:$0xf0]  ;;  %v4871_v4 = vld [vmem:[%s8062_s1 + $0x1c0] sm:$0xf0]  ;;  %v4991_v6 = vld [vmem:[%s8062_s1 + $0x1c4] sm:$0xf0] }
   0xd   : > { %v4870_v3 = vor.u32 %v4990_v1, %v4869_v0  ;;  %v4874_v7 = vor.u32 %v4982_v2, %v4871_v4  ;;  %v4878_v8 = vor.u32 %v4991_v6, %v4877_v5  ;;  %v4983_v9 = vld [vmem:[%s8062_s1 + $0x18c] sm:$0xf]  ;;  %v4805_v12 = vld [vmem:[%s8062_s1 + $0x100] sm:$0xf]  ;;  %v4966_v14 = vld [vmem:[%s8062_s1 + $0x104] sm:$0xf] }
   0xe   : > { %v4879_v10 = vld [vmem:[%s8062_s1 + $0x1c8] sm:$0xf0]  ;;  %v4974_v13 = vld [vmem:[%s8062_s1 + $0x13c] sm:$0xf0]  ;;  %v4807_v15 = vld [vmem:[%s8062_s1 + $0x140] sm:$0xf0] }
   0xf   : > { %4386 = vmatpush.bf16.xpose.msra.mxu0 %v4870_v3  ;;  %v4882_v11 = vor.u32 %v4983_v9, %v4879_v10  ;;  %4400 = vmatpush.bf16.xpose.msra.mxu1 %v4874_v7  ;;  %v4813_v16 = vld [vmem:[%s8062_s1 + $0x108] sm:$0xf]  ;;  %v4967_v18 = vld [vmem:[%s8062_s1 + $0x10c] sm:$0xf]  ;;  %v4806_v20 = vor.u32 %v4974_v13, %v4805_v12  ;;  %v4810_v21 = vor.u32 %v4966_v14, %v4807_v15  ;;  %v4741_v24 = vld [vmem:[%s8062_s1 + $0x80] sm:$0xf] }
  0x10   : > { %4414 = vmatpush.bf16.xpose.msra.mxu2 %v4878_v8  ;;  %v4975_v17 = vld [vmem:[%s8062_s1 + $0x144] sm:$0xf0]  ;;  %v4815_v19 = vld [vmem:[%s8062_s1 + $0x148] sm:$0xf0]  ;;  %v4958_v25 = vld [vmem:[%s8062_s1 + $0xbc] sm:$0xf0] }
  0x11   : > { %4428 = vmatpush.bf16.xpose.msra.mxu3 %v4882_v11  ;;  %v4814_v22 = vor.u32 %v4975_v17, %v4813_v16  ;;  %v4818_v23 = vor.u32 %v4967_v18, %v4815_v19  ;;  %v4950_v26 = vld [vmem:[%s8062_s1 + $0x84] sm:$0xf]  ;;  %v4749_v28 = vld [vmem:[%s8062_s1 + $0x88] sm:$0xf]  ;;  %v4951_v30 = vld [vmem:[%s8062_s1 + $0x8c] sm:$0xf]  ;;  %v4742_v32 = vor.u32 %v4958_v25, %v4741_v24 }
  0x12   : > { %v4743_v27 = vld [vmem:[%s8062_s1 + $0xc0] sm:$0xf0]  ;;  %v4959_v29 = vld [vmem:[%s8062_s1 + $0xc4] sm:$0xf0]  ;;  %v4751_v31 = vld [vmem:[%s8062_s1 + $0xc8] sm:$0xf0] }
  0x13   : > { %v4746_v33 = vor.u32 %v4950_v26, %v4743_v27  ;;  %v4750_v34 = vor.u32 %v4959_v29, %v4749_v28  ;;  %v5116_v35 = vld [vmem:[%s8062_s1] sm:$0xf]  ;;  %v5126_v37 = vld [vmem:[%s8062_s1 + $0x4] sm:$0xf]  ;;  %s4670_s15 = sshll.u32 %s4665_s10, 4  ;;  %v4754_v39 = vor.u32 %v4951_v30, %v4751_v31  ;;  %vm3799_vm0 = vcmask 1041409  }
  0x14   : > { %v5121_v36 = vld [vmem:[%s8062_s1 + $0x3c] sm:$0xf0]  ;;  %v5131_v38 = vld [vmem:[%s8062_s1 + $0x40] sm:$0xf0]  ;;  %v5138_v40 = vld [vmem:[%s8062_s1 + $0x8] sm:$0xf] }
  0x15   : > { %v5143_v41 = vld [vmem:[%s8062_s1 + $0x44] sm:$0xf0]  ;;  %v5148_v42 = vld [vmem:[%s8062_s1 + $0xc] sm:$0xf]  ;;  %v5158_v44 = vld [vmem:[%s8062_s1 + $0x190] sm:$0xf]  ;;  %v4678_v56 = vor.u32 %v5121_v36, %v5116_v35  ;;  %v4682_v57 = vor.u32 %v5126_v37, %v5131_v38 }
  0x16   : > { %v5153_v43 = vld [vmem:[%s8062_s1 + $0x48] sm:$0xf0]  ;;  %v5163_v45 = vld [vmem:[%s8062_s1 + $0x1cc] sm:$0xf0]  ;;  %v5168_v46 = vld [vmem:[%s8062_s1 + $0x194] sm:$0xf]  ;;  %v4686_v60 = vor.u32 %v5143_v41, %v5138_v40 }
  0x17   : > { %4387 = vmatpush.bf16.xpose.msra.mxu0 %v4806_v20  ;;  %4401 = vmatpush.bf16.xpose.msra.mxu1 %v4810_v21  ;;  %v5173_v47 = vld [vmem:[%s8062_s1 + $0x1d0] sm:$0xf0]  ;;  %p138_p3 = scmp.lt.s32.totalorder %s4670_s15, 31  ;;  %v5178_v48 = vld [vmem:[%s8062_s1 + $0x198] sm:$0xf]  ;;  %v4690_v61 = vor.u32 %v5148_v42, %v5153_v43  ;;  %v4886_v62 = vor.u32 %v5163_v45, %v5158_v44  ;;  %vm3801_vm1 = vcmask 1042434  }
  0x18   : > { %4415 = vmatpush.bf16.xpose.msra.mxu2 %v4814_v22  ;;  %v5183_v49 = vld [vmem:[%s8062_s1 + $0x1d4] sm:$0xf0]  ;;  %v5188_v50 = vld [vmem:[%s8062_s1 + $0x19c] sm:$0xf]  ;;  %v5198_v52 = vld [vmem:[%s8062_s1 + $0x110] sm:$0xf]  ;;  %v4890_v63 = vor.u32 %v5168_v46, %v5173_v47 }
  0x19   : > { %4429 = vmatpush.bf16.xpose.msra.mxu3 %v4818_v23  ;;  %v5193_v51 = vld [vmem:[%s8062_s1 + $0x1d8] sm:$0xf0]  ;;  %s8806_s15 = smov (!%p138_p3, %s4670_s15), 31  ;;  %v5203_v53 = vld [vmem:[%s8062_s1 + $0x14c] sm:$0xf0]  ;;  %v4894_v2 = vor.u32 %v5183_v49, %v5178_v48  ;;  %vm3803_vm2 = vcmask 1043459  }
  0x1a   : > { %v5208_v54 = vld [vmem:[%s8062_s1 + $0x114] sm:$0xf]  ;;  %v5222_v58 = vld [vmem:[%s8062_s1 + $0x118] sm:$0xf]  ;;  %s4933_s27 = sshll.u32 %s8806_s15, 7  ;;  %v4898_v3 = vor.u32 %v5188_v50, %v5193_v51  ;;  %vm3805_vm3 = vcmask 1044484  }
  0x1b   : > { %v5213_v55 = vld [vmem:[%s8062_s1 + $0x150] sm:$0xf0]  ;;  %v5227_v59 = vld [vmem:[%s8062_s1 + $0x154] sm:$0xf0]  ;;  %v5240_v0 = vld [vmem:[%s8062_s1 + $0x11c] sm:$0xf]  ;;  %s5250_s5 = scalar_lea.vmem %s8061_s0, %s4933_s27 }
  0x1c   : > { %v5245_v1 = vld [vmem:[%s8062_s1 + $0x158] sm:$0xf0]  ;;  %v5261_v6 = vld [vmem:[%s5250_s5] sm:$0xff]  ;;  %vm3807_vm4 = vcmask 1045509   ;;  %vm3809_vm5 = vcmask 1046534   ;;  %vm3811_vm6 = vcmask 1047559  }
  0x1d   : > { %v5264_v7 = vld [vmem:[%s5250_s5 + $0x40] sm:$0xff]  ;;  %v407_v13 = vunpack.c.l.bf16 %v5261_v6  ;;  %vm4606_vm7 = vcmask 523264  }
  0x1e   : > { %v5267_v8 = vld [vmem:[%s5250_s5 + $0x80] sm:$0xff]  ;;  %v423_v14 = vunpack.c.l.bf16 %v5264_v7 }
  0x1f   : > { %4388 = vmatpush.bf16.xpose.msra.mxu0 %v4742_v32  ;;  %4402 = vmatpush.bf16.xpose.msra.mxu1 %v4746_v33  ;;  %v5272_v10 = vld [vmem:[%s5250_s5 + $0xc0] sm:$0xff]  ;;  %v439_v15 = vunpack.c.l.bf16 %v5267_v8 }
  0x20   : > { %4416 = vmatpush.bf16.xpose.msra.mxu2 %v4750_v34  ;;  %v5275_v11 = vld [vmem:[%s5250_s5 + $0x100] sm:$0xff]  ;;  %v455_v20 = vunpack.c.l.bf16 %v5272_v10  ;;  %v919_v29 = vadd.f32 %v423_v14, %v407_v13 }
  0x21   : > { %4430 = vmatpush.bf16.xpose.msra.mxu3 %v4754_v39  ;;  %v5278_v12 = vld [vmem:[%s5250_s5 + $0x140] sm:$0xff]  ;;  %v471_v21 = vunpack.c.l.bf16 %v5275_v11 }
  0x22   : > { %v5286_v17 = vld [vmem:[%s5250_s5 + $0x180] sm:$0xff]  ;;  %v487_v22 = vunpack.c.l.bf16 %v5278_v12  ;;  %v1031_v36 = vadd.f32 %v455_v20, %v439_v15  ;;  %v920_v43 = vrot.slane %v919_v29, 4 }
  0x23   : > { %v5289_v18 = vld [vmem:[%s5250_s5 + $0x1c0] sm:$0xff]  ;;  %v503_v26 = vunpack.c.l.bf16 %v5286_v17 }
  0x24   : > { %v5292_v19 = vld [vmem:[%s5250_s5 + $0x200] sm:$0xff]  ;;  %v1032_v50 = vrot.slane %v1031_v36, 4  ;;  %v921_v13 = vadd.f32 %v920_v43, %v919_v29  ;;  %v1143_v9 = vadd.f32 %v487_v22, %v471_v21  ;;  %v8316_v49 = vunpack.c.l.bf16 %v5289_v18 }
  0x25   : > { %v5298_v23 = vld [vmem:[%s5250_s5 + $0x240] sm:$0xff] }
  0x26   : > { %v5301_v24 = vld [vmem:[%s5250_s5 + $0x280] sm:$0xff]  ;;  %v551_v33 = vunpack.c.l.bf16 %v5298_v23  ;;  %v1033_v48 = vadd.f32 %v1032_v50, %v1031_v36  ;;  %v922_v5 = vrot.slane %v921_v13, 2  ;;  %v8317_v36 = vunpack.c.l.bf16 %v5292_v19 }
  0x27   : > { %v5304_v25 = vld [vmem:[%s5250_s5 + $0x2c0] sm:$0xff]  ;;  %4389 = vmatpush.bf16.xpose.msra.mxu0 %v4678_v56  ;;  %v567_v34 = vunpack.c.l.bf16 %v5301_v24  ;;  %4403 = vmatpush.bf16.xpose.msra.mxu1 %v4682_v57  ;;  %v1144_v28 = vrot.slane %v1143_v9, 4 }
  0x28   : > { %v5310_v30 = vld [vmem:[%s5250_s5 + $0x300] sm:$0xff]  ;;  %v583_v35 = vunpack.c.l.bf16 %v5304_v25  ;;  %4417 = vmatpush.bf16.xpose.msra.mxu2 %v4686_v60  ;;  %v1034_v20 = vrot.slane %v1033_v48, 2  ;;  %v923_v27 = vadd.f32 %v922_v5, %v921_v13  ;;  %v1367_v50 = vadd.f32 %v551_v33, %v8317_v36 }
  0x29   : > { %8296 = vst [vmem:[#allocation2_spill] sm:$0xff] %v5310_v30  ;;  %v5313_v31 = vld [vmem:[%s5250_s5 + $0x340] sm:$0xff]  ;;  %v599_v40 = vunpack.c.l.bf16 %v5310_v30  ;;  %4431 = vmatpush.bf16.xpose.msra.mxu3 %v4690_v61  ;;  %v8318_v5 = vor.u32 %v5203_v53, %v5198_v52  ;;  %v8321_v52 = vor.u32 %v5240_v0, %v5245_v1 }
  0x2a   : > { %8297 = vst [vmem:[#allocation3_spill] sm:$0xff] %v5313_v31  ;;  %v5316_v32 = vld [vmem:[%s5250_s5 + $0x380] sm:$0xff]  ;;  %v615_v41 = vunpack.c.l.bf16 %v5313_v31  ;;  %v1035_v43 = vadd.f32 %v1034_v20, %v1033_v48  ;;  %v1368_v22 = vrot.slane %v1367_v50, 4  ;;  %v8319_v20 = vor.u32 %v5208_v54, %v5213_v55 }
  0x2b   : > { %8298 = vst [vmem:[#allocation4_spill] sm:$0xff] %v5316_v32  ;;  %v5322_v37 = vld [vmem:[%s5250_s5 + $0x3c0] sm:$0xff]  ;;  %v631_v42 = vunpack.c.l.bf16 %v5316_v32 }
  0x2c   : > { %8299 = vst [vmem:[#allocation5_spill] sm:$0xff] %v5322_v37  ;;  %v5325_v38 = vld [vmem:[%s5250_s5 + $0x400] sm:$0xff]  ;;  %v647_v47 = vunpack.c.l.bf16 %v5322_v37  ;;  %v924_v37 = vrot.slane %v923_v27, 1  ;;  %v1591_v32 = vadd.f32 %v615_v41, %v599_v40  ;;  %v1036_v13 = vrot.slane %v1035_v43, 1 }
  0x2d   : > { %8300 = vst [vmem:[#allocation6_spill] sm:$0xff] %v5325_v38  ;;  %v5328_v39 = vld [vmem:[%s5250_s5 + $0x440] sm:$0xff] }
  0x2e   : > { %8301 = vst [vmem:[#allocation7_spill] sm:$0xff] %v5328_v39  ;;  %v5334_v44 = vld [vmem:[%s5250_s5 + $0x480] sm:$0xff]  ;;  %v5411_v33 = vadd.f32 %v924_v37, %v923_v27  ;;  %v5416_v53 = vadd.f32 %v1036_v13, %v1035_v43 }
  0x2f   : > { %4442 = vmatpush.bf16.xpose.msrb.mxu0 %v4886_v62  ;;  %8302 = vst [vmem:[#allocation8_spill] sm:$0xff] %v5334_v44  ;;  %v5337_v45 = vld [vmem:[%s5250_s5 + $0x4c0] sm:$0xff]  ;;  %4456 = vmatpush.bf16.xpose.msrb.mxu1 %v4890_v63  ;;  %v695_v60 = vunpack.c.l.bf16 %v5334_v44  ;;  %v1479_v44 = vadd.f32 %v583_v35, %v567_v34  ;;  %v1145_v34 = vadd.f32 %v1144_v28, %v1143_v9  ;;  %v1592_v35 = vrot.slane %v1591_v32, 4 }
  0x30   : > { %8303 = vst [vmem:[#allocation9_spill] sm:$0xff] %v5337_v45  ;;  %v5340_v46 = vld [vmem:[%s5250_s5 + $0x500] sm:$0xff]  ;;  %4470 = vmatpush.bf16.xpose.msrb.mxu2 %v4894_v2  ;;  %v711_v61 = vunpack.c.l.bf16 %v5337_v45  ;;  %v1255_v45 = vadd.f32 %v8316_v49, %v503_v26  ;;  %v8320_v26 = vor.u32 %v5227_v59, %v5222_v58  ;;  %v8322_v58 = vunpack.c.l.bf16 %v5325_v38 }
  0x31   : > { %8304 = vst [vmem:[#allocation10_spill] sm:$0xff] %v5340_v46  ;;  %v5346_v51 = vld [vmem:[%s5250_s5 + $0x540] sm:$0xff]  ;;  %4484 = vmatpush.bf16.xpose.msrb.mxu3 %v4898_v3  ;;  %v1703_v3 = vadd.f32 %v647_v47, %v631_v42  ;;  %v1480_v48 = vrot.slane %v1479_v44, 4  ;;  %v1369_v42 = vadd.f32 %v1368_v22, %v1367_v50  ;;  %v1146_v54 = vrot.slane %v1145_v34, 2 }
  0x32   : > { %8305 = vst [vmem:[#allocation11_spill] sm:$0xff] %v5346_v51  ;;  %v5349_v56 = vld [vmem:[%s5250_s5 + $0x580] sm:$0xff]  ;;  %v1256_v21 = vrot.slane %v1255_v45, 4  ;;  %v1593_v55 = vadd.f32 %v1592_v35, %v1591_v32  ;;  %v8323_v59 = vunpack.c.l.bf16 %v5328_v39  ;;  %v1927_v36 = vadd.f32 %v711_v61, %v695_v60 }
  0x33   : > { %8306 = vst [vmem:[#allocation12_spill] sm:$0xff] %v5349_v56  ;;  %v5352_v57 = vld [vmem:[%s5250_s5 + $0x5c0] sm:$0xff]  ;;  %v1704_v40 = vrot.slane %v1703_v3, 4  ;;  %v1481_v47 = vadd.f32 %v1480_v48, %v1479_v44  ;;  %v1370_v28 = vrot.slane %v1369_v42, 2 }
  0x34   : > { %8307 = vst [vmem:[#allocation13_spill] sm:$0xff] %v5352_v57  ;;  %v5358_v63 = vld [vmem:[%s5250_s5 + $0x600] sm:$0xff]  ;;  %v1257_v41 = vadd.f32 %v1256_v21, %v1255_v45  ;;  %v1815_v27 = vadd.f32 %v8323_v59, %v8322_v58  ;;  %v1594_v0 = vrot.slane %v1593_v55, 2  ;;  %v1928_v44 = vrot.slane %v1927_v36, 4 }
  0x35   : > { %8308 = vst [vmem:[#allocation14_spill] sm:$0xff] %v5358_v63  ;;  %v5361_v2 = vld [vmem:[%s5250_s5 + $0x640] sm:$0xff]  ;;  %v1705_v49 = vadd.f32 %v1704_v40, %v1703_v3  ;;  %v1482_v37 = vrot.slane %v1481_v47, 2  ;;  %v1371_v45 = vadd.f32 %v1370_v28, %v1369_v42  ;;  %v8326_v28 = vunpack.c.l.bf16 %v5349_v56 }
  0x36   : > { %8309 = vst [vmem:[#allocation15_spill] sm:$0xff] %v5361_v2  ;;  %v5364_v14 = vld [vmem:[%s5250_s5 + $0x680] sm:$0xff]  ;;  %v1258_v9 = vrot.slane %v1257_v41, 2  ;;  %v1816_v43 = vrot.slane %v1815_v27, 4  ;;  %v1595_v32 = vadd.f32 %v1594_v0, %v1593_v55  ;;  %v1929_v35 = vadd.f32 %v1928_v44, %v1927_v36 }
  0x37   : > { %8310 = vst [vmem:[#allocation16_spill] sm:$0xff] %v5364_v14  ;;  %v5370_v16 = vld [vmem:[%s5250_s5 + $0x6c0] sm:$0xff]  ;;  %4443 = vmatpush.bf16.xpose.msrb.mxu0 %v8318_v5  ;;  %4457 = vmatpush.bf16.xpose.msrb.mxu1 %v8319_v20  ;;  %v1147_v5 = vadd.f32 %v1146_v54, %v1145_v34  ;;  %v1706_v1 = vrot.slane %v1705_v49, 2  ;;  %v1483_v50 = vadd.f32 %v1482_v37, %v1481_v47  ;;  %v1372_v20 = vrot.slane %v1371_v45, 1 }
  0x38   : > { %8311 = vst [vmem:[#allocation17_spill] sm:$0xff] %v5370_v16  ;;  %v5373_v62 = vld [vmem:[%s5250_s5 + $0x700] sm:$0xff]  ;;  %4471 = vmatpush.bf16.xpose.msrb.mxu2 %v8320_v26  ;;  %v1259_v13 = vadd.f32 %v1258_v9, %v1257_v41  ;;  %v1817_v22 = vadd.f32 %v1816_v43, %v1815_v27  ;;  %v1930_v59 = vrot.slane %v1929_v35, 2  ;;  %v8324_v9 = vunpack.c.l.bf16 %v5340_v46 }
  0x39   : > { %8312 = vst [vmem:[#allocation18_spill] sm:$0xff] %v5373_v62  ;;  %v5376_v29 = vld [vmem:[%s5250_s5 + $0x740] sm:$0xff]  ;;  %4485 = vmatpush.bf16.xpose.msrb.mxu3 %v8321_v52  ;;  %v1148_v21 = vrot.slane %v1147_v5, 1  ;;  %v1707_v3 = vadd.f32 %v1706_v1, %v1705_v49  ;;  %v1484_v26 = vrot.slane %v1483_v50, 1  ;;  %v1596_v52 = vrot.slane %v1595_v32, 1 }
  0x3a   : > { %8313 = vst [vmem:[#allocation19_spill] sm:$0xff] %v5376_v29  ;;  %v5382_v4 = vld [vmem:[%s5250_s5 + $0x780] sm:$0xff]  ;;  %v1260_v48 = vrot.slane %v1259_v13, 1  ;;  %v1818_v60 = vrot.slane %v1817_v22, 2  ;;  %v1373_v34 = vadd.f32 %v1372_v20, %v1371_v45  ;;  %v8325_v55 = vunpack.c.l.bf16 %v5346_v51 }
  0x3b   : > { %8314 = vst [vmem:[#allocation20_spill] sm:$0xff] %v5382_v4  ;;  %v5385_v15 = vld [vmem:[%s5250_s5 + $0x7c0] sm:$0xff]  ;;  %v1149_v40 = vadd.f32 %v1148_v21, %v1147_v5  ;;  %v1708_v58 = vrot.slane %v1707_v3, 1  ;;  %v1485_v54 = vadd.f32 %v1484_v26, %v1483_v50  ;;  %v1597_v41 = vadd.f32 %v1596_v52, %v1595_v32 }
  0x3c   : > { %8315 = vst [vmem:[#allocation21_spill] sm:$0xff] %v5385_v15  ;;  %v1261_v61 = vadd.f32 %v1260_v48, %v1259_v13  ;;  %v1819_v47 = vadd.f32 %v1818_v60, %v1817_v22  ;;  %v2039_v49 = vadd.f32 %v8325_v55, %v8324_v9  ;;  %v1931_v27 = vadd.f32 %v1930_v59, %v1929_v35 }
  0x3d   : > { %v1709_v42 = vadd.f32 %v1708_v58, %v1707_v3  ;;  %v8327_v37 = vunpack.c.l.bf16 %v5352_v57  ;;  %v8328_v5 = vunpack.c.l.bf16 %v5358_v63  ;;  %v8329_v0 = vunpack.c.l.bf16 %v5361_v2 }
  0x3e   : > { %v8330_v43 = vunpack.c.l.bf16 %v5364_v14  ;;  %v8331_v13 = vunpack.c.l.bf16 %v5370_v16  ;;  %v1820_v50 = vrot.slane %v1819_v47, 1  ;;  %v2040_v44 = vrot.slane %v2039_v49, 4 }
  0x3f   : > { %v2151_v36 = vadd.f32 %v8327_v37, %v8326_v28  ;;  %v2263_v1 = vadd.f32 %v8329_v0, %v8328_v5  ;;  %v8332_v21 = vunpack.c.l.bf16 %v5373_v62  ;;  %v8333_v32 = vunpack.c.l.bf16 %v5376_v29 }
  0x40   : > { %v2375_v45 = vadd.f32 %v8331_v13, %v8330_v43  ;;  %v8334_v22 = vunpack.c.l.bf16 %v5382_v4  ;;  %v8335_v48 = vunpack.c.l.bf16 %v5385_v15  ;;  %v1932_v26 = vrot.slane %v1931_v27, 1 }
  0x41   : > { %v2487_v3 = vadd.f32 %v8333_v32, %v8332_v21  ;;  %v2152_v35 = vrot.slane %v2151_v36, 4  ;;  %v2264_v52 = vrot.slane %v2263_v1, 4  ;;  %v1821_v60 = vadd.f32 %v1820_v50, %v1819_v47 }
  0x42   : > { %v2599_v20 = vadd.f32 %v8335_v48, %v8334_v22  ;;  %v2376_v58 = vrot.slane %v2375_v45, 4  ;;  %v2041_v59 = vadd.f32 %v2040_v44, %v2039_v49  ;;  %v1933_v28 = vadd.f32 %v1932_v26, %v1931_v27 }
  0x43   : > { %v2488_v9 = vrot.slane %v2487_v3, 4  ;;  %v2153_v37 = vadd.f32 %v2152_v35, %v2151_v36  ;;  %v2265_v5 = vadd.f32 %v2264_v52, %v2263_v1  ;;  %v2711_v32 = vmul.f32 0.0625, %v5411_v33 }
  0x44   : > { %v2600_v55 = vrot.slane %v2599_v20, 4  ;;  %v2377_v0 = vadd.f32 %v2376_v58, %v2375_v45  ;;  %v2042_v43 = vrot.slane %v2041_v59, 2  ;;  %v2727_v48 = vmul.f32 0.0625, %v5416_v53 }
  0x45   : > { %v2489_v13 = vadd.f32 %v2488_v9, %v2487_v3  ;;  %v2154_v4 = vrot.slane %v2153_v37, 2  ;;  %v2266_v15 = vrot.slane %v2265_v5, 2  ;;  %v2743_v49 = vmul.f32 0.0625, %v1149_v40 }
  0x46   : > { %v2601_v21 = vadd.f32 %v2600_v55, %v2599_v20  ;;  %v2378_v22 = vrot.slane %v2377_v0, 2  ;;  %v2043_v29 = vadd.f32 %v2042_v43, %v2041_v59  ;;  %v2759_v36 = vmul.f32 0.0625, %v1261_v61 }
  0x47   : > { %v2490_v62 = vrot.slane %v2489_v13, 2  ;;  %v2155_v50 = vadd.f32 %v2154_v4, %v2153_v37  ;;  %v2267_v44 = vadd.f32 %v2266_v15, %v2265_v5  ;;  %v2775_v3 = vmul.f32 0.0625, %v1373_v34 }
  0x48   : > { %v2602_v47 = vrot.slane %v2601_v21, 2  ;;  %v2379_v27 = vadd.f32 %v2378_v22, %v2377_v0  ;;  %v2044_v1 = vrot.slane %v2043_v29, 1  ;;  %v2791_v52 = vmul.f32 0.0625, %v1485_v54 }
  0x49   : > { %v2491_v45 = vadd.f32 %v2490_v62, %v2489_v13  ;;  %v2156_v20 = vrot.slane %v2155_v50, 1  ;;  %v2268_v35 = vrot.slane %v2267_v44, 1  ;;  %v2807_v53 = vmul.f32 0.0625, %v1597_v41 }
  0x4a   : > { %v2603_v26 = vadd.f32 %v2602_v47, %v2601_v21  ;;  %v2380_v33 = vrot.slane %v2379_v27, 1  ;;  %v2045_v58 = vadd.f32 %v2044_v1, %v2043_v29  ;;  %v2823_v40 = vmul.f32 0.0625, %v1709_v42 }
  0x4b   : > { %v2492_v9 = vrot.slane %v2491_v45, 1  ;;  %v2157_v59 = vadd.f32 %v2156_v20, %v2155_v50  ;;  %v2269_v43 = vadd.f32 %v2268_v35, %v2267_v44  ;;  %v2839_v37 = vmul.f32 0.0625, %v1821_v60 }
  0x4c   : > { %v2604_v55 = vrot.slane %v2603_v26, 1  ;;  %v2381_v16 = vadd.f32 %v2380_v33, %v2379_v27  ;;  %v2855_v61 = vmul.f32 0.0625, %v1933_v28  ;;  %v2871_v5 = vmul.f32 0.0625, %v2045_v58 }
  0x4d   : > { %v2493_v4 = vadd.f32 %v2492_v9, %v2491_v45  ;;  %v2887_v62 = vmul.f32 0.0625, %v2157_v59  ;;  %v2903_v0 = vmul.f32 0.0625, %v2269_v43  ;;  %v2967_v22 = vpack.c.bf16 %v2711_v32, %v2711_v32 }
  0x4e   : > { %v2605_v15 = vadd.f32 %v2604_v55, %v2603_v26  ;;  %v2919_v34 = vmul.f32 0.0625, %v2381_v16  ;;  %v2983_v54 = vpack.c.bf16 %v2727_v48, %v2727_v48  ;;  %v2999_v29 = vpack.c.bf16 %v2743_v49, %v2743_v49 }
  0x4f   : > { %v2935_v13 = vmul.f32 0.0625, %v2493_v4  ;;  %v3015_v47 = vpack.c.bf16 %v2759_v36, %v2759_v36  ;;  %v3031_v1 = vpack.c.bf16 %v2775_v3, %v2775_v3  ;;  %v3047_v41 = vpack.c.bf16 %v2791_v52, %v2791_v52 }
  0x50   : > { %v2951_v21 = vmul.f32 0.0625, %v2605_v15  ;;  %v3063_v50 = vpack.c.bf16 %v2807_v53, %v2807_v53  ;;  %v3079_v44 = vpack.c.bf16 %v2823_v40, %v2823_v40  ;;  %v3095_v27 = vpack.c.bf16 %v2839_v37, %v2839_v37  ;;  %v5449_v15 = vld [vmem:[%s5250_s5 + $0x8] sm:$0xff] }
  0x51   : > { %v3111_v42 = vpack.c.bf16 %v2855_v61, %v2855_v61  ;;  %v3127_v45 = vpack.c.bf16 %v2871_v5, %v2871_v5  ;;  %v3143_v26 = vpack.c.bf16 %v2887_v62, %v2887_v62  ;;  %v3159_v60 = vpack.c.bf16 %v2903_v0, %v2903_v0  ;;  %8336 = vst [vmem:[#allocation22_spill] sm:$0xff] %v5449_v15  ;;  %v5452_v37 = vld [vmem:[%s5250_s5 + $0x48] sm:$0xff] }
  0x52   : > { %v3175_v28 = vpack.c.bf16 %v2919_v34, %v2919_v34  ;;  %v3191_v20 = vpack.c.bf16 %v2935_v13, %v2935_v13  ;;  %v3207_v35 = vpack.c.bf16 %v2951_v21, %v2951_v21  ;;  %v3543_v33 = vunpack.c.l.b16 %v2967_v22  ;;  %8337 = vst [vmem:[#allocation23_spill] sm:$0xff] %v5452_v37  ;;  %v5456_v5 = vld [vmem:[%s5250_s5 + $0x88] sm:$0xff] }
  0x53   : > { %v3559_v16 = vunpack.c.l.b16 %v2983_v54  ;;  %v3575_v58 = vunpack.c.l.b16 %v2999_v29  ;;  %v3591_v32 = vunpack.c.l.b16 %v3015_v47  ;;  %v3607_v48 = vunpack.c.l.b16 %v3031_v1  ;;  %8338 = vst [vmem:[#allocation24_spill] sm:$0xff] %v5456_v5  ;;  %v5459_v62 = vld [vmem:[%s5250_s5 + $0xc8] sm:$0xff] }
  0x54   : > { %v3623_v49 = vunpack.c.l.b16 %v3047_v41  ;;  %v3639_v36 = vunpack.c.l.b16 %v3063_v50  ;;  %v3655_v3 = vunpack.c.l.b16 %v3079_v44  ;;  %v3671_v52 = vunpack.c.l.b16 %v3095_v27  ;;  %8339 = vst [vmem:[#allocation25_spill] sm:$0xff] %v5459_v62  ;;  %v5462_v0 = vld [vmem:[%s5250_s5 + $0x108] sm:$0xff] }
  0x55   : > { %v3687_v9 = vunpack.c.l.b16 %v3111_v42  ;;  %v3703_v55 = vunpack.c.l.b16 %v3127_v45  ;;  %v3719_v53 = vunpack.c.l.b16 %v3143_v26  ;;  %v3735_v59 = vunpack.c.l.b16 %v3159_v60  ;;  %8340 = vst [vmem:[#allocation26_spill] sm:$0xff] %v5462_v0  ;;  %v5467_v21 = vld [vmem:[%s5250_s5 + $0x148] sm:$0xff] }
  0x56   : > { %v3751_v43 = vunpack.c.l.b16 %v3175_v28  ;;  %v3767_v40 = vunpack.c.l.b16 %v3191_v20  ;;  %v3783_v4 = vunpack.c.l.b16 %v3207_v35  ;;  %v3800_v61 = vsel %vm3799_vm0, %v3559_v16, %v3543_v33  ;;  %8341 = vst [vmem:[#allocation27_spill] sm:$0xff] %v5467_v21  ;;  %v5470_v22 = vld [vmem:[%s5250_s5 + $0x188] sm:$0xff] }
  0x57   : > { %v3802_v34 = vsel %vm3801_vm1, %v3575_v58, %v3800_v61  ;;  %v3918_v13 = vsel %vm3799_vm0, %v3687_v9, %v3671_v52  ;;  %8342 = vst [vmem:[#allocation28_spill] sm:$0xff] %v5470_v22  ;;  %v5473_v54 = vld [vmem:[%s5250_s5 + $0x1c8] sm:$0xff]  ;;  %v441_v20 = vunpack.c.l.bf16 %v5456_v5  ;;  %v457_v35 = vunpack.c.l.bf16 %v5459_v62 }
  0x58   : > { %8343 = vst [vmem:[#allocation29_spill] sm:$0xff] %v5473_v54  ;;  %v3804_v29 = vsel %vm3803_vm2, %v3591_v32, %v3802_v34  ;;  %v3919_v47 = vsel %vm3801_vm1, %v3703_v55, %v3918_v13  ;;  %v5478_v1 = vld [vmem:[%s5250_s5 + $0x208] sm:$0xff]  ;;  %v473_v52 = vunpack.c.l.bf16 %v5462_v0  ;;  %v489_v9 = vunpack.c.l.bf16 %v5467_v21 }
  0x59   : > { %8344 = vst [vmem:[#allocation30_spill] sm:$0xff] %v5478_v1  ;;  %v5481_v41 = vld [vmem:[%s5250_s5 + $0x248] sm:$0xff]  ;;  %v3806_v42 = vsel %vm3805_vm3, %v3607_v48, %v3804_v29  ;;  %v3920_v45 = vsel %vm3803_vm2, %v3719_v53, %v3919_v47  ;;  %v505_v34 = vunpack.c.l.bf16 %v5470_v22  ;;  %v521_v13 = vunpack.c.l.bf16 %v5473_v54 }
  0x5a   : > { %8345 = vst [vmem:[#allocation31_spill] sm:$0xff] %v5481_v41  ;;  %v5484_v50 = vld [vmem:[%s5250_s5 + $0x288] sm:$0xff]  ;;  %v3808_v33 = vsel %vm3807_vm4, %v3623_v49, %v3806_v42  ;;  %v3921_v16 = vsel %vm3805_vm3, %v3735_v59, %v3920_v45  ;;  %v537_v45 = vunpack.c.l.bf16 %v5478_v1  ;;  %v8361_v5 = vunpack.c.l.bf16 %v5452_v37 }
  0x5b   : > { %8346 = vst [vmem:[#allocation32_spill] sm:$0xff] %v5484_v50  ;;  %v5491_v26 = vld [vmem:[%s5250_s5 + $0x2c8] sm:$0xff]  ;;  %v3810_v55 = vsel %vm3809_vm5, %v3639_v36, %v3808_v33  ;;  %v3922_v49 = vsel %vm3807_vm4, %v3751_v43, %v3921_v16  ;;  %v553_v33 = vunpack.c.l.bf16 %v5481_v41  ;;  %v1045_v14 = vadd.f32 %v457_v35, %v441_v20 }
  0x5c   : > { %8347 = vst [vmem:[#allocation33_spill] sm:$0xff] %v5491_v26  ;;  %v5494_v60 = vld [vmem:[%s5250_s5 + $0x308] sm:$0xff]  ;;  %v3812_v29 = vsel %vm3811_vm6, %v3655_v3, %v3810_v55  ;;  %v3923_v36 = vsel %vm3809_vm5, %v3767_v40, %v3922_v49  ;;  %v569_v49 = vunpack.c.l.bf16 %v5484_v50  ;;  %v585_v27 = vunpack.c.l.bf16 %v5491_v26 }
  0x5d   : > { %8348 = vst [vmem:[#allocation34_spill] sm:$0xff] %v5494_v60  ;;  %v5497_v28 = vld [vmem:[%s5250_s5 + $0x348] sm:$0xff]  ;;  %v3924_v16 = vsel %vm3811_vm6, %v3783_v4, %v3923_v36  ;;  %v601_v44 = vunpack.c.l.bf16 %v5494_v60  ;;  %v1157_v63 = vadd.f32 %v489_v9, %v473_v52  ;;  %v1269_v2 = vadd.f32 %v521_v13, %v505_v34 }
  0x5e   : > { %8349 = vst [vmem:[#allocation35_spill] sm:$0xff] %v5497_v28  ;;  %v5504_v58 = vld [vmem:[%s5250_s5 + $0x388] sm:$0xff]  ;;  %v4030_v1 = vpack.c.b16 %v3924_v16, %v3812_v29  ;;  %v617_v4 = vunpack.c.l.bf16 %v5497_v28  ;;  %v1381_v57 = vadd.f32 %v553_v33, %v537_v45  ;;  %v1493_v29 = vadd.f32 %v585_v27, %v569_v49 }
  0x5f   : > { %8350 = vst [vmem:[#allocation36_spill] sm:$0xff] %v5504_v58  ;;  %v5507_v32 = vld [vmem:[%s5250_s5 + $0x3c8] sm:$0xff]  ;;  %v633_v36 = vunpack.c.l.bf16 %v5504_v58  ;;  %v1046_v60 = vrot.slane %v1045_v14, 4  ;;  %v1158_v46 = vrot.slane %v1157_v63, 4 }
  0x60   : > { %8351 = vst [vmem:[#allocation37_spill] sm:$0xff] %v5507_v32  ;;  %v5510_v48 = vld [vmem:[%s5250_s5 + $0x408] sm:$0xff]  ;;  %v649_v21 = vunpack.c.l.bf16 %v5507_v32  ;;  %4390 = vmatmul.bf16.vlgmr.msra.gmra.mxu0 %v4030_v1  ;;  %v8360_v32 = vunpack.c.l.bf16 %v5449_v15  ;;  %v1605_v56 = vadd.f32 %v617_v4, %v601_v44  ;;  %v1270_v1 = vrot.slane %v1269_v2, 4 }
  0x61   : > { %v5517_v53 = vld [vmem:[%s5250_s5 + $0x448] sm:$0xff]  ;;  %v1382_v39 = vrot.slane %v1381_v57, 4  ;;  %v1494_v28 = vrot.slane %v1493_v29, 4  ;;  %v1047_v15 = vadd.f32 %v1046_v60, %v1045_v14  ;;  %v1159_v30 = vadd.f32 %v1158_v46, %v1157_v63 }
  0x62   : > { %v5520_v59 = vld [vmem:[%s5250_s5 + $0x488] sm:$0xff]  ;;  %v933_v62 = vadd.f32 %v8361_v5, %v8360_v32  ;;  %v1717_v16 = vadd.f32 %v649_v21, %v633_v36  ;;  %v1606_v38 = vrot.slane %v1605_v56, 4  ;;  %v1271_v37 = vadd.f32 %v1270_v1, %v1269_v2 }
  0x63   : > { %v5523_v61 = vld [vmem:[%s5250_s5 + $0x4c8] sm:$0xff]  ;;  %v1383_v5 = vadd.f32 %v1382_v39, %v1381_v57  ;;  %v1495_v20 = vadd.f32 %v1494_v28, %v1493_v29  ;;  %v1048_v27 = vrot.slane %v1047_v15, 2  ;;  %v1160_v44 = vrot.slane %v1159_v30, 2 }
  0x64   : > { %v5530_v47 = vld [vmem:[%s5250_s5 + $0x508] sm:$0xff]  ;;  %v934_v51 = vrot.slane %v933_v62, 4  ;;  %v1718_v58 = vrot.slane %v1717_v16, 4  ;;  %v1607_v35 = vadd.f32 %v1606_v38, %v1605_v56  ;;  %v1272_v21 = vrot.slane %v1271_v37, 2 }
  0x65   : > { %v5533_v43 = vld [vmem:[%s5250_s5 + $0x548] sm:$0xff]  ;;  %v1384_v9 = vrot.slane %v1383_v5, 2  ;;  %v1496_v34 = vrot.slane %v1495_v20, 2  ;;  %v1049_v49 = vadd.f32 %v1048_v27, %v1047_v15  ;;  %v1161_v4 = vadd.f32 %v1160_v44, %v1159_v30 }
  0x66   : > { %v5536_v42 = vld [vmem:[%s5250_s5 + $0x588] sm:$0xff]  ;;  %v935_v31 = vadd.f32 %v934_v51, %v933_v62  ;;  %v1719_v32 = vadd.f32 %v1718_v58, %v1717_v16  ;;  %v1608_v13 = vrot.slane %v1607_v35, 2  ;;  %v1273_v36 = vadd.f32 %v1272_v21, %v1271_v37 }
  0x67   : > { %v5542_v3 = vld [vmem:[%s5250_s5 + $0x5c8] sm:$0xff]  ;;  %v1385_v51 = vadd.f32 %v1384_v9, %v1383_v5  ;;  %v1497_v14 = vadd.f32 %v1496_v34, %v1495_v20  ;;  %v1050_v57 = vrot.slane %v1049_v49, 1  ;;  %v1162_v38 = vrot.slane %v1161_v4, 1 }
  0x68   : > { %v5545_v55 = vld [vmem:[%s5250_s5 + $0x608] sm:$0xff]  ;;  %v936_v52 = vrot.slane %v935_v31, 2  ;;  %v1720_v45 = vrot.slane %v1719_v32, 2  ;;  %v1609_v46 = vadd.f32 %v1608_v13, %v1607_v35  ;;  %v1274_v56 = vrot.slane %v1273_v36, 1 }
  0x69   : > { %8352 = vst [vmem:[#allocation38_spill] sm:$0xff] %v5545_v55  ;;  %v5548_v40 = vld [vmem:[%s5250_s5 + $0x648] sm:$0xff]  ;;  %v1386_v2 = vrot.slane %v1385_v51, 1  ;;  %v1498_v62 = vrot.slane %v1497_v14, 1  ;;  %v5596_v29 = vadd.f32 %v1050_v57, %v1049_v49  ;;  %v8362_v5 = vunpack.c.l.bf16 %v5510_v48 }
  0x6a   : > { %8353 = vst [vmem:[#allocation39_spill] sm:$0xff] %v5548_v40  ;;  %v5554_v54 = vld [vmem:[%s5250_s5 + $0x688] sm:$0xff]  ;;  %v937_v33 = vadd.f32 %v936_v52, %v935_v31  ;;  %v1721_v63 = vadd.f32 %v1720_v45, %v1719_v32  ;;  %v1610_v60 = vrot.slane %v1609_v46, 1  ;;  %v5598_v31 = vadd.f32 %v1162_v38, %v1161_v4 }
  0x6b   : > { %8354 = vst [vmem:[#allocation40_spill] sm:$0xff] %v5554_v54  ;;  %v5557_v41 = vld [vmem:[%s5250_s5 + $0x6c8] sm:$0xff]  ;;  %v5600_v30 = vadd.f32 %v1274_v56, %v1273_v36  ;;  %v5602_v15 = vadd.f32 %v1386_v2, %v1385_v51  ;;  %v5604_v37 = vadd.f32 %v1498_v62, %v1497_v14  ;;  %v8363_v20 = vunpack.c.l.bf16 %v5517_v53 }
  0x6c   : > { %8355 = vst [vmem:[#allocation41_spill] sm:$0xff] %v5557_v41  ;;  %v5560_v22 = vld [vmem:[%s5250_s5 + $0x708] sm:$0xff]  ;;  %v938_v39 = vrot.slane %v937_v33, 1  ;;  %v1722_v28 = vrot.slane %v1721_v63, 1  ;;  %v5606_v16 = vadd.f32 %v1610_v60, %v1609_v46  ;;  %v8364_v32 = vunpack.c.l.bf16 %v5520_v59 }
  0x6d   : > { %8356 = vst [vmem:[#allocation42_spill] sm:$0xff] %v5560_v22  ;;  %v5566_v0 = vld [vmem:[%s5250_s5 + $0x748] sm:$0xff]  ;;  %v1829_v35 = vadd.f32 %v8363_v20, %v8362_v5  ;;  %v8365_v52 = vunpack.c.l.bf16 %v5523_v61  ;;  %v8366_v44 = vunpack.c.l.bf16 %v5530_v47  ;;  %v8367_v21 = vunpack.c.l.bf16 %v5533_v43 }
  0x6e   : > { %8357 = vst [vmem:[#allocation43_spill] sm:$0xff] %v5566_v0  ;;  %v5569_v50 = vld [vmem:[%s5250_s5 + $0x788] sm:$0xff]  ;;  %v5594_v58 = vadd.f32 %v938_v39, %v937_v33  ;;  %v5608_v1 = vadd.f32 %v1722_v28, %v1721_v63  ;;  %v8368_v34 = vunpack.c.l.bf16 %v5536_v42  ;;  %v8369_v13 = vunpack.c.l.bf16 %v5542_v3 }
  0x6f   : > { %8358 = vst [vmem:[#allocation44_spill] sm:$0xff] %v5569_v50  ;;  %v5572_v26 = vld [vmem:[%s5250_s5 + $0x7c8] sm:$0xff]  ;;  %v1941_v27 = vadd.f32 %v8365_v52, %v8364_v32  ;;  %v2053_v9 = vadd.f32 %v8367_v21, %v8366_v44  ;;  %v8370_v33 = vunpack.c.l.bf16 %v5545_v55  ;;  %v8371_v49 = vunpack.c.l.bf16 %v5548_v40 }
  0x70   : > { %8359 = vst [vmem:[#allocation45_spill] sm:$0xff] %v5572_v26  ;;  %v2165_v45 = vadd.f32 %v8369_v13, %v8368_v34  ;;  %v8372_v36 = vunpack.c.l.bf16 %v5554_v54  ;;  %v8373_v51 = vunpack.c.l.bf16 %v5557_v41  ;;  %v8374_v46 = vunpack.c.l.bf16 %v5560_v22 }
  0x71   : > { %v2277_v4 = vadd.f32 %v8371_v49, %v8370_v33  ;;  %v8375_v63 = vunpack.c.l.bf16 %v5566_v0  ;;  %v8376_v57 = vunpack.c.l.bf16 %v5569_v50  ;;  %v8377_v38 = vunpack.c.l.bf16 %v5572_v26 }
  0x72   : > { %v2389_v14 = vadd.f32 %v8373_v51, %v8372_v36  ;;  %v1830_v2 = vrot.slane %v1829_v35, 4  ;;  %v1942_v62 = vrot.slane %v1941_v27, 4  ;;  %v2054_v60 = vrot.slane %v2053_v9, 4 }
  0x73   : > { %v2501_v39 = vadd.f32 %v8375_v63, %v8374_v46  ;;  %v2613_v56 = vadd.f32 %v8377_v38, %v8376_v57  ;;  %v2166_v28 = vrot.slane %v2165_v45, 4  ;;  %v2278_v5 = vrot.slane %v2277_v4, 4 }
  0x74   : > { %v2390_v20 = vrot.slane %v2389_v14, 4  ;;  %v1831_v44 = vadd.f32 %v1830_v2, %v1829_v35  ;;  %v1943_v21 = vadd.f32 %v1942_v62, %v1941_v27  ;;  %v2055_v34 = vadd.f32 %v2054_v60, %v2053_v9 }
  0x75   : > { %v2502_v32 = vrot.slane %v2501_v39, 4  ;;  %v2614_v52 = vrot.slane %v2613_v56, 4  ;;  %v2167_v13 = vadd.f32 %v2166_v28, %v2165_v45  ;;  %v2279_v33 = vadd.f32 %v2278_v5, %v2277_v4 }
  0x76   : > { %v2391_v49 = vadd.f32 %v2390_v20, %v2389_v14  ;;  %v1832_v46 = vrot.slane %v1831_v44, 2  ;;  %v1944_v63 = vrot.slane %v1943_v21, 2  ;;  %v2056_v26 = vrot.slane %v2055_v34, 2 }
  0x77   : > { %v2503_v36 = vadd.f32 %v2502_v32, %v2501_v39  ;;  %v2615_v51 = vadd.f32 %v2614_v52, %v2613_v56  ;;  %v2168_v57 = vrot.slane %v2167_v13, 2  ;;  %v2280_v38 = vrot.slane %v2279_v33, 2 }
  0x78   : > { %v2392_v50 = vrot.slane %v2391_v49, 2  ;;  %v1833_v41 = vadd.f32 %v1832_v46, %v1831_v44  ;;  %v1945_v54 = vadd.f32 %v1944_v63, %v1943_v21  ;;  %v2057_v40 = vadd.f32 %v2056_v26, %v2055_v34 }
  0x79   : > { %v2504_v0 = vrot.slane %v2503_v36, 2  ;;  %v2616_v22 = vrot.slane %v2615_v51, 2  ;;  %v2169_v55 = vadd.f32 %v2168_v57, %v2167_v13  ;;  %v2281_v35 = vadd.f32 %v2280_v38, %v2279_v33 }
  0x7a   : > { %v2393_v27 = vadd.f32 %v2392_v50, %v2391_v49  ;;  %v1834_v4 = vrot.slane %v1833_v41, 1  ;;  %v1946_v14 = vrot.slane %v1945_v54, 1  ;;  %v2058_v39 = vrot.slane %v2057_v40, 1 }
  0x7b   : > { %v2505_v9 = vadd.f32 %v2504_v0, %v2503_v36  ;;  %v2617_v45 = vadd.f32 %v2616_v22, %v2615_v51  ;;  %v2170_v56 = vrot.slane %v2169_v55, 1  ;;  %v2282_v2 = vrot.slane %v2281_v35, 1 }
  0x7c   : > { %v2394_v62 = vrot.slane %v2393_v27, 1  ;;  %v1835_v5 = vadd.f32 %v1834_v4, %v1833_v41  ;;  %v1947_v20 = vadd.f32 %v1946_v14, %v1945_v54  ;;  %v2059_v32 = vadd.f32 %v2058_v39, %v2057_v40 }
  0x7d   : > { %v2506_v60 = vrot.slane %v2505_v9, 1  ;;  %v2618_v28 = vrot.slane %v2617_v45, 1  ;;  %v2171_v52 = vadd.f32 %v2170_v56, %v2169_v55  ;;  %v2283_v44 = vadd.f32 %v2282_v2, %v2281_v35 }
  0x7e   : > { %v2395_v21 = vadd.f32 %v2394_v62, %v2393_v27  ;;  %v2713_v50 = vmul.f32 0.0625, %v5594_v58  ;;  %v2729_v0 = vmul.f32 0.0625, %v5596_v29  ;;  %v2745_v22 = vmul.f32 0.0625, %v5598_v31 }
  0x7f   : > { %v2507_v26 = vadd.f32 %v2506_v60, %v2505_v9  ;;  %v2619_v34 = vadd.f32 %v2618_v28, %v2617_v45  ;;  %v2761_v13 = vmul.f32 0.0625, %v5600_v30  ;;  %v2777_v33 = vmul.f32 0.0625, %v5602_v15 }
  0x80   : > { %v2793_v49 = vmul.f32 0.0625, %v5604_v37  ;;  %v2809_v54 = vmul.f32 0.0625, %v5606_v16  ;;  %v2825_v41 = vmul.f32 0.0625, %v5608_v1  ;;  %v2841_v55 = vmul.f32 0.0625, %v1835_v5  ;;  %v4757_v5 = vld [vmem:[%s8062_s1 + $0x90] sm:$0xf] }
  0x81   : > { %v2857_v40 = vmul.f32 0.0625, %v1947_v20  ;;  %v2873_v36 = vmul.f32 0.0625, %v2059_v32  ;;  %v2889_v51 = vmul.f32 0.0625, %v2171_v52  ;;  %v2905_v46 = vmul.f32 0.0625, %v2283_v44  ;;  %v4960_v20 = vld [vmem:[%s8062_s1 + $0xcc] sm:$0xf0] }
  0x82   : > { %v2921_v58 = vmul.f32 0.0625, %v2395_v21  ;;  %v2937_v63 = vmul.f32 0.0625, %v2507_v26  ;;  %v2953_v29 = vmul.f32 0.0625, %v2619_v34  ;;  %v2969_v57 = vpack.c.bf16 %v2713_v50, %v2713_v50  ;;  %v4952_v26 = vld [vmem:[%s8062_s1 + $0x94] sm:$0xf] }
  0x83   : > { %v2985_v31 = vpack.c.bf16 %v2729_v0, %v2729_v0  ;;  %v3001_v38 = vpack.c.bf16 %v2745_v22, %v2745_v22  ;;  %v3017_v30 = vpack.c.bf16 %v2761_v13, %v2761_v13  ;;  %v3033_v35 = vpack.c.bf16 %v2777_v33, %v2777_v33  ;;  %v4759_v34 = vld [vmem:[%s8062_s1 + $0xd0] sm:$0xf0]  ;;  %v4765_v50 = vld [vmem:[%s8062_s1 + $0x98] sm:$0xf] }
  0x84   : > { %v3049_v15 = vpack.c.bf16 %v2793_v49, %v2793_v49  ;;  %v3065_v27 = vpack.c.bf16 %v2809_v54, %v2809_v54  ;;  %v3081_v37 = vpack.c.bf16 %v2825_v41, %v2825_v41  ;;  %v3097_v9 = vpack.c.bf16 %v2841_v55, %v2841_v55  ;;  %v4961_v49 = vld [vmem:[%s8062_s1 + $0xd4] sm:$0xf0]  ;;  %v4953_v54 = vld [vmem:[%s8062_s1 + $0x9c] sm:$0xf] }
  0x85   : > { %v3113_v16 = vpack.c.bf16 %v2857_v40, %v2857_v40  ;;  %v3129_v45 = vpack.c.bf16 %v2873_v36, %v2873_v36  ;;  %v3145_v1 = vpack.c.bf16 %v2889_v51, %v2889_v51  ;;  %v3161_v4 = vpack.c.bf16 %v2905_v46, %v2905_v46  ;;  %v4767_v41 = vld [vmem:[%s8062_s1 + $0xd8] sm:$0xf0] }
  0x86   : > { %v3177_v14 = vpack.c.bf16 %v2921_v58, %v2921_v58  ;;  %v3193_v39 = vpack.c.bf16 %v2937_v63, %v2937_v63  ;;  %v3209_v56 = vpack.c.bf16 %v2953_v29, %v2953_v29  ;;  %v3545_v2 = vunpack.c.l.b16 %v2969_v57 }
  0x87   : > { %v3561_v62 = vunpack.c.l.b16 %v2985_v31  ;;  %v3577_v60 = vunpack.c.l.b16 %v3001_v38  ;;  %v3593_v28 = vunpack.c.l.b16 %v3017_v30  ;;  %v3609_v32 = vunpack.c.l.b16 %v3033_v35 }
  0x88   : > { %v3625_v52 = vunpack.c.l.b16 %v3049_v15  ;;  %v3641_v44 = vunpack.c.l.b16 %v3065_v27  ;;  %v3657_v21 = vunpack.c.l.b16 %v3081_v37  ;;  %v3673_v0 = vunpack.c.l.b16 %v3097_v9 }
  0x89   : > { %v3689_v22 = vunpack.c.l.b16 %v3113_v16  ;;  %v3705_v13 = vunpack.c.l.b16 %v3129_v45  ;;  %v3721_v33 = vunpack.c.l.b16 %v3145_v1  ;;  %v3737_v55 = vunpack.c.l.b16 %v3161_v4 }
  0x8a   : > { %v3753_v40 = vunpack.c.l.b16 %v3177_v14  ;;  %v3769_v36 = vunpack.c.l.b16 %v3193_v39  ;;  %v3785_v51 = vunpack.c.l.b16 %v3209_v56  ;;  %v3820_v46 = vsel %vm3799_vm0, %v3561_v62, %v3545_v2 }
  0x8b   : > { %v3932_v58 = vsel %vm3799_vm0, %v3689_v22, %v3673_v0  ;;  %v4758_v63 = vor.u32 %v4960_v20, %v4757_v5  ;;  %v4762_v29 = vor.u32 %v4952_v26, %v4759_v34  ;;  %v3821_v57 = vsel %vm3801_vm1, %v3577_v60, %v3820_v46  ;;  %v8378_v20 = vld [vmem:[#allocation2_spill] sm:$0xff]  ;;  %v8383_v0 = vld [vmem:[#allocation7_spill] sm:$0xff]  ;;  %v8384_v22 = vld [vmem:[#allocation8_spill] sm:$0xff] }
  0x8c   : > { %v3933_v31 = vsel %vm3801_vm1, %v3705_v13, %v3932_v58  ;;  %v4766_v38 = vor.u32 %v4961_v49, %v4765_v50  ;;  %v4770_v30 = vor.u32 %v4953_v54, %v4767_v41  ;;  %v3822_v35 = vsel %vm3803_vm2, %v3593_v28, %v3821_v57  ;;  %v8385_v13 = vld [vmem:[#allocation9_spill] sm:$0xff]  ;;  %v8388_v41 = vld [vmem:[#allocation12_spill] sm:$0xff]  ;;  %v8391_v58 = vld [vmem:[#allocation15_spill] sm:$0xff] }
  0x8d   : > { %v3934_v15 = vsel %vm3803_vm2, %v3721_v33, %v3933_v31  ;;  %4444 = vmatpush.bf16.xpose.msrb.mxu0 %v4758_v63  ;;  %4458 = vmatpush.bf16.xpose.msrb.mxu1 %v4762_v29  ;;  %v408_v27 = vunpack.c.h.bf16 %v5261_v6  ;;  %v424_v37 = vunpack.c.h.bf16 %v5264_v7  ;;  %v3823_v9 = vsel %vm3805_vm3, %v3609_v32, %v3822_v35  ;;  %v8392_v29 = vld [vmem:[#allocation16_spill] sm:$0xff]  ;;  %v8393_v31 = vld [vmem:[#allocation17_spill] sm:$0xff] }
  0x8e   : > { %v3935_v16 = vsel %vm3805_vm3, %v3737_v55, %v3934_v15  ;;  %4472 = vmatpush.bf16.xpose.msrb.mxu2 %v4766_v38  ;;  %4486 = vmatpush.bf16.xpose.msrb.mxu3 %v4770_v30  ;;  %v440_v45 = vunpack.c.h.bf16 %v5267_v8  ;;  %v456_v1 = vunpack.c.h.bf16 %v5272_v10  ;;  %v3824_v4 = vsel %vm3807_vm4, %v3625_v52, %v3823_v9  ;;  %v8379_v52 = vld [vmem:[#allocation3_spill] sm:$0xff]  ;;  %v8394_v30 = vld [vmem:[#allocation18_spill] sm:$0xff] }
  0x8f   : > { %v3936_v14 = vsel %vm3807_vm4, %v3753_v40, %v3935_v16  ;;  %v472_v39 = vunpack.c.h.bf16 %v5275_v11  ;;  %v488_v6 = vunpack.c.h.bf16 %v5278_v12  ;;  %v3825_v7 = vsel %vm3809_vm5, %v3641_v44, %v3824_v4  ;;  %v8389_v40 = vld [vmem:[#allocation13_spill] sm:$0xff]  ;;  %v8395_v15 = vld [vmem:[#allocation19_spill] sm:$0xff]  ;;  %v8396_v16 = vld [vmem:[#allocation20_spill] sm:$0xff] }
  0x90   : > { %v3937_v56 = vsel %vm3809_vm5, %v3769_v36, %v3936_v14  ;;  %v504_v2 = vunpack.c.h.bf16 %v5286_v17  ;;  %v520_v62 = vunpack.c.h.bf16 %v5289_v18  ;;  %v3826_v8 = vsel %vm3811_vm6, %v3657_v21, %v3825_v7  ;;  %v8380_v17 = vld [vmem:[#allocation4_spill] sm:$0xff]  ;;  %v8381_v18 = vld [vmem:[#allocation5_spill] sm:$0xff]  ;;  %v8382_v21 = vld [vmem:[#allocation6_spill] sm:$0xff] }
  0x91   : > { %v3938_v10 = vsel %vm3811_vm6, %v3785_v51, %v3937_v56  ;;  %v536_v60 = vunpack.c.h.bf16 %v5292_v19  ;;  %v552_v28 = vunpack.c.h.bf16 %v5298_v23  ;;  %v568_v11 = vunpack.c.h.bf16 %v5301_v24  ;;  %v8386_v24 = vld [vmem:[#allocation10_spill] sm:$0xff]  ;;  %v8397_v14 = vld [vmem:[#allocation21_spill] sm:$0xff] }
  0x92   : > { %v4032_v5 = vpack.c.b16 %v3938_v10, %v3826_v8  ;;  %v584_v12 = vunpack.c.h.bf16 %v5304_v25  ;;  %v600_v32 = vunpack.c.h.bf16 %v8378_v20  ;;  %v616_v44 = vunpack.c.h.bf16 %v8379_v52  ;;  %v8387_v25 = vld [vmem:[#allocation11_spill] sm:$0xff]  ;;  %v8390_v51 = vld [vmem:[#allocation14_spill] sm:$0xff] }
  0x93   : > { %v632_v26 = vunpack.c.h.bf16 %v8380_v17  ;;  %v648_v34 = vunpack.c.h.bf16 %v8381_v18  ;;  %v664_v50 = vunpack.c.h.bf16 %v8382_v21  ;;  %v680_v19 = vunpack.c.h.bf16 %v8383_v0 }
  0x94   : > { %4418 = vmatmul.bf16.vlgmr.msra.gmra.mxu2 %v4032_v5  ;;  %v696_v23 = vunpack.c.h.bf16 %v8384_v22  ;;  %v712_v33 = vunpack.c.h.bf16 %v8385_v13  ;;  %v926_v56 = vadd.f32 %v424_v37, %v408_v27  ;;  %v1038_v8 = vadd.f32 %v456_v1, %v440_v45 }
  0x95   : > { %v1150_v10 = vadd.f32 %v488_v6, %v472_v39  ;;  %v1262_v5 = vadd.f32 %v520_v62, %v504_v2  ;;  %v1374_v20 = vadd.f32 %v552_v28, %v536_v60  ;;  %v1486_v17 = vadd.f32 %v584_v12, %v568_v11 }
  0x96   : > { %v927_v52 = vrot.slane %v926_v56, 4  ;;  %v1598_v18 = vadd.f32 %v616_v44, %v600_v32  ;;  %v1710_v63 = vadd.f32 %v648_v34, %v632_v26  ;;  %v1039_v57 = vrot.slane %v1038_v8, 4 }
  0x97   : > { %v1151_v46 = vrot.slane %v1150_v10, 4  ;;  %v1263_v38 = vrot.slane %v1262_v5, 4  ;;  %v1375_v36 = vrot.slane %v1374_v20, 4  ;;  %v1487_v55 = vrot.slane %v1486_v17, 4 }
  0x98   : > { %v928_v35 = vadd.f32 %v927_v52, %v926_v56  ;;  %v1599_v9 = vrot.slane %v1598_v18, 4  ;;  %v1711_v54 = vrot.slane %v1710_v63, 4  ;;  %v1040_v4 = vadd.f32 %v1039_v57, %v1038_v8 }
  0x99   : > { %v1152_v49 = vadd.f32 %v1151_v46, %v1150_v10  ;;  %v1264_v7 = vadd.f32 %v1263_v38, %v1262_v5  ;;  %v1376_v27 = vadd.f32 %v1375_v36, %v1374_v20  ;;  %v1488_v45 = vadd.f32 %v1487_v55, %v1486_v17 }
  0x9a   : > { %v929_v37 = vrot.slane %v928_v35, 2  ;;  %v1600_v1 = vadd.f32 %v1599_v9, %v1598_v18  ;;  %v1712_v39 = vadd.f32 %v1711_v54, %v1710_v63  ;;  %v1041_v6 = vrot.slane %v1040_v4, 2 }
  0x9b   : > { %v1153_v2 = vrot.slane %v1152_v49, 2  ;;  %v1265_v62 = vrot.slane %v1264_v7, 2  ;;  %v1377_v60 = vrot.slane %v1376_v27, 2  ;;  %v1489_v11 = vrot.slane %v1488_v45, 2 }
  0x9c   : > { %v930_v28 = vadd.f32 %v929_v37, %v928_v35  ;;  %v1601_v12 = vrot.slane %v1600_v1, 2  ;;  %v1713_v32 = vrot.slane %v1712_v39, 2  ;;  %v1042_v44 = vadd.f32 %v1041_v6, %v1040_v4 }
  0x9d   : > { %v1154_v26 = vadd.f32 %v1153_v2, %v1152_v49  ;;  %v1266_v34 = vadd.f32 %v1265_v62, %v1264_v7  ;;  %v1378_v56 = vadd.f32 %v1377_v60, %v1376_v27  ;;  %v1490_v46 = vadd.f32 %v1489_v11, %v1488_v45 }
  0x9e   : > { %v931_v57 = vrot.slane %v930_v28, 1  ;;  %v1602_v38 = vadd.f32 %v1601_v12, %v1600_v1  ;;  %v1714_v36 = vadd.f32 %v1713_v32, %v1712_v39  ;;  %v1043_v8 = vrot.slane %v1042_v44, 1 }
  0x9f   : > { %v1155_v55 = vrot.slane %v1154_v26, 1  ;;  %v1267_v9 = vrot.slane %v1266_v34, 1  ;;  %v1379_v54 = vrot.slane %v1378_v56, 1  ;;  %v1491_v10 = vrot.slane %v1490_v46, 1 }
  0xa0   : > { %v5720_v63 = vadd.f32 %v931_v57, %v930_v28  ;;  %v1603_v5 = vrot.slane %v1602_v38, 1  ;;  %v1715_v35 = vrot.slane %v1714_v36, 1  ;;  %v5722_v20 = vadd.f32 %v1043_v8, %v1042_v44 }
  0xa1   : > { %v5724_v52 = vadd.f32 %v1155_v55, %v1154_v26  ;;  %v5726_v49 = vadd.f32 %v1267_v9, %v1266_v34  ;;  %v5728_v4 = vadd.f32 %v1379_v54, %v1378_v56  ;;  %v5730_v7 = vadd.f32 %v1491_v10, %v1490_v46 }
  0xa2   : > { %v5732_v17 = vadd.f32 %v1603_v5, %v1602_v38  ;;  %v5734_v18 = vadd.f32 %v1715_v35, %v1714_v36  ;;  %v1822_v27 = vadd.f32 %v680_v19, %v664_v50  ;;  %v1934_v37 = vadd.f32 %v712_v33, %v696_v23 }
  0xa3   : > { %v8398_v45 = vunpack.c.h.bf16 %v8386_v24  ;;  %v8399_v1 = vunpack.c.h.bf16 %v8387_v25  ;;  %v8400_v6 = vunpack.c.h.bf16 %v8388_v41  ;;  %v8401_v2 = vunpack.c.h.bf16 %v8389_v40 }
  0xa4   : > { %v8402_v21 = vunpack.c.h.bf16 %v8390_v51  ;;  %v8403_v0 = vunpack.c.h.bf16 %v8391_v58  ;;  %v1823_v19 = vrot.slane %v1822_v27, 4  ;;  %v8404_v22 = vunpack.c.h.bf16 %v8392_v29 }
  0xa5   : > { %v2046_v39 = vadd.f32 %v8399_v1, %v8398_v45  ;;  %v2158_v62 = vadd.f32 %v8401_v2, %v8400_v6  ;;  %v8405_v23 = vunpack.c.h.bf16 %v8393_v31  ;;  %v8406_v33 = vunpack.c.h.bf16 %v8394_v30 }
  0xa6   : > { %v2270_v50 = vadd.f32 %v8403_v0, %v8402_v21  ;;  %v8407_v24 = vunpack.c.h.bf16 %v8395_v15  ;;  %v8408_v41 = vunpack.c.h.bf16 %v8396_v16  ;;  %v8409_v40 = vunpack.c.h.bf16 %v8397_v14 }
  0xa7   : > { %v2382_v13 = vadd.f32 %v8405_v23, %v8404_v22  ;;  %v1935_v51 = vrot.slane %v1934_v37, 4  ;;  %v2047_v28 = vrot.slane %v2046_v39, 4  ;;  %v2159_v58 = vrot.slane %v2158_v62, 4 }
  0xa8   : > { %v2494_v25 = vadd.f32 %v8407_v24, %v8406_v33  ;;  %v2606_v60 = vadd.f32 %v8409_v40, %v8408_v41  ;;  %v2271_v11 = vrot.slane %v2270_v50, 4  ;;  %v1824_v12 = vadd.f32 %v1823_v19, %v1822_v27 }
  0xa9   : > { %v2383_v32 = vrot.slane %v2382_v13, 4  ;;  %v1936_v31 = vadd.f32 %v1935_v51, %v1934_v37  ;;  %v2048_v26 = vadd.f32 %v2047_v28, %v2046_v39  ;;  %v2160_v34 = vadd.f32 %v2159_v58, %v2158_v62 }
  0xaa   : > { %v2495_v29 = vrot.slane %v2494_v25, 4  ;;  %v2607_v44 = vrot.slane %v2606_v60, 4  ;;  %v2272_v30 = vadd.f32 %v2271_v11, %v2270_v50  ;;  %v1825_v56 = vrot.slane %v1824_v12, 2 }
  0xab   : > { %v2384_v15 = vadd.f32 %v2383_v32, %v2382_v13  ;;  %v1937_v16 = vrot.slane %v1936_v31, 2  ;;  %v2049_v38 = vrot.slane %v2048_v26, 2  ;;  %v2161_v14 = vrot.slane %v2160_v34, 2 }
  0xac   : > { %v2496_v57 = vadd.f32 %v2495_v29, %v2494_v25  ;;  %v2608_v46 = vadd.f32 %v2607_v44, %v2606_v60  ;;  %v2273_v36 = vrot.slane %v2272_v30, 2  ;;  %v1826_v8 = vadd.f32 %v1825_v56, %v1824_v12 }
  0xad   : > { %v2385_v55 = vrot.slane %v2384_v15, 2  ;;  %v1938_v10 = vadd.f32 %v1937_v16, %v1936_v31  ;;  %v2050_v5 = vadd.f32 %v2049_v38, %v2048_v26  ;;  %v2162_v35 = vadd.f32 %v2161_v14, %v2160_v34 }
  0xae   : > { %v2497_v9 = vrot.slane %v2496_v57, 2  ;;  %v2609_v54 = vrot.slane %v2608_v46, 2  ;;  %v2274_v27 = vadd.f32 %v2273_v36, %v2272_v30  ;;  %v1827_v37 = vrot.slane %v1826_v8, 1 }
  0xaf   : > { %v2386_v45 = vadd.f32 %v2385_v55, %v2384_v15  ;;  %v1939_v6 = vrot.slane %v1938_v10, 1  ;;  %v2051_v2 = vrot.slane %v2050_v5, 1  ;;  %v2163_v62 = vrot.slane %v2162_v35, 1 }
  0xb0   : > { %v2498_v1 = vadd.f32 %v2497_v9, %v2496_v57  ;;  %v2610_v39 = vadd.f32 %v2609_v54, %v2608_v46  ;;  %v2275_v21 = vrot.slane %v2274_v27, 1  ;;  %v1828_v0 = vadd.f32 %v1827_v37, %v1826_v8 }
  0xb1   : > { %v2387_v50 = vrot.slane %v2386_v45, 1  ;;  %v1940_v23 = vadd.f32 %v1939_v6, %v1938_v10  ;;  %v2052_v13 = vadd.f32 %v2051_v2, %v2050_v5  ;;  %v2164_v33 = vadd.f32 %v2163_v62, %v2162_v35 }
  0xb2   : > { %v2499_v19 = vrot.slane %v2498_v1, 1  ;;  %v2611_v22 = vrot.slane %v2610_v39, 1  ;;  %v2276_v24 = vadd.f32 %v2275_v21, %v2274_v27  ;;  %v2712_v60 = vmul.f32 0.0625, %v5720_v63 }
  0xb3   : > { %v2388_v25 = vadd.f32 %v2387_v50, %v2386_v45  ;;  %v2728_v51 = vmul.f32 0.0625, %v5722_v20  ;;  %v2744_v28 = vmul.f32 0.0625, %v5724_v52  ;;  %v2760_v58 = vmul.f32 0.0625, %v5726_v49 }
  0xb4   : > { %v2500_v41 = vadd.f32 %v2499_v19, %v2498_v1  ;;  %v2612_v40 = vadd.f32 %v2611_v22, %v2610_v39  ;;  %v2776_v11 = vmul.f32 0.0625, %v5728_v4  ;;  %v2792_v12 = vmul.f32 0.0625, %v5730_v7 }
  0xb5   : > { %v2808_v32 = vmul.f32 0.0625, %v5732_v17  ;;  %v2824_v29 = vmul.f32 0.0625, %v5734_v18  ;;  %v2840_v44 = vmul.f32 0.0625, %v1828_v0  ;;  %v2856_v31 = vmul.f32 0.0625, %v1940_v23 }
  0xb6   : > { %v2872_v26 = vmul.f32 0.0625, %v2052_v13  ;;  %v2888_v34 = vmul.f32 0.0625, %v2164_v33  ;;  %v2904_v30 = vmul.f32 0.0625, %v2276_v24  ;;  %v2920_v63 = vmul.f32 0.0625, %v2388_v25  ;;  %v8410_v33 = vld [vmem:[#allocation22_spill] sm:$0xff]  ;;  %v8411_v25 = vld [vmem:[#allocation23_spill] sm:$0xff] }
  0xb7   : > { %v2936_v56 = vmul.f32 0.0625, %v2500_v41  ;;  %v2952_v20 = vmul.f32 0.0625, %v2612_v40  ;;  %v2968_v15 = vpack.c.bf16 %v2712_v60, %v2712_v60  ;;  %v2984_v52 = vpack.c.bf16 %v2728_v51, %v2728_v51  ;;  %v8412_v51 = vld [vmem:[#allocation24_spill] sm:$0xff] }
  0xb8   : > { %v3000_v57 = vpack.c.bf16 %v2744_v28, %v2744_v28  ;;  %v3016_v49 = vpack.c.bf16 %v2760_v58, %v2760_v58  ;;  %v3032_v46 = vpack.c.bf16 %v2776_v11, %v2776_v11  ;;  %v3048_v4 = vpack.c.bf16 %v2792_v12, %v2792_v12  ;;  %v8413_v58 = vld [vmem:[#allocation25_spill] sm:$0xff] }
  0xb9   : > { %v3064_v16 = vpack.c.bf16 %v2808_v32, %v2808_v32  ;;  %v3080_v7 = vpack.c.bf16 %v2824_v29, %v2824_v29  ;;  %v3096_v38 = vpack.c.bf16 %v2840_v44, %v2840_v44  ;;  %v3112_v17 = vpack.c.bf16 %v2856_v31, %v2856_v31  ;;  %v8414_v29 = vld [vmem:[#allocation26_spill] sm:$0xff]  ;;  %v8415_v31 = vld [vmem:[#allocation27_spill] sm:$0xff] }
  0xba   : > { %v3128_v14 = vpack.c.bf16 %v2872_v26, %v2872_v26  ;;  %v3144_v18 = vpack.c.bf16 %v2888_v34, %v2888_v34  ;;  %v3160_v36 = vpack.c.bf16 %v2904_v30, %v2904_v30  ;;  %v3176_v8 = vpack.c.bf16 %v2920_v63, %v2920_v63  ;;  %v8416_v63 = vld [vmem:[#allocation28_spill] sm:$0xff] }
  0xbb   : > { %v3192_v55 = vpack.c.bf16 %v2936_v56, %v2936_v56  ;;  %v3208_v9 = vpack.c.bf16 %v2952_v20, %v2952_v20  ;;  %v3544_v54 = vunpack.c.l.b16 %v2968_v15  ;;  %v3560_v10 = vunpack.c.l.b16 %v2984_v52  ;;  %v8417_v20 = vld [vmem:[#allocation29_spill] sm:$0xff] }
  0xbc   : > { %v3576_v5 = vunpack.c.l.b16 %v3000_v57  ;;  %v3592_v35 = vunpack.c.l.b16 %v3016_v49  ;;  %v3608_v27 = vunpack.c.l.b16 %v3032_v46  ;;  %v3624_v37 = vunpack.c.l.b16 %v3048_v4  ;;  %v8418_v49 = vld [vmem:[#allocation30_spill] sm:$0xff]  ;;  %v8419_v4 = vld [vmem:[#allocation31_spill] sm:$0xff] }
  0xbd   : > { %v3640_v45 = vunpack.c.l.b16 %v3064_v16  ;;  %v3656_v1 = vunpack.c.l.b16 %v3080_v7  ;;  %v3672_v39 = vunpack.c.l.b16 %v3096_v38  ;;  %v3688_v6 = vunpack.c.l.b16 %v3112_v17  ;;  %v8420_v17 = vld [vmem:[#allocation32_spill] sm:$0xff] }
  0xbe   : > { %v3704_v2 = vunpack.c.l.b16 %v3128_v14  ;;  %v3720_v62 = vunpack.c.l.b16 %v3144_v18  ;;  %v3736_v21 = vunpack.c.l.b16 %v3160_v36  ;;  %v3752_v0 = vunpack.c.l.b16 %v3176_v8  ;;  %v8421_v18 = vld [vmem:[#allocation33_spill] sm:$0xff] }
  0xbf   : > { %v3768_v50 = vunpack.c.l.b16 %v3192_v55  ;;  %v3784_v19 = vunpack.c.l.b16 %v3208_v9  ;;  %v3813_v22 = vsel %vm3799_vm0, %v3560_v10, %v3544_v54  ;;  %v3925_v13 = vsel %vm3799_vm0, %v3688_v6, %v3672_v39  ;;  %v8422_v55 = vld [vmem:[#allocation34_spill] sm:$0xff]  ;;  %v8423_v54 = vld [vmem:[#allocation35_spill] sm:$0xff] }
  0xc0   : > { %v3814_v23 = vsel %vm3801_vm1, %v3576_v5, %v3813_v22  ;;  %v410_v24 = vunpack.c.h.bf16 %v8410_v33  ;;  %v426_v41 = vunpack.c.h.bf16 %v8411_v25  ;;  %v3926_v60 = vsel %vm3801_vm1, %v3704_v2, %v3925_v13  ;;  %v8424_v5 = vld [vmem:[#allocation36_spill] sm:$0xff] }
  0xc1   : > { %v3815_v40 = vsel %vm3803_vm2, %v3592_v35, %v3814_v23  ;;  %v442_v28 = vunpack.c.h.bf16 %v8412_v51  ;;  %v458_v11 = vunpack.c.h.bf16 %v8413_v58  ;;  %v3927_v32 = vsel %vm3803_vm2, %v3720_v62, %v3926_v60  ;;  %v8427_v23 = vld [vmem:[#allocation39_spill] sm:$0xff]  ;;  %v8428_v33 = vld [vmem:[#allocation40_spill] sm:$0xff]  ;;  %v8430_v51 = vld [vmem:[#allocation42_spill] sm:$0xff] }
  0xc2   : > { %v3816_v12 = vsel %vm3805_vm3, %v3608_v27, %v3815_v40  ;;  %v474_v44 = vunpack.c.h.bf16 %v8414_v29  ;;  %v490_v26 = vunpack.c.h.bf16 %v8415_v31  ;;  %v3928_v30 = vsel %vm3805_vm3, %v3736_v21, %v3927_v32  ;;  %v8429_v40 = vld [vmem:[#allocation41_spill] sm:$0xff]  ;;  %v8432_v29 = vld [vmem:[#allocation44_spill] sm:$0xff] }
  0xc3   : > { %v3817_v34 = vsel %vm3807_vm4, %v3624_v37, %v3816_v12  ;;  %v506_v56 = vunpack.c.h.bf16 %v8416_v63  ;;  %v522_v15 = vunpack.c.h.bf16 %v8417_v20  ;;  %v3929_v57 = vsel %vm3807_vm4, %v3752_v0, %v3928_v30  ;;  %v8425_v37 = vld [vmem:[#allocation37_spill] sm:$0xff]  ;;  %v8431_v12 = vld [vmem:[#allocation43_spill] sm:$0xff] }
  0xc4   : > { %v3818_v52 = vsel %vm3809_vm5, %v3640_v45, %v3817_v34  ;;  %v538_v46 = vunpack.c.h.bf16 %v8418_v49  ;;  %v554_v16 = vunpack.c.h.bf16 %v8419_v4  ;;  %v3930_v38 = vsel %vm3809_vm5, %v3768_v50, %v3929_v57  ;;  %v8433_v34 = vld [vmem:[#allocation45_spill] sm:$0xff] }
  0xc5   : > { %v3819_v7 = vsel %vm3811_vm6, %v3656_v1, %v3818_v52  ;;  %v570_v14 = vunpack.c.h.bf16 %v8420_v17  ;;  %v586_v36 = vunpack.c.h.bf16 %v8421_v18  ;;  %v3931_v8 = vsel %vm3811_vm6, %v3784_v19, %v3930_v38  ;;  %v8426_v19 = vld [vmem:[#allocation38_spill] sm:$0xff] }
  0xc6   : > { %v602_v9 = vunpack.c.h.bf16 %v8422_v55  ;;  %v618_v10 = vunpack.c.h.bf16 %v8423_v54  ;;  %v634_v35 = vunpack.c.h.bf16 %v8424_v5  ;;  %v4031_v27 = vpack.c.b16 %v3931_v8, %v3819_v7 }
  0xc7   : > { %v650_v45 = vunpack.c.h.bf16 %v8425_v37  ;;  %v666_v39 = vunpack.c.h.bf16 %v5510_v48  ;;  %v682_v1 = vunpack.c.h.bf16 %v5517_v53  ;;  %v698_v6 = vunpack.c.h.bf16 %v5520_v59 }
  0xc8   : > { %v714_v2 = vunpack.c.h.bf16 %v5523_v61  ;;  %v730_v62 = vunpack.c.h.bf16 %v5530_v47  ;;  %v746_v21 = vunpack.c.h.bf16 %v5533_v43  ;;  %4404 = vmatmul.bf16.vlgmr.msra.gmra.mxu1 %v4031_v27  ;;  %v762_v0 = vunpack.c.h.bf16 %v5536_v42 }
  0xc9   : > { %v778_v50 = vunpack.c.h.bf16 %v5542_v3  ;;  %v794_v22 = vunpack.c.h.bf16 %v8426_v19  ;;  %v810_v13 = vunpack.c.h.bf16 %v8427_v23  ;;  %v826_v25 = vunpack.c.h.bf16 %v8428_v33 }
  0xca   : > { %v842_v60 = vunpack.c.h.bf16 %v8429_v40  ;;  %v940_v63 = vadd.f32 %v426_v41, %v410_v24  ;;  %v1052_v20 = vadd.f32 %v458_v11, %v442_v28  ;;  %v1164_v52 = vadd.f32 %v490_v26, %v474_v44 }
  0xcb   : > { %v1276_v57 = vadd.f32 %v522_v15, %v506_v56  ;;  %v1388_v49 = vadd.f32 %v554_v16, %v538_v46  ;;  %v1500_v4 = vadd.f32 %v586_v36, %v570_v14  ;;  %v1612_v17 = vadd.f32 %v618_v10, %v602_v9 }
  0xcc   : > { %v941_v7 = vrot.slane %v940_v63, 4  ;;  %v1053_v38 = vrot.slane %v1052_v20, 4  ;;  %v1724_v18 = vadd.f32 %v650_v45, %v634_v35  ;;  %v1165_v8 = vrot.slane %v1164_v52, 4 }
  0xcd   : > { %v1277_v55 = vrot.slane %v1276_v57, 4  ;;  %v1389_v54 = vrot.slane %v1388_v49, 4  ;;  %v1501_v5 = vrot.slane %v1500_v4, 4  ;;  %v1613_v32 = vrot.slane %v1612_v17, 4 }
  0xce   : > { %v942_v27 = vadd.f32 %v941_v7, %v940_v63  ;;  %v1054_v37 = vadd.f32 %v1053_v38, %v1052_v20  ;;  %v1725_v31 = vrot.slane %v1724_v18, 4  ;;  %v1166_v58 = vadd.f32 %v1165_v8, %v1164_v52 }
  0xcf   : > { %v1278_v30 = vadd.f32 %v1277_v55, %v1276_v57  ;;  %v1390_v24 = vadd.f32 %v1389_v54, %v1388_v49  ;;  %v1502_v41 = vadd.f32 %v1501_v5, %v1500_v4  ;;  %v1614_v44 = vadd.f32 %v1613_v32, %v1612_v17 }
  0xd0   : > { %v943_v28 = vrot.slane %v942_v27, 2  ;;  %v1055_v11 = vrot.slane %v1054_v37, 2  ;;  %v1726_v26 = vadd.f32 %v1725_v31, %v1724_v18  ;;  %v1167_v56 = vrot.slane %v1166_v58, 2 }
  0xd1   : > { %v1279_v15 = vrot.slane %v1278_v30, 2  ;;  %v1391_v46 = vrot.slane %v1390_v24, 2  ;;  %v1503_v16 = vrot.slane %v1502_v41, 2  ;;  %v1615_v9 = vrot.slane %v1614_v44, 2 }
  0xd2   : > { %v944_v14 = vadd.f32 %v943_v28, %v942_v27  ;;  %v1056_v36 = vadd.f32 %v1055_v11, %v1054_v37  ;;  %v1727_v10 = vrot.slane %v1726_v26, 2  ;;  %v1168_v35 = vadd.f32 %v1167_v56, %v1166_v58 }
  0xd3   : > { %v1280_v45 = vadd.f32 %v1279_v15, %v1278_v30  ;;  %v1392_v63 = vadd.f32 %v1391_v46, %v1390_v24  ;;  %v1504_v20 = vadd.f32 %v1503_v16, %v1502_v41  ;;  %v1616_v49 = vadd.f32 %v1615_v9, %v1614_v44 }
  0xd4   : > { %v945_v52 = vrot.slane %v944_v14, 1  ;;  %v1057_v57 = vrot.slane %v1056_v36, 1  ;;  %v1728_v4 = vadd.f32 %v1727_v10, %v1726_v26  ;;  %v1169_v7 = vrot.slane %v1168_v35, 1 }
  0xd5   : > { %v1281_v38 = vrot.slane %v1280_v45, 1  ;;  %v1393_v32 = vrot.slane %v1392_v63, 1  ;;  %v1505_v31 = vrot.slane %v1504_v20, 1  ;;  %v1617_v8 = vrot.slane %v1616_v49, 1 }
  0xd6   : > { %v5822_v17 = vadd.f32 %v945_v52, %v944_v14  ;;  %v5824_v18 = vadd.f32 %v1057_v57, %v1056_v36  ;;  %v1729_v55 = vrot.slane %v1728_v4, 1  ;;  %v5826_v54 = vadd.f32 %v1169_v7, %v1168_v35 }
  0xd7   : > { %v5828_v58 = vadd.f32 %v1281_v38, %v1280_v45  ;;  %v5830_v30 = vadd.f32 %v1393_v32, %v1392_v63  ;;  %v5832_v5 = vadd.f32 %v1505_v31, %v1504_v20  ;;  %v5834_v27 = vadd.f32 %v1617_v8, %v1616_v49 }
  0xd8   : > { %v5836_v37 = vadd.f32 %v1729_v55, %v1728_v4  ;;  %v1836_v24 = vadd.f32 %v682_v1, %v666_v39  ;;  %v1948_v41 = vadd.f32 %v714_v2, %v698_v6  ;;  %v2060_v28 = vadd.f32 %v746_v21, %v730_v62 }
  0xd9   : > { %v2172_v11 = vadd.f32 %v778_v50, %v762_v0  ;;  %v2284_v48 = vadd.f32 %v810_v13, %v794_v22  ;;  %v2396_v53 = vadd.f32 %v842_v60, %v826_v25  ;;  %v8434_v47 = vunpack.c.h.bf16 %v8430_v51 }
  0xda   : > { %v1837_v59 = vrot.slane %v1836_v24, 4  ;;  %v1949_v61 = vrot.slane %v1948_v41, 4  ;;  %v8435_v43 = vunpack.c.h.bf16 %v8431_v12  ;;  %v8436_v3 = vunpack.c.h.bf16 %v8432_v29 }
  0xdb   : > { %v8437_v39 = vunpack.c.h.bf16 %v8433_v34  ;;  %v2061_v6 = vrot.slane %v2060_v28, 4  ;;  %v2173_v2 = vrot.slane %v2172_v11, 4  ;;  %v2285_v62 = vrot.slane %v2284_v48, 4 }
  0xdc   : > { %v2508_v42 = vadd.f32 %v8435_v43, %v8434_v47  ;;  %v2397_v21 = vrot.slane %v2396_v53, 4  ;;  %v1838_v0 = vadd.f32 %v1837_v59, %v1836_v24  ;;  %v1950_v50 = vadd.f32 %v1949_v61, %v1948_v41 }
  0xdd   : > { %v2620_v1 = vadd.f32 %v8437_v39, %v8436_v3  ;;  %v2062_v23 = vadd.f32 %v2061_v6, %v2060_v28  ;;  %v2174_v13 = vadd.f32 %v2173_v2, %v2172_v11  ;;  %v2286_v33 = vadd.f32 %v2285_v62, %v2284_v48 }
  0xde   : > { %v2509_v19 = vrot.slane %v2508_v42, 4  ;;  %v2398_v25 = vadd.f32 %v2397_v21, %v2396_v53  ;;  %v1839_v40 = vrot.slane %v1838_v0, 2  ;;  %v1951_v60 = vrot.slane %v1950_v50, 2 }
  0xdf   : > { %v2621_v22 = vrot.slane %v2620_v1, 4  ;;  %v2063_v29 = vrot.slane %v2062_v23, 2  ;;  %v2175_v44 = vrot.slane %v2174_v13, 2  ;;  %v2287_v34 = vrot.slane %v2286_v33, 2 }
  0xe0   : > { %v2510_v51 = vadd.f32 %v2509_v19, %v2508_v42  ;;  %v2399_v26 = vrot.slane %v2398_v25, 2  ;;  %v1840_v56 = vadd.f32 %v1839_v40, %v1838_v0  ;;  %v1952_v15 = vadd.f32 %v1951_v60, %v1950_v50 }
  0xe1   : > { %v2622_v12 = vadd.f32 %v2621_v22, %v2620_v1  ;;  %v2064_v14 = vadd.f32 %v2063_v29, %v2062_v23  ;;  %v2176_v36 = vadd.f32 %v2175_v44, %v2174_v13  ;;  %v2288_v9 = vadd.f32 %v2287_v34, %v2286_v33 }
  0xe2   : > { %v2511_v46 = vrot.slane %v2510_v51, 2  ;;  %v2400_v10 = vadd.f32 %v2399_v26, %v2398_v25  ;;  %v1841_v35 = vrot.slane %v1840_v56, 1  ;;  %v1953_v45 = vrot.slane %v1952_v15, 1 }
  0xe3   : > { %v2623_v16 = vrot.slane %v2622_v12, 2  ;;  %v2065_v52 = vrot.slane %v2064_v14, 1  ;;  %v2177_v57 = vrot.slane %v2176_v36, 1  ;;  %v2289_v49 = vrot.slane %v2288_v9, 1 }
  0xe4   : > { %v2512_v63 = vadd.f32 %v2511_v46, %v2510_v51  ;;  %v2401_v4 = vrot.slane %v2400_v10, 1  ;;  %v1842_v7 = vadd.f32 %v1841_v35, %v1840_v56  ;;  %v1954_v38 = vadd.f32 %v1953_v45, %v1952_v15  ;;  %v4693_v56 = vld [vmem:[%s8062_s1 + $0x10] sm:$0xf]  ;;  %v4701_v35 = vld [vmem:[%s8062_s1 + $0x18] sm:$0xf] }
  0xe5   : > { %v2624_v20 = vadd.f32 %v2623_v16, %v2622_v12  ;;  %v2066_v8 = vadd.f32 %v2065_v52, %v2064_v14  ;;  %v2178_v55 = vadd.f32 %v2177_v57, %v2176_v36  ;;  %v2290_v24 = vadd.f32 %v2289_v49, %v2288_v9  ;;  %v4944_v15 = vld [vmem:[%s8062_s1 + $0x4c] sm:$0xf0]  ;;  %v4936_v9 = vld [vmem:[%s8062_s1 + $0x14] sm:$0xf]  ;;  %v4945_v49 = vld [vmem:[%s8062_s1 + $0x54] sm:$0xf0] }
  0xe6   : > { %v2513_v32 = vrot.slane %v2512_v63, 1  ;;  %v2402_v41 = vadd.f32 %v2401_v4, %v2400_v10  ;;  %v2714_v48 = vmul.f32 0.0625, %v5822_v17  ;;  %v2730_v53 = vmul.f32 0.0625, %v5824_v18  ;;  %v4695_v10 = vld [vmem:[%s8062_s1 + $0x50] sm:$0xf0] }
  0xe7   : > { %v2625_v31 = vrot.slane %v2624_v20, 1  ;;  %v2746_v59 = vmul.f32 0.0625, %v5826_v54  ;;  %v2762_v61 = vmul.f32 0.0625, %v5828_v58  ;;  %v2778_v47 = vmul.f32 0.0625, %v5830_v30  ;;  %v5896_v45 = vld [vmem:[%s5250_s5 + $0x10] sm:$0xff] }
  0xe8   : > { %v2514_v28 = vadd.f32 %v2513_v32, %v2512_v63  ;;  %v2794_v43 = vmul.f32 0.0625, %v5832_v5  ;;  %v2810_v42 = vmul.f32 0.0625, %v5834_v27  ;;  %v2826_v3 = vmul.f32 0.0625, %v5836_v37  ;;  %v4937_v4 = vld [vmem:[%s8062_s1 + $0x1c] sm:$0xf] }
  0xe9   : > { %v2626_v11 = vadd.f32 %v2625_v31, %v2624_v20  ;;  %v2842_v39 = vmul.f32 0.0625, %v1842_v7  ;;  %v2858_v1 = vmul.f32 0.0625, %v1954_v38  ;;  %v2874_v6 = vmul.f32 0.0625, %v2066_v8  ;;  %v4703_v7 = vld [vmem:[%s8062_s1 + $0x58] sm:$0xf0] }
  0xea   : > { %v2890_v2 = vmul.f32 0.0625, %v2178_v55  ;;  %v2906_v62 = vmul.f32 0.0625, %v2290_v24  ;;  %v2922_v17 = vmul.f32 0.0625, %v2402_v41  ;;  %v2938_v21 = vmul.f32 0.0625, %v2514_v28  ;;  %v4901_v55 = vld [vmem:[%s8062_s1 + $0x1a0] sm:$0xf] }
  0xeb   : > { %v2954_v18 = vmul.f32 0.0625, %v2626_v11  ;;  %v2970_v0 = vpack.c.bf16 %v2714_v48, %v2714_v48  ;;  %v2986_v54 = vpack.c.bf16 %v2730_v53, %v2730_v53  ;;  %v3002_v50 = vpack.c.bf16 %v2746_v59, %v2746_v59  ;;  %v4994_v24 = vld [vmem:[%s8062_s1 + $0x1dc] sm:$0xf0]  ;;  %v5916_v41 = vld [vmem:[%s5250_s5 + $0x50] sm:$0xff]  ;;  %v4986_v59 = vld [vmem:[%s8062_s1 + $0x1a4] sm:$0xf] }
  0xec   : > { %v3018_v58 = vpack.c.bf16 %v2762_v61, %v2762_v61  ;;  %v3034_v19 = vpack.c.bf16 %v2778_v47, %v2778_v47  ;;  %v3050_v30 = vpack.c.bf16 %v2794_v43, %v2794_v43  ;;  %v3066_v22 = vpack.c.bf16 %v2810_v42, %v2810_v42  ;;  %v4903_v61 = vld [vmem:[%s8062_s1 + $0x1e0] sm:$0xf0]  ;;  %v4909_v47 = vld [vmem:[%s8062_s1 + $0x1a8] sm:$0xf]  ;;  %v5930_v43 = vld [vmem:[%s5250_s5 + $0x90] sm:$0xff] }
  0xed   : > { %v3082_v5 = vpack.c.bf16 %v2826_v3, %v2826_v3  ;;  %v3098_v23 = vpack.c.bf16 %v2842_v39, %v2842_v39  ;;  %v3114_v27 = vpack.c.bf16 %v2858_v1, %v2858_v1  ;;  %v3130_v13 = vpack.c.bf16 %v2874_v6, %v2874_v6  ;;  %v5933_v42 = vld [vmem:[%s5250_s5 + $0xd0] sm:$0xff] }
  0xee   : > { %v3146_v37 = vpack.c.bf16 %v2890_v2, %v2890_v2  ;;  %v3162_v33 = vpack.c.bf16 %v2906_v62, %v2906_v62  ;;  %v3178_v25 = vpack.c.bf16 %v2922_v17, %v2922_v17  ;;  %v3194_v40 = vpack.c.bf16 %v2938_v21, %v2938_v21  ;;  %v4995_v2 = vld [vmem:[%s8062_s1 + $0x1e4] sm:$0xf0]  ;;  %v4987_v62 = vld [vmem:[%s8062_s1 + $0x1ac] sm:$0xf]  ;;  %v5947_v21 = vld [vmem:[%s5250_s5 + $0x110] sm:$0xff] }
  0xef   : > { %v3210_v60 = vpack.c.bf16 %v2954_v18, %v2954_v18  ;;  %v3546_v51 = vunpack.c.l.b16 %v2970_v0  ;;  %v3562_v12 = vunpack.c.l.b16 %v2986_v54  ;;  %v3578_v29 = vunpack.c.l.b16 %v3002_v50  ;;  %v4911_v17 = vld [vmem:[%s8062_s1 + $0x1e8] sm:$0xf0]  ;;  %v5952_v50 = vld [vmem:[%s5250_s5 + $0x150] sm:$0xff] }
  0xf0   : > { %v3594_v44 = vunpack.c.l.b16 %v3018_v58  ;;  %v3610_v34 = vunpack.c.l.b16 %v3034_v19  ;;  %v3626_v26 = vunpack.c.l.b16 %v3050_v30  ;;  %v3642_v46 = vunpack.c.l.b16 %v3066_v22  ;;  %v5955_v58 = vld [vmem:[%s5250_s5 + $0x190] sm:$0xff] }
  0xf1   : > { %v5884_v16 = vunpack.c.l.b16 %v3082_v5  ;;  %v3674_v14 = vunpack.c.l.b16 %v3098_v23  ;;  %v3690_v36 = vunpack.c.l.b16 %v3114_v27  ;;  %v3706_v63 = vunpack.c.l.b16 %v3130_v13  ;;  %v5958_v19 = vld [vmem:[%s5250_s5 + $0x1d0] sm:$0xff] }
  0xf2   : > { %v3722_v20 = vunpack.c.l.b16 %v3146_v37  ;;  %v3738_v52 = vunpack.c.l.b16 %v3162_v33  ;;  %v3754_v57 = vunpack.c.l.b16 %v3178_v25  ;;  %v3770_v38 = vunpack.c.l.b16 %v3194_v40  ;;  %v5964_v27 = vld [vmem:[%s5250_s5 + $0x210] sm:$0xff] }
  0xf3   : > { %v3786_v32 = vunpack.c.l.b16 %v3210_v60  ;;  %v3827_v31 = vsel %vm3799_vm0, %v3562_v12, %v3546_v51  ;;  %v3939_v8 = vsel %vm3799_vm0, %v3690_v36, %v3674_v14  ;;  %v4694_v48 = vor.u32 %v4944_v15, %v4693_v56  ;;  %v5967_v13 = vld [vmem:[%s5250_s5 + $0x250] sm:$0xff] }
  0xf4   : > { %v3828_v28 = vsel %vm3801_vm1, %v3578_v29, %v3827_v31  ;;  %v3940_v11 = vsel %vm3801_vm1, %v3706_v63, %v3939_v8  ;;  %v4698_v53 = vor.u32 %v4936_v9, %v4695_v10  ;;  %v4702_v1 = vor.u32 %v4945_v49, %v4701_v35  ;;  %v5970_v37 = vld [vmem:[%s5250_s5 + $0x290] sm:$0xff] }
  0xf5   : > { %v3829_v3 = vsel %vm3803_vm2, %v3594_v44, %v3828_v28  ;;  %v3941_v39 = vsel %vm3803_vm2, %v3722_v20, %v3940_v11  ;;  %v4706_v6 = vor.u32 %v4937_v4, %v4703_v7  ;;  %4445 = vmatpush.bf16.xpose.msrb.mxu0 %v4694_v48  ;;  %v4902_v54 = vor.u32 %v4994_v24, %v4901_v55  ;;  %v5976_v12 = vld [vmem:[%s5250_s5 + $0x2d0] sm:$0xff] }
  0xf6   : > { %v3830_v18 = vsel %vm3805_vm3, %v3610_v34, %v3829_v3  ;;  %v3942_v0 = vsel %vm3805_vm3, %v3738_v52, %v3941_v39  ;;  %4459 = vmatpush.bf16.xpose.msrb.mxu1 %v4698_v53  ;;  %v411_v30 = vunpack.c.l.bf16 %v5896_v45  ;;  %4473 = vmatpush.bf16.xpose.msrb.mxu2 %v4702_v1  ;;  %v4906_v23 = vor.u32 %v4986_v59, %v4903_v61  ;;  %v5979_v29 = vld [vmem:[%s5250_s5 + $0x310] sm:$0xff] }
  0xf7   : > { %v3831_v22 = vsel %vm3807_vm4, %v3626_v26, %v3830_v18  ;;  %v3943_v5 = vsel %vm3807_vm4, %v3754_v57, %v3942_v0  ;;  %4487 = vmatpush.bf16.xpose.msrb.mxu3 %v4706_v6  ;;  %v427_v33 = vunpack.c.l.bf16 %v5916_v41  ;;  %v4910_v60 = vor.u32 %v4995_v2, %v4909_v47  ;;  %v5982_v44 = vld [vmem:[%s5250_s5 + $0x350] sm:$0xff] }
  0xf8   : > { %v3832_v25 = vsel %vm3809_vm5, %v3642_v46, %v3831_v22  ;;  %v3944_v40 = vsel %vm3809_vm5, %v3770_v38, %v3943_v5  ;;  %v4914_v51 = vor.u32 %v4987_v62, %v4911_v17  ;;  %8438 = vst [vmem:[#allocation2_spill] sm:$0xff] %v5982_v44  ;;  %v5985_v34 = vld [vmem:[%s5250_s5 + $0x410] sm:$0xff]  ;;  %v443_v9 = vunpack.c.l.bf16 %v5930_v43 }
  0xf9   : > { %8439 = vst [vmem:[#allocation3_spill] sm:$0xff] %v5985_v34  ;;  %v5988_v26 = vld [vmem:[%s5250_s5 + $0x450] sm:$0xff]  ;;  %v3833_v56 = vsel %vm3811_vm6, %v5884_v16, %v3832_v25  ;;  %v3945_v15 = vsel %vm3811_vm6, %v3786_v32, %v3944_v40  ;;  %v459_v10 = vunpack.c.l.bf16 %v5933_v42  ;;  %v475_v52 = vunpack.c.l.bf16 %v5947_v21 }
  0xfa   : > { %8440 = vst [vmem:[#allocation4_spill] sm:$0xff] %v5988_v26  ;;  %v5994_v46 = vld [vmem:[%s5250_s5 + $0x390] sm:$0xff]  ;;  %v4033_v35 = vpack.c.b16 %v3945_v15, %v3833_v56  ;;  %v491_v57 = vunpack.c.l.bf16 %v5952_v50  ;;  %v507_v49 = vunpack.c.l.bf16 %v5955_v58  ;;  %v523_v32 = vunpack.c.l.bf16 %v5958_v19 }
  0xfb   : > { %8441 = vst [vmem:[#allocation5_spill] sm:$0xff] %v5994_v46  ;;  %v5997_v14 = vld [vmem:[%s5250_s5 + $0x3d0] sm:$0xff]  ;;  %v539_v31 = vunpack.c.l.bf16 %v5964_v27  ;;  %v555_v8 = vunpack.c.l.bf16 %v5967_v13  ;;  %v571_v55 = vunpack.c.l.bf16 %v5970_v37  ;;  %v587_v48 = vunpack.c.l.bf16 %v5976_v12 }
  0xfc   : > { %8442 = vst [vmem:[#allocation6_spill] sm:$0xff] %v5997_v14  ;;  %v6000_v36 = vld [vmem:[%s5250_s5 + $0x490] sm:$0xff]  ;;  %4432 = vmatmul.bf16.vlgmr.msra.gmra.mxu3 %v4033_v35  ;;  %v603_v53 = vunpack.c.l.bf16 %v5979_v29  ;;  %v619_v59 = vunpack.c.l.bf16 %v5982_v44  ;;  %v635_v61 = vunpack.c.l.bf16 %v5994_v46  ;;  %v651_v1 = vunpack.c.l.bf16 %v5997_v14 }
  0xfd   : > { %4498 = vmatpush.bf16.xpose.msra.mxu0 %v4902_v54  ;;  %8443 = vst [vmem:[#allocation7_spill] sm:$0xff] %v6000_v36  ;;  %v6005_v16 = vld [vmem:[%s5250_s5 + $0x4d0] sm:$0xff]  ;;  %v947_v5 = vadd.f32 %v427_v33, %v411_v30  ;;  %v1171_v22 = vadd.f32 %v491_v57, %v475_v52  ;;  %v1283_v25 = vadd.f32 %v523_v32, %v507_v49 }
  0xfe   : > { %4512 = vmatpush.bf16.xpose.msra.mxu1 %v4906_v23  ;;  %4526 = vmatpush.bf16.xpose.msra.mxu2 %v4910_v60  ;;  %8444 = vst [vmem:[#allocation8_spill] sm:$0xff] %v6005_v16  ;;  %v6008_v63 = vld [vmem:[%s5250_s5 + $0x510] sm:$0xff]  ;;  %v1059_v23 = vadd.f32 %v459_v10, %v443_v9  ;;  %v1395_v54 = vadd.f32 %v555_v8, %v539_v31 }
  0xff   : > { %8445 = vst [vmem:[#allocation9_spill] sm:$0xff] %v6008_v63  ;;  %v6011_v20 = vld [vmem:[%s5250_s5 + $0x550] sm:$0xff]  ;;  %4540 = vmatpush.bf16.xpose.msra.mxu3 %v4914_v51  ;;  %v1507_v40 = vadd.f32 %v587_v48, %v571_v55  ;;  %v1619_v0 = vadd.f32 %v619_v59, %v603_v53  ;;  %v948_v60 = vrot.slane %v947_v5, 4  ;;  %v1172_v51 = vrot.slane %v1171_v22, 4 }
 0x100   : > { %8446 = vst [vmem:[#allocation10_spill] sm:$0xff] %v6011_v20  ;;  %v6017_v4 = vld [vmem:[%s5250_s5 + $0x590] sm:$0xff]  ;;  %v1060_v18 = vrot.slane %v1059_v23, 4  ;;  %v1731_v62 = vadd.f32 %v651_v1, %v635_v61  ;;  %v1284_v56 = vrot.slane %v1283_v25, 4  ;;  %v1396_v2 = vrot.slane %v1395_v54, 4 }
 0x101   : > { %8447 = vst [vmem:[#allocation11_spill] sm:$0xff] %v6017_v4  ;;  %v6020_v7 = vld [vmem:[%s5250_s5 + $0x5d0] sm:$0xff]  ;;  %v1508_v15 = vrot.slane %v1507_v40, 4  ;;  %v1620_v6 = vrot.slane %v1619_v0, 4  ;;  %v949_v35 = vadd.f32 %v948_v60, %v947_v5  ;;  %v1173_v45 = vadd.f32 %v1172_v51, %v1171_v22 }
 0x102   : > { %8448 = vst [vmem:[#allocation12_spill] sm:$0xff] %v6020_v7  ;;  %v6023_v38 = vld [vmem:[%s5250_s5 + $0x610] sm:$0xff]  ;;  %v1061_v14 = vadd.f32 %v1060_v18, %v1059_v23  ;;  %v1732_v46 = vrot.slane %v1731_v62, 4  ;;  %v1285_v44 = vadd.f32 %v1284_v56, %v1283_v25  ;;  %v1397_v30 = vadd.f32 %v1396_v2, %v1395_v54 }
 0x103   : > { %8449 = vst [vmem:[#allocation13_spill] sm:$0xff] %v6023_v38  ;;  %v6030_v24 = vld [vmem:[%s5250_s5 + $0x650] sm:$0xff]  ;;  %v1509_v33 = vadd.f32 %v1508_v15, %v1507_v40  ;;  %v1621_v9 = vadd.f32 %v1620_v6, %v1619_v0  ;;  %v950_v10 = vrot.slane %v949_v35, 2  ;;  %v1174_v57 = vrot.slane %v1173_v45, 2 }
 0x104   : > { %8450 = vst [vmem:[#allocation14_spill] sm:$0xff] %v6030_v24  ;;  %v6033_v28 = vld [vmem:[%s5250_s5 + $0x690] sm:$0xff]  ;;  %v1062_v52 = vrot.slane %v1061_v14, 2  ;;  %v1733_v49 = vadd.f32 %v1732_v46, %v1731_v62  ;;  %v1286_v32 = vrot.slane %v1285_v44, 2  ;;  %v1398_v31 = vrot.slane %v1397_v30, 2 }
 0x105   : > { %8451 = vst [vmem:[#allocation15_spill] sm:$0xff] %v6033_v28  ;;  %v6036_v11 = vld [vmem:[%s5250_s5 + $0x6d0] sm:$0xff]  ;;  %v1510_v8 = vrot.slane %v1509_v33, 2  ;;  %v1622_v55 = vrot.slane %v1621_v9, 2  ;;  %v951_v48 = vadd.f32 %v950_v10, %v949_v35  ;;  %v1175_v59 = vadd.f32 %v1174_v57, %v1173_v45 }
 0x106   : > { %8452 = vst [vmem:[#allocation16_spill] sm:$0xff] %v6036_v11  ;;  %v6043_v47 = vld [vmem:[%s5250_s5 + $0x710] sm:$0xff]  ;;  %v1063_v53 = vadd.f32 %v1062_v52, %v1061_v14  ;;  %v1734_v61 = vrot.slane %v1733_v49, 2  ;;  %v1287_v1 = vadd.f32 %v1286_v32, %v1285_v44  ;;  %v1399_v18 = vadd.f32 %v1398_v31, %v1397_v30 }
 0x107   : > { %8453 = vst [vmem:[#allocation17_spill] sm:$0xff] %v6043_v47  ;;  %v6046_v3 = vld [vmem:[%s5250_s5 + $0x750] sm:$0xff]  ;;  %v1511_v22 = vadd.f32 %v1510_v8, %v1509_v33  ;;  %v1623_v5 = vadd.f32 %v1622_v55, %v1621_v9  ;;  %v952_v23 = vrot.slane %v951_v48, 1  ;;  %v1176_v54 = vrot.slane %v1175_v59, 1 }
 0x108   : > { %8454 = vst [vmem:[#allocation18_spill] sm:$0xff] %v6046_v3  ;;  %v6049_v39 = vld [vmem:[%s5250_s5 + $0x790] sm:$0xff]  ;;  %v1064_v2 = vrot.slane %v1063_v53, 1  ;;  %v1735_v6 = vadd.f32 %v1734_v61, %v1733_v49  ;;  %v1288_v0 = vrot.slane %v1287_v1, 1  ;;  %v1400_v25 = vrot.slane %v1399_v18, 1 }
 0x109   : > { %8455 = vst [vmem:[#allocation19_spill] sm:$0xff] %v6049_v39  ;;  %v6056_v17 = vld [vmem:[%s5250_s5 + $0x7d0] sm:$0xff]  ;;  %v1512_v40 = vrot.slane %v1511_v22, 1  ;;  %v1624_v46 = vrot.slane %v1623_v5, 1  ;;  %v6075_v62 = vadd.f32 %v952_v23, %v951_v48  ;;  %v6079_v51 = vadd.f32 %v1176_v54, %v1175_v59 }
 0x10a   : > { %8456 = vst [vmem:[#allocation20_spill] sm:$0xff] %v6056_v17  ;;  %v6077_v60 = vadd.f32 %v1064_v2, %v1063_v53  ;;  %v1736_v14 = vrot.slane %v1735_v6, 1  ;;  %v6081_v56 = vadd.f32 %v1288_v0, %v1287_v1  ;;  %v6083_v44 = vadd.f32 %v1400_v25, %v1399_v18 }
 0x10b   : > { %v6085_v15 = vadd.f32 %v1512_v40, %v1511_v22  ;;  %v6087_v35 = vadd.f32 %v1624_v46, %v1623_v5  ;;  %v8457_v30 = vunpack.c.l.bf16 %v5985_v34  ;;  %v8458_v33 = vunpack.c.l.bf16 %v5988_v26 }
 0x10c   : > { %v6089_v45 = vadd.f32 %v1736_v14, %v1735_v6  ;;  %v8459_v10 = vunpack.c.l.bf16 %v6000_v36  ;;  %v8460_v52 = vunpack.c.l.bf16 %v6005_v16  ;;  %v8461_v49 = vunpack.c.l.bf16 %v6008_v63 }
 0x10d   : > { %v1843_v9 = vadd.f32 %v8458_v33, %v8457_v30  ;;  %v8462_v32 = vunpack.c.l.bf16 %v6011_v20  ;;  %v8463_v8 = vunpack.c.l.bf16 %v6017_v4  ;;  %v8464_v55 = vunpack.c.l.bf16 %v6020_v7 }
 0x10e   : > { %v1955_v57 = vadd.f32 %v8460_v52, %v8459_v10  ;;  %v8465_v53 = vunpack.c.l.bf16 %v6023_v38  ;;  %v8466_v59 = vunpack.c.l.bf16 %v6030_v24  ;;  %v8467_v1 = vunpack.c.l.bf16 %v6033_v28 }
 0x10f   : > { %v2067_v31 = vadd.f32 %v8462_v32, %v8461_v49  ;;  %v2179_v48 = vadd.f32 %v8464_v55, %v8463_v8  ;;  %v8468_v18 = vunpack.c.l.bf16 %v6036_v11  ;;  %v8469_v5 = vunpack.c.l.bf16 %v6043_v47 }
 0x110   : > { %v2291_v61 = vadd.f32 %v8466_v59, %v8465_v53  ;;  %v8470_v23 = vunpack.c.l.bf16 %v6046_v3  ;;  %v1844_v54 = vrot.slane %v1843_v9, 4  ;;  %v1956_v6 = vrot.slane %v1955_v57, 4 }
 0x111   : > { %v2403_v22 = vadd.f32 %v8468_v18, %v8467_v1  ;;  %v2068_v0 = vrot.slane %v2067_v31, 4  ;;  %v8471_v25 = vunpack.c.l.bf16 %v6049_v39  ;;  %v8472_v40 = vunpack.c.l.bf16 %v6056_v17 }
 0x112   : > { %v2515_v2 = vadd.f32 %v8470_v23, %v8469_v5  ;;  %v2180_v14 = vrot.slane %v2179_v48, 4  ;;  %v2292_v30 = vrot.slane %v2291_v61, 4  ;;  %v1845_v52 = vadd.f32 %v1844_v54, %v1843_v9 }
 0x113   : > { %v2627_v46 = vadd.f32 %v8472_v40, %v8471_v25  ;;  %v2404_v33 = vrot.slane %v2403_v22, 4  ;;  %v1957_v49 = vadd.f32 %v1956_v6, %v1955_v57  ;;  %v2069_v32 = vadd.f32 %v2068_v0, %v2067_v31 }
 0x114   : > { %v2516_v10 = vrot.slane %v2515_v2, 4  ;;  %v2181_v55 = vadd.f32 %v2180_v14, %v2179_v48  ;;  %v2293_v53 = vadd.f32 %v2292_v30, %v2291_v61  ;;  %v1846_v18 = vrot.slane %v1845_v52, 2 }
 0x115   : > { %v2628_v8 = vrot.slane %v2627_v46, 4  ;;  %v2405_v59 = vadd.f32 %v2404_v33, %v2403_v22  ;;  %v1958_v5 = vrot.slane %v1957_v49, 2  ;;  %v2070_v23 = vrot.slane %v2069_v32, 2 }
 0x116   : > { %v2517_v1 = vadd.f32 %v2516_v10, %v2515_v2  ;;  %v2182_v39 = vrot.slane %v2181_v55, 2  ;;  %v2294_v47 = vrot.slane %v2293_v53, 2  ;;  %v1847_v40 = vadd.f32 %v1846_v18, %v1845_v52 }
 0x117   : > { %v2629_v3 = vadd.f32 %v2628_v8, %v2627_v46  ;;  %v2406_v17 = vrot.slane %v2405_v59, 2  ;;  %v1959_v11 = vadd.f32 %v1958_v5, %v1957_v49  ;;  %v2071_v28 = vadd.f32 %v2070_v23, %v2069_v32 }
 0x118   : > { %v2518_v25 = vrot.slane %v2517_v1, 2  ;;  %v2183_v9 = vadd.f32 %v2182_v39, %v2181_v55  ;;  %v2295_v57 = vadd.f32 %v2294_v47, %v2293_v53  ;;  %v1848_v48 = vrot.slane %v1847_v40, 1 }
 0x119   : > { %v2630_v24 = vrot.slane %v2629_v3, 2  ;;  %v2407_v31 = vadd.f32 %v2406_v17, %v2405_v59  ;;  %v1960_v61 = vrot.slane %v1959_v11, 1  ;;  %v2072_v22 = vrot.slane %v2071_v28, 1 }
 0x11a   : > { %v2519_v54 = vadd.f32 %v2518_v25, %v2517_v1  ;;  %v2184_v6 = vrot.slane %v2183_v9, 1  ;;  %v2296_v0 = vrot.slane %v2295_v57, 1  ;;  %v1849_v30 = vadd.f32 %v1848_v48, %v1847_v40 }
 0x11b   : > { %v2631_v2 = vadd.f32 %v2630_v24, %v2629_v3  ;;  %v2408_v14 = vrot.slane %v2407_v31, 1  ;;  %v1961_v33 = vadd.f32 %v1960_v61, %v1959_v11  ;;  %v2073_v10 = vadd.f32 %v2072_v22, %v2071_v28 }
 0x11c   : > { %v2520_v46 = vrot.slane %v2519_v54, 1  ;;  %v2185_v52 = vadd.f32 %v2184_v6, %v2183_v9  ;;  %v2297_v49 = vadd.f32 %v2296_v0, %v2295_v57  ;;  %v2715_v47 = vmul.f32 0.0625, %v6075_v62 }
 0x11d   : > { %v2632_v8 = vrot.slane %v2631_v2, 1  ;;  %v2409_v32 = vadd.f32 %v2408_v14, %v2407_v31  ;;  %v2731_v17 = vmul.f32 0.0625, %v6077_v60  ;;  %v2747_v55 = vmul.f32 0.0625, %v6079_v51 }
 0x11e   : > { %v2521_v18 = vadd.f32 %v2520_v46, %v2519_v54  ;;  %v2763_v24 = vmul.f32 0.0625, %v6081_v56  ;;  %v2779_v3 = vmul.f32 0.0625, %v6083_v44  ;;  %v2795_v53 = vmul.f32 0.0625, %v6085_v15 }
 0x11f   : > { %v2633_v39 = vadd.f32 %v2632_v8, %v2631_v2  ;;  %v2811_v28 = vmul.f32 0.0625, %v6087_v35  ;;  %v2827_v11 = vmul.f32 0.0625, %v6089_v45  ;;  %v2843_v59 = vmul.f32 0.0625, %v1849_v30 }
 0x120   : > { %v2859_v1 = vmul.f32 0.0625, %v1961_v33  ;;  %v2875_v5 = vmul.f32 0.0625, %v2073_v10  ;;  %v2891_v23 = vmul.f32 0.0625, %v2185_v52  ;;  %v2907_v25 = vmul.f32 0.0625, %v2297_v49  ;;  %v6132_v49 = vld [vmem:[%s5250_s5 + $0x18] sm:$0xff] }
 0x121   : > { %v2923_v62 = vmul.f32 0.0625, %v2409_v32  ;;  %v2939_v40 = vmul.f32 0.0625, %v2521_v18  ;;  %v2955_v60 = vmul.f32 0.0625, %v2633_v39  ;;  %v2971_v9 = vpack.c.bf16 %v2715_v47, %v2715_v47  ;;  %8473 = vst [vmem:[#allocation21_spill] sm:$0xff] %v6132_v49 }
 0x122   : > { %v2987_v51 = vpack.c.bf16 %v2731_v17, %v2731_v17  ;;  %v3003_v57 = vpack.c.bf16 %v2747_v55, %v2747_v55  ;;  %v3019_v56 = vpack.c.bf16 %v2763_v24, %v2763_v24  ;;  %v3035_v31 = vpack.c.bf16 %v2779_v3, %v2779_v3  ;;  %v6135_v17 = vld [vmem:[%s5250_s5 + $0x58] sm:$0xff] }
 0x123   : > { %v3051_v44 = vpack.c.bf16 %v2795_v53, %v2795_v53  ;;  %v3067_v54 = vpack.c.bf16 %v2811_v28, %v2811_v28  ;;  %v3083_v15 = vpack.c.bf16 %v2827_v11, %v2827_v11  ;;  %v3099_v35 = vpack.c.bf16 %v2843_v59, %v2843_v59  ;;  %8474 = vst [vmem:[#allocation22_spill] sm:$0xff] %v6135_v17  ;;  %v6138_v55 = vld [vmem:[%s5250_s5 + $0x98] sm:$0xff] }
 0x124   : > { %v3115_v48 = vpack.c.bf16 %v2859_v1, %v2859_v1  ;;  %v3131_v45 = vpack.c.bf16 %v2875_v5, %v2875_v5  ;;  %v3147_v61 = vpack.c.bf16 %v2891_v23, %v2891_v23  ;;  %v3163_v22 = vpack.c.bf16 %v2907_v25, %v2907_v25  ;;  %8475 = vst [vmem:[#allocation23_spill] sm:$0xff] %v6138_v55  ;;  %v6141_v11 = vld [vmem:[%s5250_s5 + $0xd8] sm:$0xff] }
 0x125   : > { %v3179_v2 = vpack.c.bf16 %v2923_v62, %v2923_v62  ;;  %v3195_v6 = vpack.c.bf16 %v2939_v40, %v2939_v40  ;;  %v3211_v0 = vpack.c.bf16 %v2955_v60, %v2955_v60  ;;  %v3547_v14 = vunpack.c.l.b16 %v2971_v9  ;;  %8476 = vst [vmem:[#allocation24_spill] sm:$0xff] %v6141_v11  ;;  %v6144_v59 = vld [vmem:[%s5250_s5 + $0x118] sm:$0xff] }
 0x126   : > { %v3563_v46 = vunpack.c.l.b16 %v2987_v51  ;;  %v3579_v30 = vunpack.c.l.b16 %v3003_v57  ;;  %v3595_v33 = vunpack.c.l.b16 %v3019_v56  ;;  %v3611_v10 = vunpack.c.l.b16 %v3035_v31  ;;  %8477 = vst [vmem:[#allocation25_spill] sm:$0xff] %v6144_v59  ;;  %v6149_v25 = vld [vmem:[%s5250_s5 + $0x158] sm:$0xff] }
 0x127   : > { %v3627_v8 = vunpack.c.l.b16 %v3051_v44  ;;  %v3643_v52 = vunpack.c.l.b16 %v3067_v54  ;;  %v3659_v32 = vunpack.c.l.b16 %v3083_v15  ;;  %v3675_v18 = vunpack.c.l.b16 %v3099_v35  ;;  %8478 = vst [vmem:[#allocation26_spill] sm:$0xff] %v6149_v25  ;;  %v6152_v62 = vld [vmem:[%s5250_s5 + $0x198] sm:$0xff] }
 0x128   : > { %v3691_v39 = vunpack.c.l.b16 %v3115_v48  ;;  %v3707_v47 = vunpack.c.l.b16 %v3131_v45  ;;  %v3723_v24 = vunpack.c.l.b16 %v3147_v61  ;;  %v3739_v3 = vunpack.c.l.b16 %v3163_v22  ;;  %8479 = vst [vmem:[#allocation27_spill] sm:$0xff] %v6152_v62  ;;  %v6158_v51 = vld [vmem:[%s5250_s5 + $0x1d8] sm:$0xff] }
 0x129   : > { %v3755_v53 = vunpack.c.l.b16 %v3179_v2  ;;  %v3771_v28 = vunpack.c.l.b16 %v3195_v6  ;;  %v3787_v1 = vunpack.c.l.b16 %v3211_v0  ;;  %v3834_v5 = vsel %vm3799_vm0, %v3563_v46, %v3547_v14  ;;  %8480 = vst [vmem:[#allocation28_spill] sm:$0xff] %v6158_v51  ;;  %v6161_v57 = vld [vmem:[%s5250_s5 + $0x218] sm:$0xff] }
 0x12a   : > { %v3946_v23 = vsel %vm3799_vm0, %v3691_v39, %v3675_v18  ;;  %v3835_v60 = vsel %vm3801_vm1, %v3579_v30, %v3834_v5  ;;  %8481 = vst [vmem:[#allocation29_spill] sm:$0xff] %v6161_v57  ;;  %v6168_v15 = vld [vmem:[%s5250_s5 + $0x258] sm:$0xff]  ;;  %v461_v45 = vunpack.c.l.bf16 %v6141_v11  ;;  %v477_v61 = vunpack.c.l.bf16 %v6144_v59 }
 0x12b   : > { %v3947_v9 = vsel %vm3801_vm1, %v3707_v47, %v3946_v23  ;;  %v3836_v44 = vsel %vm3803_vm2, %v3595_v33, %v3835_v60  ;;  %8482 = vst [vmem:[#allocation30_spill] sm:$0xff] %v6168_v15  ;;  %v6171_v35 = vld [vmem:[%s5250_s5 + $0x298] sm:$0xff]  ;;  %v493_v33 = vunpack.c.l.bf16 %v6149_v25  ;;  %v509_v18 = vunpack.c.l.bf16 %v6152_v62 }
 0x12c   : > { %v3948_v54 = vsel %vm3803_vm2, %v3723_v24, %v3947_v9  ;;  %8483 = vst [vmem:[#allocation31_spill] sm:$0xff] %v6171_v35  ;;  %v6174_v48 = vld [vmem:[%s5250_s5 + $0x2d8] sm:$0xff]  ;;  %v3837_v22 = vsel %vm3805_vm3, %v3611_v10, %v3836_v44  ;;  %v525_v5 = vunpack.c.l.bf16 %v6158_v51  ;;  %v541_v23 = vunpack.c.l.bf16 %v6161_v57 }
 0x12d   : > { %8484 = vst [vmem:[#allocation32_spill] sm:$0xff] %v6174_v48  ;;  %v3949_v2 = vsel %vm3805_vm3, %v3739_v3, %v3948_v54  ;;  %v6181_v6 = vld [vmem:[%s5250_s5 + $0x318] sm:$0xff]  ;;  %v3838_v10 = vsel %vm3807_vm4, %v3627_v8, %v3837_v22  ;;  %v557_v54 = vunpack.c.l.bf16 %v6168_v15  ;;  %v573_v22 = vunpack.c.l.bf16 %v6171_v35 }
 0x12e   : > { %8485 = vst [vmem:[#allocation33_spill] sm:$0xff] %v6181_v6  ;;  %v6184_v0 = vld [vmem:[%s5250_s5 + $0x358] sm:$0xff]  ;;  %v3950_v39 = vsel %vm3807_vm4, %v3755_v53, %v3949_v2  ;;  %v3839_v60 = vsel %vm3809_vm5, %v3643_v52, %v3838_v10  ;;  %v589_v31 = vunpack.c.l.bf16 %v6174_v48  ;;  %v605_v56 = vunpack.c.l.bf16 %v6181_v6 }
 0x12f   : > { %8486 = vst [vmem:[#allocation34_spill] sm:$0xff] %v6184_v0  ;;  %v6187_v14 = vld [vmem:[%s5250_s5 + $0x418] sm:$0xff]  ;;  %v3951_v8 = vsel %vm3809_vm5, %v3771_v28, %v3950_v39  ;;  %v3840_v2 = vsel %vm3811_vm6, %v3659_v32, %v3839_v60  ;;  %v621_v32 = vunpack.c.l.bf16 %v6184_v0  ;;  %v8498_v25 = vunpack.c.l.bf16 %v6135_v17 }
 0x130   : > { %v6190_v46 = vld [vmem:[%s5250_s5 + $0x458] sm:$0xff]  ;;  %v3952_v52 = vsel %vm3811_vm6, %v3787_v1, %v3951_v8  ;;  %v8499_v59 = vunpack.c.l.bf16 %v6138_v55  ;;  %v1185_v38 = vadd.f32 %v493_v33, %v477_v61  ;;  %v1409_v7 = vadd.f32 %v557_v54, %v541_v23 }
 0x131   : > { %v6193_v30 = vld [vmem:[%s5250_s5 + $0x498] sm:$0xff]  ;;  %v4034_v40 = vpack.c.b16 %v3952_v52, %v3840_v2  ;;  %v1297_v2 = vadd.f32 %v525_v5, %v509_v18  ;;  %v1521_v52 = vadd.f32 %v589_v31, %v573_v22  ;;  %v1633_v4 = vadd.f32 %v621_v32, %v605_v56 }
 0x132   : > { %v6200_v47 = vld [vmem:[%s5250_s5 + $0x398] sm:$0xff]  ;;  %v1073_v11 = vadd.f32 %v461_v45, %v8499_v59  ;;  %v1186_v63 = vrot.slane %v1185_v38, 4  ;;  %v1410_v16 = vrot.slane %v1409_v7, 4 }
 0x133   : > { %8487 = vst [vmem:[#allocation35_spill] sm:$0xff] %v6200_v47  ;;  %v6203_v24 = vld [vmem:[%s5250_s5 + $0x3d8] sm:$0xff]  ;;  %v637_v1 = vunpack.c.l.bf16 %v6200_v47  ;;  %4446 = vmatmul.bf16.vlgmr.msrb.gmra.mxu0 %v4034_v40  ;;  %v1298_v0 = vrot.slane %v1297_v2, 4  ;;  %v1522_v47 = vrot.slane %v1521_v52, 4  ;;  %v1634_v36 = vrot.slane %v1633_v4, 4 }
 0x134   : > { %8488 = vst [vmem:[#allocation36_spill] sm:$0xff] %v6203_v24  ;;  %v6206_v3 = vld [vmem:[%s5250_s5 + $0x4d8] sm:$0xff]  ;;  %v653_v60 = vunpack.c.l.bf16 %v6203_v24  ;;  %v8497_v24 = vunpack.c.l.bf16 %v6132_v49  ;;  %v1074_v40 = vrot.slane %v1073_v11, 4  ;;  %v1411_v55 = vadd.f32 %v1410_v16, %v1409_v7 }
 0x135   : > { %v6213_v53 = vld [vmem:[%s5250_s5 + $0x518] sm:$0xff]  ;;  %v1523_v59 = vadd.f32 %v1522_v47, %v1521_v52  ;;  %v1635_v45 = vadd.f32 %v1634_v36, %v1633_v4 }
 0x136   : > { %v6216_v9 = vld [vmem:[%s5250_s5 + $0x558] sm:$0xff]  ;;  %v961_v62 = vadd.f32 %v8498_v25, %v8497_v24  ;;  %v1745_v6 = vadd.f32 %v653_v60, %v637_v1  ;;  %v1075_v17 = vadd.f32 %v1074_v40, %v1073_v11  ;;  %v1187_v25 = vadd.f32 %v1186_v63, %v1185_v38 }
 0x137   : > { %v6219_v44 = vld [vmem:[%s5250_s5 + $0x598] sm:$0xff]  ;;  %v1299_v24 = vadd.f32 %v1298_v0, %v1297_v2  ;;  %v1412_v5 = vrot.slane %v1411_v55, 2  ;;  %v1524_v23 = vrot.slane %v1523_v59, 2  ;;  %v1636_v54 = vrot.slane %v1635_v45, 2 }
 0x138   : > { %v6226_v10 = vld [vmem:[%s5250_s5 + $0x5d8] sm:$0xff]  ;;  %v962_v20 = vrot.slane %v961_v62, 4  ;;  %v1746_v49 = vrot.slane %v1745_v6, 4  ;;  %v1076_v31 = vrot.slane %v1075_v17, 2  ;;  %v1188_v56 = vrot.slane %v1187_v25, 2 }
 0x139   : > { %v6229_v28 = vld [vmem:[%s5250_s5 + $0x618] sm:$0xff]  ;;  %v1300_v18 = vrot.slane %v1299_v24, 2  ;;  %v1525_v11 = vadd.f32 %v1524_v23, %v1523_v59  ;;  %v1637_v63 = vadd.f32 %v1636_v54, %v1635_v45  ;;  %v8501_v59 = vunpack.c.l.bf16 %v6190_v46 }
 0x13a   : > { %8489 = vst [vmem:[#allocation37_spill] sm:$0xff] %v6229_v28  ;;  %v6232_v39 = vld [vmem:[%s5250_s5 + $0x658] sm:$0xff]  ;;  %v963_v26 = vadd.f32 %v962_v20, %v961_v62  ;;  %v1747_v61 = vadd.f32 %v1746_v49, %v1745_v6  ;;  %v1077_v1 = vadd.f32 %v1076_v31, %v1075_v17  ;;  %v1189_v60 = vadd.f32 %v1188_v56, %v1187_v25 }
 0x13b   : > { %8490 = vst [vmem:[#allocation38_spill] sm:$0xff] %v6232_v39  ;;  %v6237_v15 = vld [vmem:[%s5250_s5 + $0x698] sm:$0xff]  ;;  %v1301_v34 = vadd.f32 %v1300_v18, %v1299_v24  ;;  %v1413_v20 = vadd.f32 %v1412_v5, %v1411_v55  ;;  %v1526_v62 = vrot.slane %v1525_v11, 1  ;;  %v1638_v6 = vrot.slane %v1637_v63, 1 }
 0x13c   : > { %8491 = vst [vmem:[#allocation39_spill] sm:$0xff] %v6237_v15  ;;  %v6240_v35 = vld [vmem:[%s5250_s5 + $0x6d8] sm:$0xff]  ;;  %v964_v33 = vrot.slane %v963_v26, 2  ;;  %v1748_v22 = vrot.slane %v1747_v61, 2  ;;  %v1078_v7 = vrot.slane %v1077_v1, 1  ;;  %v1190_v36 = vrot.slane %v1189_v60, 1 }
 0x13d   : > { %8492 = vst [vmem:[#allocation40_spill] sm:$0xff] %v6240_v35  ;;  %v6243_v57 = vld [vmem:[%s5250_s5 + $0x718] sm:$0xff]  ;;  %v1302_v4 = vrot.slane %v1301_v34, 1  ;;  %v1414_v49 = vrot.slane %v1413_v20, 1  ;;  %v6289_v52 = vadd.f32 %v1526_v62, %v1525_v11  ;;  %v6291_v40 = vadd.f32 %v1638_v6, %v1637_v63 }
 0x13e   : > { %8493 = vst [vmem:[#allocation41_spill] sm:$0xff] %v6243_v57  ;;  %v6249_v8 = vld [vmem:[%s5250_s5 + $0x758] sm:$0xff]  ;;  %v965_v32 = vadd.f32 %v964_v33, %v963_v26  ;;  %v1749_v38 = vadd.f32 %v1748_v22, %v1747_v61  ;;  %v6281_v2 = vadd.f32 %v1078_v7, %v1077_v1  ;;  %v6283_v26 = vadd.f32 %v1190_v36, %v1189_v60 }
 0x13f   : > { %8494 = vst [vmem:[#allocation42_spill] sm:$0xff] %v6249_v8  ;;  %v6252_v51 = vld [vmem:[%s5250_s5 + $0x798] sm:$0xff]  ;;  %v6285_v17 = vadd.f32 %v1302_v4, %v1301_v34  ;;  %v6287_v55 = vadd.f32 %v1414_v49, %v1413_v20  ;;  %v8500_v24 = vunpack.c.l.bf16 %v6187_v14  ;;  %v8502_v61 = vunpack.c.l.bf16 %v6193_v30 }
 0x140   : > { %8495 = vst [vmem:[#allocation43_spill] sm:$0xff] %v6252_v51  ;;  %v6255_v48 = vld [vmem:[%s5250_s5 + $0x7d8] sm:$0xff]  ;;  %v966_v16 = vrot.slane %v965_v32, 1  ;;  %v1750_v0 = vrot.slane %v1749_v38, 1  ;;  %v8503_v33 = vunpack.c.l.bf16 %v6206_v3  ;;  %v8504_v34 = vunpack.c.l.bf16 %v6213_v53 }
 0x141   : > { %8496 = vst [vmem:[#allocation44_spill] sm:$0xff] %v6255_v48  ;;  %v1857_v45 = vadd.f32 %v8501_v59, %v8500_v24  ;;  %v8505_v56 = vunpack.c.l.bf16 %v6216_v9  ;;  %v8506_v5 = vunpack.c.l.bf16 %v6219_v44  ;;  %v8507_v23 = vunpack.c.l.bf16 %v6226_v10 }
 0x142   : > { %v6279_v47 = vadd.f32 %v966_v16, %v965_v32  ;;  %v6293_v25 = vadd.f32 %v1750_v0, %v1749_v38  ;;  %v1969_v31 = vadd.f32 %v8503_v33, %v8502_v61  ;;  %v8508_v22 = vunpack.c.l.bf16 %v6229_v28 }
 0x143   : > { %v2081_v18 = vadd.f32 %v8505_v56, %v8504_v34  ;;  %v2193_v54 = vadd.f32 %v8507_v23, %v8506_v5  ;;  %v8509_v32 = vunpack.c.l.bf16 %v6232_v39  ;;  %v8510_v60 = vunpack.c.l.bf16 %v6237_v15 }
 0x144   : > { %v8511_v20 = vunpack.c.l.bf16 %v6240_v35  ;;  %v8512_v63 = vunpack.c.l.bf16 %v6243_v57  ;;  %v8513_v38 = vunpack.c.l.bf16 %v6249_v8  ;;  %v8514_v7 = vunpack.c.l.bf16 %v6252_v51 }
 0x145   : > { %v2305_v1 = vadd.f32 %v8509_v32, %v8508_v22  ;;  %v8515_v36 = vunpack.c.l.bf16 %v6255_v48  ;;  %v1858_v49 = vrot.slane %v1857_v45, 4  ;;  %v1970_v62 = vrot.slane %v1969_v31, 4 }
 0x146   : > { %v2417_v11 = vadd.f32 %v8511_v20, %v8510_v60  ;;  %v2529_v16 = vadd.f32 %v8513_v38, %v8512_v63  ;;  %v2082_v6 = vrot.slane %v2081_v18, 4  ;;  %v2194_v0 = vrot.slane %v2193_v54, 4 }
 0x147   : > { %v2641_v4 = vadd.f32 %v8515_v36, %v8514_v7  ;;  %v2306_v24 = vrot.slane %v2305_v1, 4  ;;  %v1859_v34 = vadd.f32 %v1858_v49, %v1857_v45  ;;  %v1971_v56 = vadd.f32 %v1970_v62, %v1969_v31 }
 0x148   : > { %v2418_v59 = vrot.slane %v2417_v11, 4  ;;  %v2530_v61 = vrot.slane %v2529_v16, 4  ;;  %v2083_v5 = vadd.f32 %v2082_v6, %v2081_v18  ;;  %v2195_v23 = vadd.f32 %v2194_v0, %v2193_v54 }
 0x149   : > { %v2642_v33 = vrot.slane %v2641_v4, 4  ;;  %v2307_v22 = vadd.f32 %v2306_v24, %v2305_v1  ;;  %v1860_v63 = vrot.slane %v1859_v34, 2  ;;  %v1972_v38 = vrot.slane %v1971_v56, 2 }
 0x14a   : > { %v2419_v32 = vadd.f32 %v2418_v59, %v2417_v11  ;;  %v2531_v60 = vadd.f32 %v2530_v61, %v2529_v16  ;;  %v2084_v48 = vrot.slane %v2083_v5, 2  ;;  %v2196_v7 = vrot.slane %v2195_v23, 2 }
 0x14b   : > { %v2643_v20 = vadd.f32 %v2642_v33, %v2641_v4  ;;  %v2308_v36 = vrot.slane %v2307_v22, 2  ;;  %v1861_v35 = vadd.f32 %v1860_v63, %v1859_v34  ;;  %v1973_v15 = vadd.f32 %v1972_v38, %v1971_v56 }
 0x14c   : > { %v2420_v51 = vrot.slane %v2419_v32, 2  ;;  %v2532_v8 = vrot.slane %v2531_v60, 2  ;;  %v2085_v39 = vadd.f32 %v2084_v48, %v2083_v5  ;;  %v2197_v28 = vadd.f32 %v2196_v7, %v2195_v23 }
 0x14d   : > { %v2644_v57 = vrot.slane %v2643_v20, 2  ;;  %v2309_v45 = vadd.f32 %v2308_v36, %v2307_v22  ;;  %v1862_v1 = vrot.slane %v1861_v35, 1  ;;  %v1974_v11 = vrot.slane %v1973_v15, 1 }
 0x14e   : > { %v2421_v31 = vadd.f32 %v2420_v51, %v2419_v32  ;;  %v2533_v18 = vadd.f32 %v2532_v8, %v2531_v60  ;;  %v2086_v16 = vrot.slane %v2085_v39, 1  ;;  %v2198_v4 = vrot.slane %v2197_v28, 1 }
 0x14f   : > { %v2645_v54 = vadd.f32 %v2644_v57, %v2643_v20  ;;  %v2310_v49 = vrot.slane %v2309_v45, 1  ;;  %v1863_v24 = vadd.f32 %v1862_v1, %v1861_v35  ;;  %v1975_v59 = vadd.f32 %v1974_v11, %v1973_v15 }
 0x150   : > { %v2422_v62 = vrot.slane %v2421_v31, 1  ;;  %v2534_v6 = vrot.slane %v2533_v18, 1  ;;  %v2087_v61 = vadd.f32 %v2086_v16, %v2085_v39  ;;  %v2199_v33 = vadd.f32 %v2198_v4, %v2197_v28 }
 0x151   : > { %v2646_v0 = vrot.slane %v2645_v54, 1  ;;  %v2311_v34 = vadd.f32 %v2310_v49, %v2309_v45  ;;  %v2717_v51 = vmul.f32 0.0625, %v6279_v47  ;;  %v2733_v57 = vmul.f32 0.0625, %v6281_v2 }
 0x152   : > { %v2423_v56 = vadd.f32 %v2422_v62, %v2421_v31  ;;  %v2535_v48 = vadd.f32 %v2534_v6, %v2533_v18  ;;  %v2749_v8 = vmul.f32 0.0625, %v6283_v26  ;;  %v2765_v23 = vmul.f32 0.0625, %v6285_v17 }
 0x153   : > { %v2647_v5 = vadd.f32 %v2646_v0, %v2645_v54  ;;  %v2781_v22 = vmul.f32 0.0625, %v6287_v55  ;;  %v2797_v32 = vmul.f32 0.0625, %v6289_v52  ;;  %v2813_v15 = vmul.f32 0.0625, %v6291_v40 }
 0x154   : > { %v2829_v35 = vmul.f32 0.0625, %v6293_v25  ;;  %v2845_v28 = vmul.f32 0.0625, %v1863_v24  ;;  %v2861_v39 = vmul.f32 0.0625, %v1975_v59  ;;  %v2877_v60 = vmul.f32 0.0625, %v2087_v61 }
 0x155   : > { %v2893_v20 = vmul.f32 0.0625, %v2199_v33  ;;  %v2909_v63 = vmul.f32 0.0625, %v2311_v34  ;;  %v2925_v47 = vmul.f32 0.0625, %v2423_v56  ;;  %v2941_v38 = vmul.f32 0.0625, %v2535_v48 }
 0x156   : > { %v2957_v2 = vmul.f32 0.0625, %v2647_v5  ;;  %v2973_v7 = vpack.c.bf16 %v2717_v51, %v2717_v51  ;;  %v2989_v26 = vpack.c.bf16 %v2733_v57, %v2733_v57  ;;  %v3005_v36 = vpack.c.bf16 %v2749_v8, %v2749_v8 }
 0x157   : > { %v3021_v17 = vpack.c.bf16 %v2765_v23, %v2765_v23  ;;  %v3037_v45 = vpack.c.bf16 %v2781_v22, %v2781_v22  ;;  %v3053_v55 = vpack.c.bf16 %v2797_v32, %v2797_v32  ;;  %v3069_v31 = vpack.c.bf16 %v2813_v15, %v2813_v15  ;;  %v5006_v15 = vld [vmem:[%s5250_s5 + $0x10] sm:$0xff] }
 0x158   : > { %v3085_v52 = vpack.c.bf16 %v2829_v35, %v2829_v35  ;;  %v3101_v18 = vpack.c.bf16 %v2845_v28, %v2845_v28  ;;  %v3117_v40 = vpack.c.bf16 %v2861_v39, %v2861_v39  ;;  %v3133_v54 = vpack.c.bf16 %v2877_v60, %v2877_v60 }
 0x159   : > { %v3149_v25 = vpack.c.bf16 %v2893_v20, %v2893_v20  ;;  %v3165_v1 = vpack.c.bf16 %v2909_v63, %v2909_v63  ;;  %v3181_v11 = vpack.c.bf16 %v2925_v47, %v2925_v47  ;;  %v3197_v16 = vpack.c.bf16 %v2941_v38, %v2941_v38 }
 0x15a   : > { %v3213_v4 = vpack.c.bf16 %v2957_v2, %v2957_v2  ;;  %v3549_v49 = vunpack.c.l.b16 %v2973_v7  ;;  %v3565_v62 = vunpack.c.l.b16 %v2989_v26  ;;  %v3581_v6 = vunpack.c.l.b16 %v3005_v36 }
 0x15b   : > { %v3597_v0 = vunpack.c.l.b16 %v3021_v17  ;;  %v3613_v24 = vunpack.c.l.b16 %v3037_v45  ;;  %v3629_v59 = vunpack.c.l.b16 %v3053_v55  ;;  %v3645_v61 = vunpack.c.l.b16 %v3069_v31 }
 0x15c   : > { %v3661_v33 = vunpack.c.l.b16 %v3085_v52  ;;  %v3677_v34 = vunpack.c.l.b16 %v3101_v18  ;;  %v3693_v56 = vunpack.c.l.b16 %v3117_v40  ;;  %v3709_v48 = vunpack.c.l.b16 %v3133_v54  ;;  %v8516_v40 = vld [vmem:[#allocation2_spill] sm:$0xff] }
 0x15d   : > { %v3725_v5 = vunpack.c.l.b16 %v3149_v25  ;;  %v3741_v51 = vunpack.c.l.b16 %v3165_v1  ;;  %v3757_v57 = vunpack.c.l.b16 %v3181_v11  ;;  %v3773_v8 = vunpack.c.l.b16 %v3197_v16  ;;  %v8519_v16 = vld [vmem:[#allocation3_spill] sm:$0xff] }
 0x15e   : > { %v3789_v23 = vunpack.c.l.b16 %v3213_v4  ;;  %v3848_v22 = vsel %vm3799_vm0, %v3565_v62, %v3549_v49  ;;  %v3960_v32 = vsel %vm3799_vm0, %v3693_v56, %v3677_v34  ;;  %v412_v35 = vunpack.c.h.bf16 %v5006_v15  ;;  %v8520_v49 = vld [vmem:[#allocation4_spill] sm:$0xff] }
 0x15f   : > { %v428_v28 = vunpack.c.h.bf16 %v5916_v41  ;;  %v3849_v39 = vsel %vm3801_vm1, %v3581_v6, %v3848_v22  ;;  %v3961_v60 = vsel %vm3801_vm1, %v3709_v48, %v3960_v32  ;;  %v444_v20 = vunpack.c.h.bf16 %v5930_v43  ;;  %v8526_v56 = vld [vmem:[#allocation12_spill] sm:$0xff] }
 0x160   : > { %v460_v63 = vunpack.c.h.bf16 %v5933_v42  ;;  %v3850_v47 = vsel %vm3803_vm2, %v3597_v0, %v3849_v39  ;;  %v3962_v38 = vsel %vm3803_vm2, %v3725_v5, %v3961_v60  ;;  %v476_v2 = vunpack.c.h.bf16 %v5947_v21  ;;  %v8527_v5 = vld [vmem:[#allocation13_spill] sm:$0xff]  ;;  %v8530_v32 = vld [vmem:[#allocation16_spill] sm:$0xff] }
 0x161   : > { %v492_v7 = vunpack.c.h.bf16 %v5952_v50  ;;  %v3851_v26 = vsel %vm3805_vm3, %v3613_v24, %v3850_v47  ;;  %v3963_v41 = vsel %vm3805_vm3, %v3741_v51, %v3962_v38  ;;  %v508_v36 = vunpack.c.h.bf16 %v5955_v58  ;;  %v8523_v24 = vld [vmem:[#allocation9_spill] sm:$0xff]  ;;  %v8532_v47 = vld [vmem:[#allocation18_spill] sm:$0xff] }
 0x162   : > { %v524_v17 = vunpack.c.h.bf16 %v5958_v19  ;;  %v3852_v43 = vsel %vm3807_vm4, %v3629_v59, %v3851_v26  ;;  %v3964_v42 = vsel %vm3807_vm4, %v3757_v57, %v3963_v41  ;;  %v540_v45 = vunpack.c.h.bf16 %v5964_v27  ;;  %v8517_v27 = vld [vmem:[#allocation5_spill] sm:$0xff]  ;;  %v8528_v57 = vld [vmem:[#allocation14_spill] sm:$0xff]  ;;  %v8533_v26 = vld [vmem:[#allocation19_spill] sm:$0xff] }
 0x163   : > { %v556_v55 = vunpack.c.h.bf16 %v5967_v13  ;;  %v3853_v21 = vsel %vm3809_vm5, %v3645_v61, %v3852_v43  ;;  %v3965_v50 = vsel %vm3809_vm5, %v3773_v8, %v3964_v42  ;;  %v572_v31 = vunpack.c.h.bf16 %v5970_v37  ;;  %v8518_v13 = vld [vmem:[#allocation6_spill] sm:$0xff]  ;;  %v8521_v37 = vld [vmem:[#allocation7_spill] sm:$0xff]  ;;  %v8531_v39 = vld [vmem:[#allocation17_spill] sm:$0xff] }
 0x164   : > { %v588_v52 = vunpack.c.h.bf16 %v5976_v12  ;;  %v3854_v58 = vsel %vm3811_vm6, %v3661_v33, %v3853_v21  ;;  %v3966_v19 = vsel %vm3811_vm6, %v3789_v23, %v3965_v50  ;;  %v604_v18 = vunpack.c.h.bf16 %v5979_v29  ;;  %v8522_v12 = vld [vmem:[#allocation8_spill] sm:$0xff]  ;;  %v8524_v61 = vld [vmem:[#allocation10_spill] sm:$0xff]  ;;  %v8525_v33 = vld [vmem:[#allocation11_spill] sm:$0xff] }
 0x165   : > { %v620_v54 = vunpack.c.h.bf16 %v8516_v40  ;;  %v4036_v25 = vpack.c.b16 %v3966_v19, %v3854_v58  ;;  %v636_v1 = vunpack.c.h.bf16 %v8517_v27  ;;  %v652_v11 = vunpack.c.h.bf16 %v8518_v13  ;;  %v8529_v23 = vld [vmem:[#allocation15_spill] sm:$0xff]  ;;  %v8534_v43 = vld [vmem:[#allocation20_spill] sm:$0xff] }
 0x166   : > { %v668_v4 = vunpack.c.h.bf16 %v8519_v16  ;;  %v684_v62 = vunpack.c.h.bf16 %v8520_v49  ;;  %v700_v6 = vunpack.c.h.bf16 %v8521_v37  ;;  %v716_v0 = vunpack.c.h.bf16 %v8522_v12 }
 0x167   : > { %4474 = vmatmul.bf16.vlgmr.msrb.gmra.mxu2 %v4036_v25  ;;  %v954_v21 = vadd.f32 %v428_v28, %v412_v35  ;;  %v1066_v50 = vadd.f32 %v460_v63, %v444_v20  ;;  %v1178_v58 = vadd.f32 %v492_v7, %v476_v2  ;;  %v1290_v19 = vadd.f32 %v524_v17, %v508_v36 }
 0x168   : > { %v1402_v40 = vadd.f32 %v556_v55, %v540_v45  ;;  %v1514_v27 = vadd.f32 %v588_v52, %v572_v31  ;;  %v1626_v13 = vadd.f32 %v620_v54, %v604_v18  ;;  %v1738_v8 = vadd.f32 %v652_v11, %v636_v1 }
 0x169   : > { %v955_v25 = vrot.slane %v954_v21, 4  ;;  %v1067_v22 = vrot.slane %v1066_v50, 4  ;;  %v1179_v51 = vrot.slane %v1178_v58, 4  ;;  %v1291_v15 = vrot.slane %v1290_v19, 4 }
 0x16a   : > { %v1403_v48 = vrot.slane %v1402_v40, 4  ;;  %v1515_v34 = vrot.slane %v1514_v27, 4  ;;  %v1627_v38 = vrot.slane %v1626_v13, 4  ;;  %v1739_v29 = vrot.slane %v1738_v8, 4 }
 0x16b   : > { %v956_v60 = vadd.f32 %v955_v25, %v954_v21  ;;  %v1068_v41 = vadd.f32 %v1067_v22, %v1066_v50  ;;  %v1180_v59 = vadd.f32 %v1179_v51, %v1178_v58  ;;  %v1292_v42 = vadd.f32 %v1291_v15, %v1290_v19 }
 0x16c   : > { %v1404_v35 = vadd.f32 %v1403_v48, %v1402_v40  ;;  %v1516_v20 = vadd.f32 %v1515_v34, %v1514_v27  ;;  %v1628_v63 = vadd.f32 %v1627_v38, %v1626_v13  ;;  %v1740_v2 = vadd.f32 %v1739_v29, %v1738_v8 }
 0x16d   : > { %v957_v28 = vrot.slane %v956_v60, 2  ;;  %v1069_v7 = vrot.slane %v1068_v41, 2  ;;  %v1181_v36 = vrot.slane %v1180_v59, 2  ;;  %v1293_v17 = vrot.slane %v1292_v42, 2 }
 0x16e   : > { %v1405_v45 = vrot.slane %v1404_v35, 2  ;;  %v1517_v31 = vrot.slane %v1516_v20, 2  ;;  %v1629_v52 = vrot.slane %v1628_v63, 2  ;;  %v1741_v18 = vrot.slane %v1740_v2, 2 }
 0x16f   : > { %v958_v55 = vadd.f32 %v957_v28, %v956_v60  ;;  %v1070_v54 = vadd.f32 %v1069_v7, %v1068_v41  ;;  %v1182_v1 = vadd.f32 %v1181_v36, %v1180_v59  ;;  %v1294_v11 = vadd.f32 %v1293_v17, %v1292_v42 }
 0x170   : > { %v1406_v21 = vadd.f32 %v1405_v45, %v1404_v35  ;;  %v1518_v51 = vadd.f32 %v1517_v31, %v1516_v20  ;;  %v1630_v15 = vadd.f32 %v1629_v52, %v1628_v63  ;;  %v1742_v48 = vadd.f32 %v1741_v18, %v1740_v2 }
 0x171   : > { %v959_v22 = vrot.slane %v958_v55, 1  ;;  %v1071_v50 = vrot.slane %v1070_v54, 1  ;;  %v1183_v34 = vrot.slane %v1182_v1, 1  ;;  %v1295_v38 = vrot.slane %v1294_v11, 1 }
 0x172   : > { %v1407_v29 = vrot.slane %v1406_v21, 1  ;;  %v1519_v58 = vrot.slane %v1518_v51, 1  ;;  %v1631_v19 = vrot.slane %v1630_v15, 1  ;;  %v1743_v60 = vrot.slane %v1742_v48, 1 }
 0x173   : > { %v6381_v8 = vadd.f32 %v959_v22, %v958_v55  ;;  %v6383_v40 = vadd.f32 %v1071_v50, %v1070_v54  ;;  %v6385_v25 = vadd.f32 %v1183_v34, %v1182_v1  ;;  %v6387_v59 = vadd.f32 %v1295_v38, %v1294_v11 }
 0x174   : > { %v6389_v41 = vadd.f32 %v1407_v29, %v1406_v21  ;;  %v6391_v42 = vadd.f32 %v1519_v58, %v1518_v51  ;;  %v6393_v27 = vadd.f32 %v1631_v19, %v1630_v15  ;;  %v6395_v13 = vadd.f32 %v1743_v60, %v1742_v48 }
 0x175   : > { %v1850_v35 = vadd.f32 %v684_v62, %v668_v4  ;;  %v1962_v28 = vadd.f32 %v716_v0, %v700_v6  ;;  %v8535_v20 = vunpack.c.h.bf16 %v8523_v24  ;;  %v8536_v63 = vunpack.c.h.bf16 %v8524_v61 }
 0x176   : > { %v8537_v7 = vunpack.c.h.bf16 %v8525_v33  ;;  %v8538_v36 = vunpack.c.h.bf16 %v8526_v56  ;;  %v8539_v16 = vunpack.c.h.bf16 %v8527_v5  ;;  %v8540_v49 = vunpack.c.h.bf16 %v8528_v57 }
 0x177   : > { %v2074_v2 = vadd.f32 %v8536_v63, %v8535_v20  ;;  %v1851_v62 = vrot.slane %v1850_v35, 4  ;;  %v8541_v37 = vunpack.c.h.bf16 %v8529_v23  ;;  %v8542_v6 = vunpack.c.h.bf16 %v8530_v32 }
 0x178   : > { %v2186_v17 = vadd.f32 %v8538_v36, %v8537_v7  ;;  %v2298_v4 = vadd.f32 %v8540_v49, %v8539_v16  ;;  %v8543_v0 = vunpack.c.h.bf16 %v8531_v39  ;;  %v8544_v24 = vunpack.c.h.bf16 %v8532_v47 }
 0x179   : > { %v2410_v12 = vadd.f32 %v8542_v6, %v8541_v37  ;;  %v8545_v33 = vunpack.c.h.bf16 %v8533_v26  ;;  %v8546_v56 = vunpack.c.h.bf16 %v8534_v43  ;;  %v1963_v5 = vrot.slane %v1962_v28, 4 }
 0x17a   : > { %v2522_v61 = vadd.f32 %v8544_v24, %v8543_v0  ;;  %v2075_v55 = vrot.slane %v2074_v2, 4  ;;  %v2187_v57 = vrot.slane %v2186_v17, 4  ;;  %v2299_v31 = vrot.slane %v2298_v4, 4 }
 0x17b   : > { %v2634_v45 = vadd.f32 %v8546_v56, %v8545_v33  ;;  %v1852_v52 = vadd.f32 %v1851_v62, %v1850_v35  ;;  %v2411_v18 = vrot.slane %v2410_v12, 4  ;;  %v1964_v32 = vadd.f32 %v1963_v5, %v1962_v28 }
 0x17c   : > { %v2523_v23 = vrot.slane %v2522_v61, 4  ;;  %v2076_v1 = vadd.f32 %v2075_v55, %v2074_v2  ;;  %v2188_v11 = vadd.f32 %v2187_v57, %v2186_v17  ;;  %v2300_v39 = vadd.f32 %v2299_v31, %v2298_v4 }
 0x17d   : > { %v2635_v54 = vrot.slane %v2634_v45, 4  ;;  %v1853_v21 = vrot.slane %v1852_v52, 2  ;;  %v2412_v47 = vadd.f32 %v2411_v18, %v2410_v12  ;;  %v1965_v26 = vrot.slane %v1964_v32, 2 }
 0x17e   : > { %v2524_v22 = vadd.f32 %v2523_v23, %v2522_v61  ;;  %v2077_v15 = vrot.slane %v2076_v1, 2  ;;  %v2189_v43 = vrot.slane %v2188_v11, 2  ;;  %v2301_v48 = vrot.slane %v2300_v39, 2 }
 0x17f   : > { %v2636_v51 = vadd.f32 %v2635_v54, %v2634_v45  ;;  %v1854_v50 = vadd.f32 %v1853_v21, %v1852_v52  ;;  %v2413_v34 = vrot.slane %v2412_v47, 2  ;;  %v1966_v58 = vadd.f32 %v1965_v26, %v1964_v32 }
 0x180   : > { %v2525_v38 = vrot.slane %v2524_v22, 2  ;;  %v2078_v19 = vadd.f32 %v2077_v15, %v2076_v1  ;;  %v2190_v60 = vadd.f32 %v2189_v43, %v2188_v11  ;;  %v2302_v35 = vadd.f32 %v2301_v48, %v2300_v39 }
 0x181   : > { %v2637_v29 = vrot.slane %v2636_v51, 2  ;;  %v1855_v28 = vrot.slane %v1854_v50, 1  ;;  %v2414_v20 = vadd.f32 %v2413_v34, %v2412_v47  ;;  %v1967_v7 = vrot.slane %v1966_v58, 1 }
 0x182   : > { %v2526_v63 = vadd.f32 %v2525_v38, %v2524_v22  ;;  %v2079_v36 = vrot.slane %v2078_v19, 1  ;;  %v2191_v17 = vrot.slane %v2190_v60, 1  ;;  %v2303_v16 = vrot.slane %v2302_v35, 1 }
 0x183   : > { %v2638_v2 = vadd.f32 %v2637_v29, %v2636_v51  ;;  %v1856_v49 = vadd.f32 %v1855_v28, %v1854_v50  ;;  %v2415_v4 = vrot.slane %v2414_v20, 1  ;;  %v1968_v6 = vadd.f32 %v1967_v7, %v1966_v58 }
 0x184   : > { %v2527_v62 = vrot.slane %v2526_v63, 1  ;;  %v2080_v12 = vadd.f32 %v2079_v36, %v2078_v19  ;;  %v2192_v0 = vadd.f32 %v2191_v17, %v2190_v60  ;;  %v2304_v24 = vadd.f32 %v2303_v16, %v2302_v35 }
 0x185   : > { %v2639_v37 = vrot.slane %v2638_v2, 1  ;;  %v2416_v61 = vadd.f32 %v2415_v4, %v2414_v20  ;;  %v2716_v45 = vmul.f32 0.0625, %v6381_v8  ;;  %v2732_v5 = vmul.f32 0.0625, %v6383_v40 }
 0x186   : > { %v2528_v33 = vadd.f32 %v2527_v62, %v2526_v63  ;;  %v2748_v55 = vmul.f32 0.0625, %v6385_v25  ;;  %v2764_v57 = vmul.f32 0.0625, %v6387_v59  ;;  %v2780_v31 = vmul.f32 0.0625, %v6389_v41 }
 0x187   : > { %v2640_v56 = vadd.f32 %v2639_v37, %v2638_v2  ;;  %v2796_v52 = vmul.f32 0.0625, %v6391_v42  ;;  %v2812_v18 = vmul.f32 0.0625, %v6393_v27  ;;  %v2828_v23 = vmul.f32 0.0625, %v6395_v13 }
 0x188   : > { %v2844_v54 = vmul.f32 0.0625, %v1856_v49  ;;  %v2860_v32 = vmul.f32 0.0625, %v1968_v6  ;;  %v2876_v1 = vmul.f32 0.0625, %v2080_v12  ;;  %v2892_v11 = vmul.f32 0.0625, %v2192_v0  ;;  %v8547_v0 = vld [vmem:[#allocation21_spill] sm:$0xff] }
 0x189   : > { %v2908_v39 = vmul.f32 0.0625, %v2304_v24  ;;  %v2924_v8 = vmul.f32 0.0625, %v2416_v61  ;;  %v2940_v21 = vmul.f32 0.0625, %v2528_v33  ;;  %v2956_v40 = vmul.f32 0.0625, %v2640_v56  ;;  %v8548_v61 = vld [vmem:[#allocation22_spill] sm:$0xff] }
 0x18a   : > { %v2972_v47 = vpack.c.bf16 %v2716_v45, %v2716_v45  ;;  %v2988_v25 = vpack.c.bf16 %v2732_v5, %v2732_v5  ;;  %v3004_v22 = vpack.c.bf16 %v2748_v55, %v2748_v55  ;;  %v3020_v59 = vpack.c.bf16 %v2764_v57, %v2764_v57  ;;  %v8549_v5 = vld [vmem:[#allocation23_spill] sm:$0xff]  ;;  %v8550_v57 = vld [vmem:[#allocation24_spill] sm:$0xff] }
 0x18b   : > { %v3036_v51 = vpack.c.bf16 %v2780_v31, %v2780_v31  ;;  %v3052_v41 = vpack.c.bf16 %v2796_v52, %v2796_v52  ;;  %v3068_v26 = vpack.c.bf16 %v2812_v18, %v2812_v18  ;;  %v3084_v42 = vpack.c.bf16 %v2828_v23, %v2828_v23  ;;  %v8551_v23 = vld [vmem:[#allocation25_spill] sm:$0xff] }
 0x18c   : > { %v3100_v15 = vpack.c.bf16 %v2844_v54, %v2844_v54  ;;  %v3116_v27 = vpack.c.bf16 %v2860_v32, %v2860_v32  ;;  %v3132_v43 = vpack.c.bf16 %v2876_v1, %v2876_v1  ;;  %v3148_v13 = vpack.c.bf16 %v2892_v11, %v2892_v11  ;;  %v8552_v32 = vld [vmem:[#allocation26_spill] sm:$0xff] }
 0x18d   : > { %v3164_v48 = vpack.c.bf16 %v2908_v39, %v2908_v39  ;;  %v3180_v50 = vpack.c.bf16 %v2924_v8, %v2924_v8  ;;  %v3196_v34 = vpack.c.bf16 %v2940_v21, %v2940_v21  ;;  %v3212_v38 = vpack.c.bf16 %v2956_v40, %v2956_v40  ;;  %v8553_v8 = vld [vmem:[#allocation27_spill] sm:$0xff]  ;;  %v8554_v40 = vld [vmem:[#allocation28_spill] sm:$0xff] }
 0x18e   : > { %v3548_v29 = vunpack.c.l.b16 %v2972_v47  ;;  %v3564_v58 = vunpack.c.l.b16 %v2988_v25  ;;  %v3580_v19 = vunpack.c.l.b16 %v3004_v22  ;;  %v3596_v60 = vunpack.c.l.b16 %v3020_v59  ;;  %v8555_v59 = vld [vmem:[#allocation29_spill] sm:$0xff] }
 0x18f   : > { %v3612_v35 = vunpack.c.l.b16 %v3036_v51  ;;  %v3628_v28 = vunpack.c.l.b16 %v3052_v41  ;;  %v3644_v20 = vunpack.c.l.b16 %v3068_v26  ;;  %v3660_v63 = vunpack.c.l.b16 %v3084_v42  ;;  %v8556_v41 = vld [vmem:[#allocation30_spill] sm:$0xff] }
 0x190   : > { %v3676_v2 = vunpack.c.l.b16 %v3100_v15  ;;  %v3692_v7 = vunpack.c.l.b16 %v3116_v27  ;;  %v3708_v36 = vunpack.c.l.b16 %v3132_v43  ;;  %v3724_v17 = vunpack.c.l.b16 %v3148_v13  ;;  %v8557_v27 = vld [vmem:[#allocation31_spill] sm:$0xff]  ;;  %v8558_v13 = vld [vmem:[#allocation32_spill] sm:$0xff] }
 0x191   : > { %v3740_v16 = vunpack.c.l.b16 %v3164_v48  ;;  %v3756_v49 = vunpack.c.l.b16 %v3180_v50  ;;  %v3772_v4 = vunpack.c.l.b16 %v3196_v34  ;;  %v3788_v62 = vunpack.c.l.b16 %v3212_v38  ;;  %v8559_v34 = vld [vmem:[#allocation33_spill] sm:$0xff] }
 0x192   : > { %v3841_v37 = vsel %vm3799_vm0, %v3564_v58, %v3548_v29  ;;  %v3953_v12 = vsel %vm3799_vm0, %v3692_v7, %v3676_v2  ;;  %v414_v24 = vunpack.c.h.bf16 %v8547_v0  ;;  %v430_v33 = vunpack.c.h.bf16 %v8548_v61  ;;  %v8560_v29 = vld [vmem:[#allocation34_spill] sm:$0xff]  ;;  %v8565_v0 = vld [vmem:[#allocation39_spill] sm:$0xff] }
 0x193   : > { %v3842_v6 = vsel %vm3801_vm1, %v3580_v19, %v3841_v37  ;;  %v3954_v45 = vsel %vm3801_vm1, %v3708_v36, %v3953_v12  ;;  %v446_v55 = vunpack.c.h.bf16 %v8549_v5  ;;  %v462_v31 = vunpack.c.h.bf16 %v8550_v57  ;;  %v8561_v19 = vld [vmem:[#allocation35_spill] sm:$0xff]  ;;  %v8567_v5 = vld [vmem:[#allocation41_spill] sm:$0xff] }
 0x194   : > { %v3843_v56 = vsel %vm3803_vm2, %v3596_v60, %v3842_v6  ;;  %v3955_v18 = vsel %vm3803_vm2, %v3724_v17, %v3954_v45  ;;  %v478_v54 = vunpack.c.h.bf16 %v8551_v23  ;;  %v494_v1 = vunpack.c.h.bf16 %v8552_v32  ;;  %v8564_v6 = vld [vmem:[#allocation38_spill] sm:$0xff]  ;;  %v8569_v23 = vld [vmem:[#allocation43_spill] sm:$0xff] }
 0x195   : > { %v3844_v52 = vsel %vm3805_vm3, %v3612_v35, %v3843_v56  ;;  %v3956_v39 = vsel %vm3805_vm3, %v3740_v16, %v3955_v18  ;;  %v510_v21 = vunpack.c.h.bf16 %v8553_v8  ;;  %v526_v47 = vunpack.c.h.bf16 %v8554_v40  ;;  %v8566_v56 = vld [vmem:[#allocation40_spill] sm:$0xff] }
 0x196   : > { %v3845_v11 = vsel %vm3807_vm4, %v3628_v28, %v3844_v52  ;;  %v3957_v22 = vsel %vm3807_vm4, %v3756_v49, %v3956_v39  ;;  %v542_v51 = vunpack.c.h.bf16 %v8555_v59  ;;  %v558_v26 = vunpack.c.h.bf16 %v8556_v41  ;;  %v8562_v28 = vld [vmem:[#allocation36_spill] sm:$0xff]  ;;  %v8568_v52 = vld [vmem:[#allocation42_spill] sm:$0xff] }
 0x197   : > { %v3846_v25 = vsel %vm3809_vm5, %v3644_v20, %v3845_v11  ;;  %v3958_v15 = vsel %vm3809_vm5, %v3772_v4, %v3957_v22  ;;  %v574_v43 = vunpack.c.h.bf16 %v8557_v27  ;;  %v590_v48 = vunpack.c.h.bf16 %v8558_v13  ;;  %v8570_v11 = vld [vmem:[#allocation44_spill] sm:$0xff] }
 0x198   : > { %v3847_v42 = vsel %vm3811_vm6, %v3660_v63, %v3846_v25  ;;  %v3959_v50 = vsel %vm3811_vm6, %v3788_v62, %v3958_v15  ;;  %v606_v38 = vunpack.c.h.bf16 %v8559_v34  ;;  %v622_v58 = vunpack.c.h.bf16 %v8560_v29  ;;  %v8563_v62 = vld [vmem:[#allocation37_spill] sm:$0xff] }
 0x199   : > { %v638_v60 = vunpack.c.h.bf16 %v8561_v19  ;;  %v4035_v35 = vpack.c.b16 %v3959_v50, %v3847_v42  ;;  %v654_v20 = vunpack.c.h.bf16 %v8562_v28  ;;  %v670_v2 = vunpack.c.h.bf16 %v6187_v14 }
 0x19a   : > { %v686_v63 = vunpack.c.h.bf16 %v6190_v46  ;;  %v702_v7 = vunpack.c.h.bf16 %v6193_v30  ;;  %v718_v36 = vunpack.c.h.bf16 %v6206_v3  ;;  %v734_v17 = vunpack.c.h.bf16 %v6213_v53 }
 0x19b   : > { %v750_v16 = vunpack.c.h.bf16 %v6216_v9  ;;  %4460 = vmatmul.bf16.vlgmr.msrb.gmra.mxu1 %v4035_v35  ;;  %v766_v49 = vunpack.c.h.bf16 %v6219_v44  ;;  %v782_v4 = vunpack.c.h.bf16 %v6226_v10  ;;  %v798_v37 = vunpack.c.h.bf16 %v8563_v62 }
 0x19c   : > { %v814_v12 = vunpack.c.h.bf16 %v8564_v6  ;;  %v830_v61 = vunpack.c.h.bf16 %v8565_v0  ;;  %v846_v45 = vunpack.c.h.bf16 %v8566_v56  ;;  %v968_v8 = vadd.f32 %v430_v33, %v414_v24 }
 0x19d   : > { %v1080_v40 = vadd.f32 %v462_v31, %v446_v55  ;;  %v1192_v25 = vadd.f32 %v494_v1, %v478_v54  ;;  %v1304_v22 = vadd.f32 %v526_v47, %v510_v21  ;;  %v1416_v59 = vadd.f32 %v558_v26, %v542_v51 }
 0x19e   : > { %v1528_v41 = vadd.f32 %v590_v48, %v574_v43  ;;  %v969_v42 = vrot.slane %v968_v8, 4  ;;  %v1640_v27 = vadd.f32 %v622_v58, %v606_v38  ;;  %v1752_v13 = vadd.f32 %v654_v20, %v638_v60 }
 0x19f   : > { %v1081_v15 = vrot.slane %v1080_v40, 4  ;;  %v1193_v50 = vrot.slane %v1192_v25, 4  ;;  %v1305_v34 = vrot.slane %v1304_v22, 4  ;;  %v1417_v29 = vrot.slane %v1416_v59, 4 }
 0x1a0   : > { %v1529_v19 = vrot.slane %v1528_v41, 4  ;;  %v970_v35 = vadd.f32 %v969_v42, %v968_v8  ;;  %v1641_v18 = vrot.slane %v1640_v27, 4  ;;  %v1753_v32 = vrot.slane %v1752_v13, 4 }
 0x1a1   : > { %v1082_v28 = vadd.f32 %v1081_v15, %v1080_v40  ;;  %v1194_v57 = vadd.f32 %v1193_v50, %v1192_v25  ;;  %v1306_v39 = vadd.f32 %v1305_v34, %v1304_v22  ;;  %v1418_v24 = vadd.f32 %v1417_v29, %v1416_v59 }
 0x1a2   : > { %v1530_v33 = vadd.f32 %v1529_v19, %v1528_v41  ;;  %v971_v55 = vrot.slane %v970_v35, 2  ;;  %v1642_v54 = vadd.f32 %v1641_v18, %v1640_v27  ;;  %v1754_v1 = vadd.f32 %v1753_v32, %v1752_v13 }
 0x1a3   : > { %v1083_v31 = vrot.slane %v1082_v28, 2  ;;  %v1195_v21 = vrot.slane %v1194_v57, 2  ;;  %v1307_v47 = vrot.slane %v1306_v39, 2  ;;  %v1419_v51 = vrot.slane %v1418_v24, 2 }
 0x1a4   : > { %v1531_v26 = vrot.slane %v1530_v33, 2  ;;  %v972_v43 = vadd.f32 %v971_v55, %v970_v35  ;;  %v1643_v38 = vrot.slane %v1642_v54, 2  ;;  %v1755_v58 = vrot.slane %v1754_v1, 2 }
 0x1a5   : > { %v1084_v48 = vadd.f32 %v1083_v31, %v1082_v28  ;;  %v1196_v60 = vadd.f32 %v1195_v21, %v1194_v57  ;;  %v1308_v20 = vadd.f32 %v1307_v47, %v1306_v39  ;;  %v1420_v8 = vadd.f32 %v1419_v51, %v1418_v24 }
 0x1a6   : > { %v1532_v40 = vadd.f32 %v1531_v26, %v1530_v33  ;;  %v973_v25 = vrot.slane %v972_v43, 1  ;;  %v1644_v59 = vadd.f32 %v1643_v38, %v1642_v54  ;;  %v1756_v41 = vadd.f32 %v1755_v58, %v1754_v1 }
 0x1a7   : > { %v1085_v22 = vrot.slane %v1084_v48, 1  ;;  %v1197_v42 = vrot.slane %v1196_v60, 1  ;;  %v1309_v15 = vrot.slane %v1308_v20, 1  ;;  %v1421_v18 = vrot.slane %v1420_v8, 1 }
 0x1a8   : > { %v1533_v32 = vrot.slane %v1532_v40, 1  ;;  %v6483_v27 = vadd.f32 %v973_v25, %v972_v43  ;;  %v1645_v50 = vrot.slane %v1644_v59, 1  ;;  %v1757_v34 = vrot.slane %v1756_v41, 1 }
 0x1a9   : > { %v6485_v13 = vadd.f32 %v1085_v22, %v1084_v48  ;;  %v6487_v29 = vadd.f32 %v1197_v42, %v1196_v60  ;;  %v6489_v57 = vadd.f32 %v1309_v15, %v1308_v20  ;;  %v6491_v39 = vadd.f32 %v1421_v18, %v1420_v8 }
 0x1aa   : > { %v6493_v19 = vadd.f32 %v1533_v32, %v1532_v40  ;;  %v6495_v35 = vadd.f32 %v1645_v50, %v1644_v59  ;;  %v6497_v28 = vadd.f32 %v1757_v34, %v1756_v41  ;;  %v1864_v24 = vadd.f32 %v686_v63, %v670_v2 }
 0x1ab   : > { %v1976_v33 = vadd.f32 %v718_v36, %v702_v7  ;;  %v2088_v55 = vadd.f32 %v750_v16, %v734_v17  ;;  %v2200_v31 = vadd.f32 %v782_v4, %v766_v49  ;;  %v2312_v14 = vadd.f32 %v814_v12, %v798_v37 }
 0x1ac   : > { %v2424_v46 = vadd.f32 %v846_v45, %v830_v61  ;;  %v1865_v30 = vrot.slane %v1864_v24, 4  ;;  %v8571_v53 = vunpack.c.h.bf16 %v8567_v5  ;;  %v8572_v9 = vunpack.c.h.bf16 %v8568_v52 }
 0x1ad   : > { %v1977_v3 = vrot.slane %v1976_v33, 4  ;;  %v8573_v10 = vunpack.c.h.bf16 %v8569_v23  ;;  %v8574_v2 = vunpack.c.h.bf16 %v8570_v11  ;;  %v2089_v7 = vrot.slane %v2088_v55, 4 }
 0x1ae   : > { %v2536_v44 = vadd.f32 %v8572_v9, %v8571_v53  ;;  %v2201_v36 = vrot.slane %v2200_v31, 4  ;;  %v2313_v17 = vrot.slane %v2312_v14, 4  ;;  %v2425_v16 = vrot.slane %v2424_v46, 4 }
 0x1af   : > { %v2648_v63 = vadd.f32 %v8574_v2, %v8573_v10  ;;  %v1866_v49 = vadd.f32 %v1865_v30, %v1864_v24  ;;  %v1978_v4 = vadd.f32 %v1977_v3, %v1976_v33  ;;  %v2090_v6 = vadd.f32 %v2089_v7, %v2088_v55 }
 0x1b0   : > { %v2537_v62 = vrot.slane %v2536_v44, 4  ;;  %v2202_v12 = vadd.f32 %v2201_v36, %v2200_v31  ;;  %v2314_v0 = vadd.f32 %v2313_v17, %v2312_v14  ;;  %v2426_v61 = vadd.f32 %v2425_v16, %v2424_v46 }
 0x1b1   : > { %v2649_v37 = vrot.slane %v2648_v63, 4  ;;  %v1867_v56 = vrot.slane %v1866_v49, 2  ;;  %v1979_v45 = vrot.slane %v1978_v4, 2  ;;  %v2091_v23 = vrot.slane %v2090_v6, 2 }
 0x1b2   : > { %v2538_v5 = vadd.f32 %v2537_v62, %v2536_v44  ;;  %v2203_v54 = vrot.slane %v2202_v12, 2  ;;  %v2315_v11 = vrot.slane %v2314_v0, 2  ;;  %v2427_v1 = vrot.slane %v2426_v61, 2 }
 0x1b3   : > { %v2650_v52 = vadd.f32 %v2649_v37, %v2648_v63  ;;  %v1868_v21 = vadd.f32 %v1867_v56, %v1866_v49  ;;  %v1980_v47 = vadd.f32 %v1979_v45, %v1978_v4  ;;  %v2092_v43 = vadd.f32 %v2091_v23, %v2090_v6  ;;  %v4837_v23 = vld [vmem:[%s8062_s1 + $0x120] sm:$0xf] }
 0x1b4   : > { %v2539_v51 = vrot.slane %v2538_v5, 2  ;;  %v2204_v48 = vadd.f32 %v2203_v54, %v2202_v12  ;;  %v2316_v38 = vadd.f32 %v2315_v11, %v2314_v0  ;;  %v2428_v58 = vadd.f32 %v2427_v1, %v2426_v61  ;;  %v4978_v54 = vld [vmem:[%s8062_s1 + $0x15c] sm:$0xf0]  ;;  %v4970_v11 = vld [vmem:[%s8062_s1 + $0x124] sm:$0xf] }
 0x1b5   : > { %v2651_v26 = vrot.slane %v2650_v52, 2  ;;  %v1869_v60 = vrot.slane %v1868_v21, 1  ;;  %v1981_v20 = vrot.slane %v1980_v47, 1  ;;  %v2093_v25 = vrot.slane %v2092_v43, 1 }
 0x1b6   : > { %v2540_v8 = vadd.f32 %v2539_v51, %v2538_v5  ;;  %v2205_v22 = vrot.slane %v2204_v48, 1  ;;  %v2317_v59 = vrot.slane %v2316_v38, 1  ;;  %v2429_v41 = vrot.slane %v2428_v58, 1 }
 0x1b7   : > { %v2652_v40 = vadd.f32 %v2651_v26, %v2650_v52  ;;  %v1870_v42 = vadd.f32 %v1869_v60, %v1868_v21  ;;  %v1982_v15 = vadd.f32 %v1981_v20, %v1980_v47  ;;  %v2094_v50 = vadd.f32 %v2093_v25, %v2092_v43  ;;  %v4839_v26 = vld [vmem:[%s8062_s1 + $0x160] sm:$0xf0]  ;;  %v4845_v43 = vld [vmem:[%s8062_s1 + $0x128] sm:$0xf]  ;;  %v6570_v25 = vld [vmem:[%s8062_s1 + $0xa0] sm:$0xf] }
 0x1b8   : > { %v2541_v18 = vrot.slane %v2540_v8, 1  ;;  %v2206_v34 = vadd.f32 %v2205_v22, %v2204_v48  ;;  %v2318_v24 = vadd.f32 %v2317_v59, %v2316_v38  ;;  %v2430_v33 = vadd.f32 %v2429_v41, %v2428_v58  ;;  %v4979_v48 = vld [vmem:[%s8062_s1 + $0x164] sm:$0xf0]  ;;  %v6573_v22 = vld [vmem:[%s5250_s5 + $0x20] sm:$0xff] }
 0x1b9   : > { %v2653_v32 = vrot.slane %v2652_v40, 1  ;;  %v2718_v14 = vmul.f32 0.0625, %v6483_v27  ;;  %v2734_v46 = vmul.f32 0.0625, %v6485_v13  ;;  %v2750_v30 = vmul.f32 0.0625, %v6487_v29 }
 0x1ba   : > { %v2542_v55 = vadd.f32 %v2541_v18, %v2540_v8  ;;  %v2766_v3 = vmul.f32 0.0625, %v6489_v57  ;;  %v2782_v53 = vmul.f32 0.0625, %v6491_v39  ;;  %v2798_v9 = vmul.f32 0.0625, %v6493_v19  ;;  %v4971_v8 = vld [vmem:[%s8062_s1 + $0x12c] sm:$0xf] }
 0x1bb   : > { %v2654_v31 = vadd.f32 %v2653_v32, %v2652_v40  ;;  %v2814_v44 = vmul.f32 0.0625, %v6495_v35  ;;  %v2830_v10 = vmul.f32 0.0625, %v6497_v28  ;;  %v2846_v2 = vmul.f32 0.0625, %v1870_v42  ;;  %v4847_v40 = vld [vmem:[%s8062_s1 + $0x168] sm:$0xf0] }
 0x1bc   : > { %v2862_v63 = vmul.f32 0.0625, %v1982_v15  ;;  %v2878_v7 = vmul.f32 0.0625, %v2094_v50  ;;  %v2894_v36 = vmul.f32 0.0625, %v2206_v34  ;;  %v2910_v17 = vmul.f32 0.0625, %v2318_v24  ;;  %v6578_v18 = vld [vmem:[%s8062_s1 + $0xdc] sm:$0xf0] }
 0x1bd   : > { %v2926_v27 = vmul.f32 0.0625, %v2430_v33  ;;  %v2942_v16 = vmul.f32 0.0625, %v2542_v55  ;;  %v2958_v13 = vmul.f32 0.0625, %v2654_v31  ;;  %v2974_v49 = vpack.c.bf16 %v2718_v14, %v2718_v14  ;;  %v6583_v32 = vld [vmem:[%s8062_s1 + $0xa4] sm:$0xf] }
 0x1be   : > { %v2990_v29 = vpack.c.bf16 %v2734_v46, %v2734_v46  ;;  %v3006_v4 = vpack.c.bf16 %v2750_v30, %v2750_v30  ;;  %v3022_v57 = vpack.c.bf16 %v2766_v3, %v2766_v3  ;;  %v3038_v62 = vpack.c.bf16 %v2782_v53, %v2782_v53  ;;  %v6588_v50 = vld [vmem:[%s8062_s1 + $0xe0] sm:$0xf0]  ;;  %v6598_v14 = vld [vmem:[%s8062_s1 + $0xa8] sm:$0xf]  ;;  %v6608_v30 = vld [vmem:[%s8062_s1 + $0xac] sm:$0xf] }
 0x1bf   : > { %v3054_v39 = vpack.c.bf16 %v2798_v9, %v2798_v9  ;;  %v3070_v37 = vpack.c.bf16 %v2814_v44, %v2814_v44  ;;  %v3086_v19 = vpack.c.bf16 %v2830_v10, %v2830_v10  ;;  %v3102_v6 = vpack.c.bf16 %v2846_v2, %v2846_v2  ;;  %v6591_v34 = vld [vmem:[%s5250_s5 + $0x60] sm:$0xff]  ;;  %v6603_v46 = vld [vmem:[%s8062_s1 + $0xe4] sm:$0xf0]  ;;  %v6613_v3 = vld [vmem:[%s8062_s1 + $0xe8] sm:$0xf0] }
 0x1c0   : > { %v3118_v35 = vpack.c.bf16 %v2862_v63, %v2862_v63  ;;  %v3134_v12 = vpack.c.bf16 %v2878_v7, %v2878_v7  ;;  %v3150_v28 = vpack.c.bf16 %v2894_v36, %v2894_v36  ;;  %v3166_v0 = vpack.c.bf16 %v2910_v17, %v2910_v17  ;;  %v6620_v2 = vld [vmem:[%s8062_s1 + $0x20] sm:$0xf]  ;;  %v6630_v7 = vld [vmem:[%s8062_s1 + $0x24] sm:$0xf] }
 0x1c1   : > { %v3182_v61 = vpack.c.bf16 %v2926_v27, %v2926_v27  ;;  %v3198_v56 = vpack.c.bf16 %v2942_v16, %v2942_v16  ;;  %v3214_v45 = vpack.c.bf16 %v2958_v13, %v2958_v13  ;;  %v3550_v5 = vunpack.c.l.b16 %v2974_v49  ;;  %v6625_v63 = vld [vmem:[%s8062_s1 + $0x5c] sm:$0xf0]  ;;  %v6635_v36 = vld [vmem:[%s8062_s1 + $0x60] sm:$0xf0]  ;;  %v6642_v49 = vld [vmem:[%s8062_s1 + $0x28] sm:$0xf] }
 0x1c2   : > { %v3566_v52 = vunpack.c.l.b16 %v2990_v29  ;;  %v3582_v1 = vunpack.c.l.b16 %v3006_v4  ;;  %v3598_v21 = vunpack.c.l.b16 %v3022_v57  ;;  %v3614_v47 = vunpack.c.l.b16 %v3038_v62  ;;  %v6647_v29 = vld [vmem:[%s8062_s1 + $0x64] sm:$0xf0]  ;;  %v6652_v4 = vld [vmem:[%s8062_s1 + $0x2c] sm:$0xf] }
 0x1c3   : > { %v3630_v51 = vunpack.c.l.b16 %v3054_v39  ;;  %v6557_v38 = vunpack.c.l.b16 %v3070_v37  ;;  %v6559_v58 = vunpack.c.l.b16 %v3086_v19  ;;  %v3678_v60 = vunpack.c.l.b16 %v3102_v6  ;;  %v6661_v37 = vld [vmem:[%s8062_s1 + $0x68] sm:$0xf0]  ;;  %v6666_v19 = vld [vmem:[%s8062_s1 + $0x1b0] sm:$0xf] }
 0x1c4   : > { %v3694_v20 = vunpack.c.l.b16 %v3118_v35  ;;  %v3710_v59 = vunpack.c.l.b16 %v3134_v12  ;;  %v3726_v41 = vunpack.c.l.b16 %v3150_v28  ;;  %v3742_v42 = vunpack.c.l.b16 %v3166_v0  ;;  %v6671_v6 = vld [vmem:[%s8062_s1 + $0x1ec] sm:$0xf0]  ;;  %v6674_v35 = vld [vmem:[%s5250_s5 + $0xa0] sm:$0xff] }
 0x1c5   : > { %v3758_v15 = vunpack.c.l.b16 %v3182_v61  ;;  %v3774_v24 = vunpack.c.l.b16 %v3198_v56  ;;  %v3790_v33 = vunpack.c.l.b16 %v3214_v45  ;;  %v3855_v55 = vsel %vm3799_vm0, %v3566_v52, %v3550_v5  ;;  %8575 = vst [vmem:[#allocation45_spill] sm:$0xff] %v6674_v35  ;;  %v6684_v56 = vld [vmem:[%s8062_s1 + $0x1b4] sm:$0xf]  ;;  %v6694_v5 = vld [vmem:[%s8062_s1 + $0x1b8] sm:$0xf]  ;;  %v6697_v52 = vld [vmem:[%s5250_s5 + $0xe0] sm:$0xff] }
 0x1c6   : > { %v3967_v31 = vsel %vm3799_vm0, %v3694_v20, %v3678_v60  ;;  %v3856_v53 = vsel %vm3801_vm1, %v3582_v1, %v3855_v55  ;;  %v4838_v44 = vor.u32 %v4978_v54, %v4837_v23  ;;  %v4842_v10 = vor.u32 %v4970_v11, %v4839_v26  ;;  %v6689_v45 = vld [vmem:[%s8062_s1 + $0x1f0] sm:$0xf0]  ;;  %8576 = vst [vmem:[#allocation2_spill] sm:$0xff] %v6697_v52  ;;  %v6700_v23 = vld [vmem:[%s5250_s5 + $0x120] sm:$0xff] }
 0x1c7   : > { %v3968_v9 = vsel %vm3801_vm1, %v3710_v59, %v3967_v31  ;;  %v3857_v17 = vsel %vm3803_vm2, %v3598_v21, %v3856_v53  ;;  %v4846_v16 = vor.u32 %v4979_v48, %v4845_v43  ;;  %v4850_v13 = vor.u32 %v4971_v8, %v4847_v40  ;;  %8577 = vst [vmem:[#allocation5_spill] sm:$0xff] %v6700_v23  ;;  %v6703_v54 = vld [vmem:[%s5250_s5 + $0x160] sm:$0xff]  ;;  %v6719_v43 = vld [vmem:[%s8062_s1 + $0x1f4] sm:$0xf0]  ;;  %v6724_v48 = vld [vmem:[%s8062_s1 + $0x1bc] sm:$0xf] }
 0x1c8   : > { %v3969_v27 = vsel %vm3803_vm2, %v3726_v41, %v3968_v9  ;;  %v3858_v57 = vsel %vm3805_vm3, %v3614_v47, %v3857_v17  ;;  %4499 = vmatpush.bf16.xpose.msra.mxu0 %v4838_v44  ;;  %4513 = vmatpush.bf16.xpose.msra.mxu1 %v4842_v10  ;;  %v4774_v39 = vor.u32 %v6578_v18, %v6570_v25  ;;  %v6706_v11 = vld [vmem:[%s5250_s5 + $0x1a0] sm:$0xff]  ;;  %v447_v17 = vunpack.c.l.bf16 %v6674_v35 }
 0x1c9   : > { %v3970_v62 = vsel %vm3805_vm3, %v3742_v42, %v3969_v27  ;;  %v3859_v28 = vsel %vm3807_vm4, %v3630_v51, %v3858_v57  ;;  %4527 = vmatpush.bf16.xpose.msra.mxu2 %v4846_v16  ;;  %4541 = vmatpush.bf16.xpose.msra.mxu3 %v4850_v13  ;;  %v4778_v61 = vor.u32 %v6583_v32, %v6588_v50  ;;  %v6732_v60 = vld [vmem:[%s5250_s5 + $0x1e0] sm:$0xff]  ;;  %v463_v57 = vunpack.c.l.bf16 %v6697_v52 }
 0x1ca   : > { %v3971_v0 = vsel %vm3807_vm4, %v3758_v15, %v3970_v62  ;;  %8578 = vst [vmem:[#allocation6_spill] sm:$0xff] %v6703_v54  ;;  %v3860_v21 = vsel %vm3809_vm5, %v6557_v38, %v3859_v28  ;;  %v4782_v51 = vor.u32 %v6603_v46, %v6598_v14  ;;  %v4786_v26 = vor.u32 %v6608_v30, %v6613_v3  ;;  %v6729_v38 = vld [vmem:[%s8062_s1 + $0x1f8] sm:$0xf0]  ;;  %v6735_v20 = vld [vmem:[%s5250_s5 + $0x220] sm:$0xff] }
 0x1cb   : > { %8579 = vst [vmem:[#allocation3_spill] sm:$0xff] %v6706_v11  ;;  %v3972_v47 = vsel %vm3809_vm5, %v3774_v24, %v3971_v0  ;;  %v3861_v8 = vsel %vm3811_vm6, %v6559_v58, %v3860_v21  ;;  %v6745_v42 = vld [vmem:[%s5250_s5 + $0x260] sm:$0xff]  ;;  %v479_v62 = vunpack.c.l.bf16 %v6700_v23  ;;  %v495_v28 = vunpack.c.l.bf16 %v6703_v54 }
 0x1cc   : > { %8580 = vst [vmem:[#allocation4_spill] sm:$0xff] %v6732_v60  ;;  %v3973_v40 = vsel %vm3811_vm6, %v3790_v33, %v3972_v47  ;;  %v6748_v15 = vld [vmem:[%s5250_s5 + $0x2a0] sm:$0xff]  ;;  %v511_v0 = vunpack.c.l.bf16 %v6706_v11  ;;  %v559_v53 = vunpack.c.l.bf16 %v6745_v42 }
 0x1cd   : > { %8581 = vst [vmem:[#allocation7_spill] sm:$0xff] %v6735_v20  ;;  %v6751_v32 = vld [vmem:[%s5250_s5 + $0x2e0] sm:$0xff]  ;;  %v4037_v50 = vpack.c.b16 %v3973_v40, %v3861_v8  ;;  %v527_v40 = vunpack.c.l.bf16 %v6732_v60  ;;  %v575_v3 = vunpack.c.l.bf16 %v6748_v15  ;;  %v1087_v60 = vadd.f32 %v463_v57, %v447_v17 }
 0x1ce   : > { %8582 = vst [vmem:[#allocation8_spill] sm:$0xff] %v6745_v42  ;;  %v6760_v55 = vld [vmem:[%s5250_s5 + $0x320] sm:$0xff]  ;;  %v591_v58 = vunpack.c.l.bf16 %v6751_v32  ;;  %v8594_v42 = vunpack.c.l.bf16 %v6591_v34  ;;  %v1199_v12 = vadd.f32 %v495_v28, %v479_v62 }
 0x1cf   : > { %8583 = vst [vmem:[#allocation9_spill] sm:$0xff] %v6748_v15  ;;  %v6763_v31 = vld [vmem:[%s5250_s5 + $0x360] sm:$0xff]  ;;  %4488 = vmatmul.bf16.vlgmr.msrb.gmra.mxu3 %v4037_v50  ;;  %v543_v50 = vunpack.c.l.bf16 %v6735_v20  ;;  %v607_v41 = vunpack.c.l.bf16 %v6760_v55  ;;  %v1311_v11 = vadd.f32 %v527_v40, %v511_v0  ;;  %v1088_v52 = vrot.slane %v1087_v60, 4 }
 0x1d0   : > { %8584 = vst [vmem:[#allocation10_spill] sm:$0xff] %v6751_v32  ;;  %v6766_v14 = vld [vmem:[%s5250_s5 + $0x420] sm:$0xff]  ;;  %4500 = vmatpush.bf16.xpose.msra.mxu0 %v4774_v39  ;;  %4514 = vmatpush.bf16.xpose.msra.mxu1 %v4778_v61  ;;  %v623_v59 = vunpack.c.l.bf16 %v6763_v31  ;;  %v1535_v54 = vadd.f32 %v591_v58, %v575_v3  ;;  %v1200_v20 = vrot.slane %v1199_v12, 4 }
 0x1d1   : > { %8585 = vst [vmem:[#allocation11_spill] sm:$0xff] %v6760_v55  ;;  %v6769_v46 = vld [vmem:[%s5250_s5 + $0x460] sm:$0xff]  ;;  %4528 = vmatpush.bf16.xpose.msra.mxu2 %v4782_v51  ;;  %4542 = vmatpush.bf16.xpose.msra.mxu3 %v4786_v26  ;;  %v1423_v32 = vadd.f32 %v559_v53, %v543_v50  ;;  %v8595_v26 = vor.u32 %v6625_v63, %v6620_v2  ;;  %v1312_v34 = vrot.slane %v1311_v11, 4 }
 0x1d2   : > { %8586 = vst [vmem:[#allocation12_spill] sm:$0xff] %v6763_v31  ;;  %v6778_v9 = vld [vmem:[%s5250_s5 + $0x3a0] sm:$0xff]  ;;  %v8593_v31 = vunpack.c.l.bf16 %v6573_v22  ;;  %v1647_v55 = vadd.f32 %v623_v59, %v607_v41  ;;  %v8596_v22 = vor.u32 %v6630_v7, %v6635_v36  ;;  %v8597_v59 = vor.u32 %v6647_v29, %v6642_v49  ;;  %v7063_v29 = vld [vmem:[%s5250_s5 + $0x7e8] sm:$0xff] }
 0x1d3   : > { %8587 = vst [vmem:[#allocation13_spill] sm:$0xff] %v6778_v9  ;;  %v6781_v44 = vld [vmem:[%s5250_s5 + $0x3e0] sm:$0xff]  ;;  %v639_v1 = vunpack.c.l.bf16 %v6778_v9  ;;  %v6863_v9 = vld [vmem:[%s5250_s5 + $0x28] sm:$0xff]  ;;  %v1089_v58 = vadd.f32 %v1088_v52, %v1087_v60  ;;  %v1201_v2 = vadd.f32 %v1200_v20, %v1199_v12  ;;  %v8599_v7 = vor.u32 %v6671_v6, %v6666_v19 }
 0x1d4   : > { %8588 = vst [vmem:[#allocation14_spill] sm:$0xff] %v6781_v44  ;;  %v6784_v10 = vld [vmem:[%s5250_s5 + $0x4a0] sm:$0xff]  ;;  %v655_v61 = vunpack.c.l.bf16 %v6781_v44  ;;  %v975_v44 = vadd.f32 %v8594_v42, %v8593_v31  ;;  %v1424_v42 = vrot.slane %v1423_v32, 4  ;;  %v1536_v31 = vrot.slane %v1535_v54, 4 }
 0x1d5   : > { %v6788_v27 = vld [vmem:[%s5250_s5 + $0x4e0] sm:$0xff]  ;;  %v1648_v53 = vrot.slane %v1647_v55, 4  ;;  %v8600_v36 = vor.u32 %v6684_v56, %v6689_v45  ;;  %v1313_v3 = vadd.f32 %v1312_v34, %v1311_v11  ;;  %v1090_v19 = vrot.slane %v1089_v58, 2  ;;  %8640 = vst [vmem:[#allocation41_spill] sm:$0xff] %v7063_v29 }
 0x1d6   : > { %v6791_v16 = vld [vmem:[%s5250_s5 + $0x520] sm:$0xff]  ;;  %v976_v23 = vrot.slane %v975_v44, 4  ;;  %v1759_v35 = vadd.f32 %v655_v61, %v639_v1  ;;  %v8598_v1 = vor.u32 %v6652_v4, %v6661_v37  ;;  %v1425_v17 = vadd.f32 %v1424_v42, %v1423_v32 }
 0x1d7   : > { %v6794_v13 = vld [vmem:[%s5250_s5 + $0x560] sm:$0xff]  ;;  %v1537_v49 = vadd.f32 %v1536_v31, %v1535_v54  ;;  %v8601_v4 = vor.u32 %v6719_v43, %v6694_v5  ;;  %v8602_v37 = vor.u32 %v6724_v48, %v6729_v38  ;;  %v1202_v6 = vrot.slane %v1201_v2, 2 }
 0x1d8   : > { %v6801_v21 = vld [vmem:[%s5250_s5 + $0x5a0] sm:$0xff]  ;;  %4501 = vmatpush.bf16.xpose.msra.mxu0 %v8595_v26  ;;  %4515 = vmatpush.bf16.xpose.msra.mxu1 %v8596_v22  ;;  %v977_v41 = vadd.f32 %v976_v23, %v975_v44  ;;  %v1760_v63 = vrot.slane %v1759_v35, 4  ;;  %v1649_v52 = vadd.f32 %v1648_v53, %v1647_v55  ;;  %v1314_v23 = vrot.slane %v1313_v3, 2 }
 0x1d9   : > { %v6804_v47 = vld [vmem:[%s5250_s5 + $0x5e0] sm:$0xff]  ;;  %4529 = vmatpush.bf16.xpose.msra.mxu2 %v8597_v59  ;;  %4543 = vmatpush.bf16.xpose.msra.mxu3 %v8598_v1  ;;  %v1426_v56 = vrot.slane %v1425_v17, 2  ;;  %v1538_v45 = vrot.slane %v1537_v49, 2  ;;  %v1091_v54 = vadd.f32 %v1090_v19, %v1089_v58  ;;  %v1203_v20 = vadd.f32 %v1202_v6, %v1201_v2 }
 0x1da   : > { %v6807_v8 = vld [vmem:[%s5250_s5 + $0x620] sm:$0xff]  ;;  %v978_v12 = vrot.slane %v977_v41, 2  ;;  %v1761_v11 = vadd.f32 %v1760_v63, %v1759_v35  ;;  %v1650_v32 = vrot.slane %v1649_v52, 2  ;;  %v1315_v44 = vadd.f32 %v1314_v23, %v1313_v3 }
 0x1db   : > { %v6817_v30 = vld [vmem:[%s5250_s5 + $0x660] sm:$0xff]  ;;  %v1427_v57 = vadd.f32 %v1426_v56, %v1425_v17  ;;  %v1539_v5 = vadd.f32 %v1538_v45, %v1537_v49  ;;  %v1092_v28 = vrot.slane %v1091_v54, 1  ;;  %v1204_v48 = vrot.slane %v1203_v20, 1 }
 0x1dc   : > { %v6820_v33 = vld [vmem:[%s5250_s5 + $0x6a0] sm:$0xff]  ;;  %v979_v60 = vadd.f32 %v978_v12, %v977_v41  ;;  %v1762_v43 = vrot.slane %v1761_v11, 2  ;;  %v1651_v38 = vadd.f32 %v1650_v32, %v1649_v52  ;;  %v1316_v0 = vrot.slane %v1315_v44, 1 }
 0x1dd   : > { %v6823_v24 = vld [vmem:[%s5250_s5 + $0x6e0] sm:$0xff]  ;;  %v1428_v40 = vrot.slane %v1427_v57, 1  ;;  %v1540_v50 = vrot.slane %v1539_v5, 1  ;;  %v6892_v26 = vadd.f32 %v1092_v28, %v1091_v54  ;;  %v6894_v35 = vadd.f32 %v1204_v48, %v1203_v20 }
 0x1de   : > { %v6830_v25 = vld [vmem:[%s5250_s5 + $0x720] sm:$0xff]  ;;  %v980_v62 = vrot.slane %v979_v60, 1  ;;  %v1763_v55 = vadd.f32 %v1762_v43, %v1761_v11  ;;  %v1652_v22 = vrot.slane %v1651_v38, 1  ;;  %v6896_v34 = vadd.f32 %v1316_v0, %v1315_v44 }
 0x1df   : > { %8589 = vst [vmem:[#allocation15_spill] sm:$0xff] %v6830_v25  ;;  %v6833_v18 = vld [vmem:[%s5250_s5 + $0x760] sm:$0xff]  ;;  %v6898_v42 = vadd.f32 %v1428_v40, %v1427_v57  ;;  %v6900_v31 = vadd.f32 %v1540_v50, %v1539_v5  ;;  %v8603_v1 = vunpack.c.l.bf16 %v6766_v14  ;;  %v8604_v41 = vunpack.c.l.bf16 %v6769_v46 }
 0x1e0   : > { %8590 = vst [vmem:[#allocation16_spill] sm:$0xff] %v6833_v18  ;;  %v6836_v39 = vld [vmem:[%s5250_s5 + $0x7a0] sm:$0xff]  ;;  %4554 = vmatpush.bf16.xpose.msrb.mxu0 %v8599_v7  ;;  %4568 = vmatpush.bf16.xpose.msrb.mxu1 %v8600_v36  ;;  %v6890_v61 = vadd.f32 %v980_v62, %v979_v60  ;;  %v1764_v53 = vrot.slane %v1763_v55, 1  ;;  %v6902_v59 = vadd.f32 %v1652_v22, %v1651_v38  ;;  %v8605_v2 = vunpack.c.l.bf16 %v6784_v10 }
 0x1e1   : > { %8591 = vst [vmem:[#allocation17_spill] sm:$0xff] %v6836_v39  ;;  %v6843_v15 = vld [vmem:[%s5250_s5 + $0x7e0] sm:$0xff]  ;;  %v895_v51 = vunpack.c.l.bf16 %v6836_v39  ;;  %4582 = vmatpush.bf16.xpose.msrb.mxu2 %v8601_v4  ;;  %4596 = vmatpush.bf16.xpose.msrb.mxu3 %v8602_v37  ;;  %v1871_v58 = vadd.f32 %v8604_v41, %v8603_v1  ;;  %v8606_v63 = vunpack.c.l.bf16 %v6788_v27  ;;  %v8607_v36 = vunpack.c.l.bf16 %v6791_v16 }
 0x1e2   : > { %8592 = vst [vmem:[#allocation18_spill] sm:$0xff] %v6843_v15  ;;  %v8608_v3 = vunpack.c.l.bf16 %v6794_v13  ;;  %v1765_v49 = vadd.f32 %v1764_v53, %v1763_v55  ;;  %v8609_v4 = vunpack.c.l.bf16 %v6801_v21  ;;  %v8610_v37 = vunpack.c.l.bf16 %v6804_v47 }
 0x1e3   : > { %v1983_v7 = vadd.f32 %v8606_v63, %v8605_v2  ;;  %v8611_v19 = vunpack.c.l.bf16 %v6807_v8  ;;  %v8612_v6 = vunpack.c.l.bf16 %v6817_v30  ;;  %v8613_v23 = vunpack.c.l.bf16 %v6820_v33 }
 0x1e4   : > { %v2095_v17 = vadd.f32 %v8608_v3, %v8607_v36  ;;  %v2207_v12 = vadd.f32 %v8610_v37, %v8609_v4  ;;  %v8614_v56 = vunpack.c.l.bf16 %v6823_v24  ;;  %v1872_v11 = vrot.slane %v1871_v58, 4 }
 0x1e5   : > { %v2319_v52 = vadd.f32 %v8612_v6, %v8611_v19  ;;  %v1984_v60 = vrot.slane %v1983_v7, 4  ;;  %v8615_v20 = vunpack.c.l.bf16 %v6830_v25  ;;  %v8616_v32 = vunpack.c.l.bf16 %v6833_v18 }
 0x1e6   : > { %v2431_v45 = vadd.f32 %v8614_v56, %v8613_v23  ;;  %v2096_v54 = vrot.slane %v2095_v17, 4  ;;  %v2208_v57 = vrot.slane %v2207_v12, 4  ;;  %v8617_v62 = vunpack.c.l.bf16 %v6843_v15 }
 0x1e7   : > { %v2543_v44 = vadd.f32 %v8616_v32, %v8615_v20  ;;  %v2320_v5 = vrot.slane %v2319_v52, 4  ;;  %v1873_v48 = vadd.f32 %v1872_v11, %v1871_v58  ;;  %v1985_v38 = vadd.f32 %v1984_v60, %v1983_v7 }
 0x1e8   : > { %v2432_v43 = vrot.slane %v2431_v45, 4  ;;  %v2655_v28 = vadd.f32 %v8617_v62, %v895_v51  ;;  %v2097_v0 = vadd.f32 %v2096_v54, %v2095_v17  ;;  %v2209_v50 = vadd.f32 %v2208_v57, %v2207_v12 }
 0x1e9   : > { %v2544_v40 = vrot.slane %v2543_v44, 4  ;;  %v2321_v55 = vadd.f32 %v2320_v5, %v2319_v52  ;;  %v1874_v1 = vrot.slane %v1873_v48, 2  ;;  %v1986_v41 = vrot.slane %v1985_v38, 2 }
 0x1ea   : > { %v2433_v22 = vadd.f32 %v2432_v43, %v2431_v45  ;;  %v2656_v53 = vrot.slane %v2655_v28, 4  ;;  %v2098_v2 = vrot.slane %v2097_v0, 2  ;;  %v2210_v36 = vrot.slane %v2209_v50, 2 }
 0x1eb   : > { %v2545_v63 = vadd.f32 %v2544_v40, %v2543_v44  ;;  %v2322_v3 = vrot.slane %v2321_v55, 2  ;;  %v1875_v19 = vadd.f32 %v1874_v1, %v1873_v48  ;;  %v1987_v6 = vadd.f32 %v1986_v41, %v1985_v38 }
 0x1ec   : > { %v2434_v4 = vrot.slane %v2433_v22, 2  ;;  %v2657_v37 = vadd.f32 %v2656_v53, %v2655_v28  ;;  %v2099_v23 = vadd.f32 %v2098_v2, %v2097_v0  ;;  %v2211_v58 = vadd.f32 %v2210_v36, %v2209_v50 }
 0x1ed   : > { %v2546_v51 = vrot.slane %v2545_v63, 2  ;;  %v2323_v7 = vadd.f32 %v2322_v3, %v2321_v55  ;;  %v1876_v12 = vrot.slane %v1875_v19, 1  ;;  %v1988_v52 = vrot.slane %v1987_v6, 1 }
 0x1ee   : > { %v2435_v17 = vadd.f32 %v2434_v4, %v2433_v22  ;;  %v2658_v56 = vrot.slane %v2657_v37, 2  ;;  %v2100_v45 = vrot.slane %v2099_v23, 1  ;;  %v2212_v60 = vrot.slane %v2211_v58, 1 }
 0x1ef   : > { %v2547_v11 = vadd.f32 %v2546_v51, %v2545_v63  ;;  %v2324_v54 = vrot.slane %v2323_v7, 1  ;;  %v1877_v44 = vadd.f32 %v1876_v12, %v1875_v19  ;;  %v1989_v57 = vadd.f32 %v1988_v52, %v1987_v6 }
 0x1f0   : > { %v2436_v20 = vrot.slane %v2435_v17, 1  ;;  %v2659_v32 = vadd.f32 %v2658_v56, %v2657_v37  ;;  %v2101_v5 = vadd.f32 %v2100_v45, %v2099_v23  ;;  %v2213_v62 = vadd.f32 %v2212_v60, %v2211_v58 }
 0x1f1   : > { %v2548_v43 = vrot.slane %v2547_v11, 1  ;;  %v2325_v28 = vadd.f32 %v2324_v54, %v2323_v7  ;;  %v2719_v40 = vmul.f32 0.0625, %v6890_v61  ;;  %v2735_v50 = vmul.f32 0.0625, %v6892_v26 }
 0x1f2   : > { %v2437_v48 = vadd.f32 %v2436_v20, %v2435_v17  ;;  %v2660_v38 = vrot.slane %v2659_v32, 1  ;;  %v2751_v55 = vmul.f32 0.0625, %v6894_v35  ;;  %v2767_v53 = vmul.f32 0.0625, %v6896_v34 }
 0x1f3   : > { %v2549_v0 = vadd.f32 %v2548_v43, %v2547_v11  ;;  %v2783_v1 = vmul.f32 0.0625, %v6898_v42  ;;  %v2799_v41 = vmul.f32 0.0625, %v6900_v31  ;;  %v2815_v2 = vmul.f32 0.0625, %v6902_v59 }
 0x1f4   : > { %v2661_v22 = vadd.f32 %v2660_v38, %v2659_v32  ;;  %v2831_v63 = vmul.f32 0.0625, %v1765_v49  ;;  %v2847_v36 = vmul.f32 0.0625, %v1877_v44  ;;  %v2863_v3 = vmul.f32 0.0625, %v1989_v57  ;;  %v6947_v38 = vld [vmem:[%s5250_s5 + $0xa8] sm:$0xff] }
 0x1f5   : > { %v2879_v4 = vmul.f32 0.0625, %v2101_v5  ;;  %v2895_v37 = vmul.f32 0.0625, %v2213_v62  ;;  %v2911_v19 = vmul.f32 0.0625, %v2325_v28  ;;  %v2927_v61 = vmul.f32 0.0625, %v2437_v48  ;;  %v6944_v48 = vld [vmem:[%s5250_s5 + $0x68] sm:$0xff]  ;;  %8619 = vst [vmem:[#allocation20_spill] sm:$0xff] %v6947_v38 }
 0x1f6   : > { %v2943_v6 = vmul.f32 0.0625, %v2549_v0  ;;  %v2959_v26 = vmul.f32 0.0625, %v2661_v22  ;;  %v2975_v23 = vpack.c.bf16 %v2719_v40, %v2719_v40  ;;  %v2991_v35 = vpack.c.bf16 %v2735_v50, %v2735_v50  ;;  %8618 = vst [vmem:[#allocation19_spill] sm:$0xff] %v6944_v48  ;;  %v6950_v22 = vld [vmem:[%s5250_s5 + $0xe8] sm:$0xff] }
 0x1f7   : > { %v3007_v51 = vpack.c.bf16 %v2751_v55, %v2751_v55  ;;  %v3023_v58 = vpack.c.bf16 %v2767_v53, %v2767_v53  ;;  %v3039_v34 = vpack.c.bf16 %v2783_v1, %v2783_v1  ;;  %v3055_v7 = vpack.c.bf16 %v2799_v41, %v2799_v41  ;;  %8620 = vst [vmem:[#allocation21_spill] sm:$0xff] %v6950_v22  ;;  %v6953_v53 = vld [vmem:[%s5250_s5 + $0x128] sm:$0xff] }
 0x1f8   : > { %v3071_v42 = vpack.c.bf16 %v2815_v2, %v2815_v2  ;;  %v3087_v17 = vpack.c.bf16 %v2831_v63, %v2831_v63  ;;  %v3103_v31 = vpack.c.bf16 %v2847_v36, %v2847_v36  ;;  %v3119_v56 = vpack.c.bf16 %v2863_v3, %v2863_v3  ;;  %8621 = vst [vmem:[#allocation22_spill] sm:$0xff] %v6953_v53  ;;  %v6958_v36 = vld [vmem:[%s5250_s5 + $0x168] sm:$0xff] }
 0x1f9   : > { %v3135_v59 = vpack.c.bf16 %v2879_v4, %v2879_v4  ;;  %v3151_v49 = vpack.c.bf16 %v2895_v37, %v2895_v37  ;;  %v3167_v12 = vpack.c.bf16 %v2911_v19, %v2911_v19  ;;  %v3183_v52 = vpack.c.bf16 %v2927_v61, %v2927_v61  ;;  %8622 = vst [vmem:[#allocation23_spill] sm:$0xff] %v6958_v36  ;;  %v6961_v3 = vld [vmem:[%s5250_s5 + $0x1a8] sm:$0xff] }
 0x1fa   : > { %v3199_v45 = vpack.c.bf16 %v2943_v6, %v2943_v6  ;;  %v3215_v11 = vpack.c.bf16 %v2959_v26, %v2959_v26  ;;  %v3551_v60 = vunpack.c.l.b16 %v2975_v23  ;;  %v3567_v54 = vunpack.c.l.b16 %v2991_v35  ;;  %8623 = vst [vmem:[#allocation24_spill] sm:$0xff] %v6961_v3  ;;  %v6966_v19 = vld [vmem:[%s5250_s5 + $0x1e8] sm:$0xff] }
 0x1fb   : > { %v3583_v20 = vunpack.c.l.b16 %v3007_v51  ;;  %v3599_v32 = vunpack.c.l.b16 %v3023_v58  ;;  %v3615_v44 = vunpack.c.l.b16 %v3039_v34  ;;  %v3631_v57 = vunpack.c.l.b16 %v3055_v7  ;;  %8624 = vst [vmem:[#allocation25_spill] sm:$0xff] %v6966_v19  ;;  %v6969_v61 = vld [vmem:[%s5250_s5 + $0x228] sm:$0xff] }
 0x1fc   : > { %v3647_v5 = vunpack.c.l.b16 %v3071_v42  ;;  %v3663_v43 = vunpack.c.l.b16 %v3087_v17  ;;  %v3679_v62 = vunpack.c.l.b16 %v3103_v31  ;;  %v3695_v28 = vunpack.c.l.b16 %v3119_v56  ;;  %8625 = vst [vmem:[#allocation26_spill] sm:$0xff] %v6969_v61  ;;  %v6976_v51 = vld [vmem:[%s5250_s5 + $0x268] sm:$0xff] }
 0x1fd   : > { %v3711_v0 = vunpack.c.l.b16 %v3135_v59  ;;  %v3727_v40 = vunpack.c.l.b16 %v3151_v49  ;;  %v3743_v50 = vunpack.c.l.b16 %v3167_v12  ;;  %v3759_v55 = vunpack.c.l.b16 %v3183_v52  ;;  %8626 = vst [vmem:[#allocation27_spill] sm:$0xff] %v6976_v51  ;;  %v6979_v58 = vld [vmem:[%s5250_s5 + $0x2a8] sm:$0xff] }
 0x1fe   : > { %v3775_v1 = vunpack.c.l.b16 %v3199_v45  ;;  %v3791_v41 = vunpack.c.l.b16 %v3215_v11  ;;  %v3862_v2 = vsel %vm3799_vm0, %v3567_v54, %v3551_v60  ;;  %v3974_v63 = vsel %vm3799_vm0, %v3695_v28, %v3679_v62  ;;  %8627 = vst [vmem:[#allocation28_spill] sm:$0xff] %v6979_v58  ;;  %v6982_v34 = vld [vmem:[%s5250_s5 + $0x2e8] sm:$0xff] }
 0x1ff   : > { %v3863_v4 = vsel %vm3801_vm1, %v3583_v20, %v3862_v2  ;;  %v3975_v37 = vsel %vm3801_vm1, %v3711_v0, %v3974_v63  ;;  %8628 = vst [vmem:[#allocation29_spill] sm:$0xff] %v6982_v34  ;;  %v465_v7 = vunpack.c.l.bf16 %v6950_v22  ;;  %v481_v42 = vunpack.c.l.bf16 %v6953_v53  ;;  %v6989_v56 = vld [vmem:[%s5250_s5 + $0x328] sm:$0xff] }
 0x200   : > { %v3864_v23 = vsel %vm3803_vm2, %v3599_v32, %v3863_v4  ;;  %v3976_v35 = vsel %vm3803_vm2, %v3727_v40, %v3975_v37  ;;  %8629 = vst [vmem:[#allocation30_spill] sm:$0xff] %v6989_v56  ;;  %v6992_v59 = vld [vmem:[%s5250_s5 + $0x368] sm:$0xff]  ;;  %v497_v45 = vunpack.c.l.bf16 %v6958_v36  ;;  %v513_v11 = vunpack.c.l.bf16 %v6961_v3 }
 0x201   : > { %v3865_v17 = vsel %vm3805_vm3, %v3615_v44, %v3864_v23  ;;  %v3977_v31 = vsel %vm3805_vm3, %v3743_v50, %v3976_v35  ;;  %8630 = vst [vmem:[#allocation31_spill] sm:$0xff] %v6992_v59  ;;  %v6995_v49 = vld [vmem:[%s5250_s5 + $0x428] sm:$0xff]  ;;  %v529_v62 = vunpack.c.l.bf16 %v6966_v19  ;;  %v545_v28 = vunpack.c.l.bf16 %v6969_v61 }
 0x202   : > { %v6998_v12 = vld [vmem:[%s5250_s5 + $0x468] sm:$0xff]  ;;  %v3866_v60 = vsel %vm3807_vm4, %v3631_v57, %v3865_v17  ;;  %v3978_v54 = vsel %vm3807_vm4, %v3759_v55, %v3977_v31  ;;  %v561_v2 = vunpack.c.l.bf16 %v6976_v51  ;;  %v577_v63 = vunpack.c.l.bf16 %v6979_v58 }
 0x203   : > { %v7001_v52 = vld [vmem:[%s5250_s5 + $0x4a8] sm:$0xff]  ;;  %v3867_v0 = vsel %vm3809_vm5, %v3647_v5, %v3866_v60  ;;  %v3979_v57 = vsel %vm3809_vm5, %v3775_v1, %v3978_v54  ;;  %v593_v35 = vunpack.c.l.bf16 %v6982_v34  ;;  %v609_v17 = vunpack.c.l.bf16 %v6989_v56 }
 0x204   : > { %v7008_v20 = vld [vmem:[%s5250_s5 + $0x3a8] sm:$0xff]  ;;  %v3868_v4 = vsel %vm3811_vm6, %v3663_v43, %v3867_v0  ;;  %v3980_v5 = vsel %vm3811_vm6, %v3791_v41, %v3979_v57  ;;  %v625_v43 = vunpack.c.l.bf16 %v6992_v59  ;;  %v8642_v58 = vunpack.c.l.bf16 %v6944_v48 }
 0x205   : > { %8631 = vst [vmem:[#allocation32_spill] sm:$0xff] %v7008_v20  ;;  %v7011_v32 = vld [vmem:[%s5250_s5 + $0x3e8] sm:$0xff]  ;;  %v4038_v31 = vpack.c.b16 %v3980_v5, %v3868_v4  ;;  %v641_v41 = vunpack.c.l.bf16 %v7008_v20  ;;  %v8643_v51 = vunpack.c.l.bf16 %v6947_v38  ;;  %v1213_v19 = vadd.f32 %v497_v45, %v481_v42 }
 0x206   : > { %8632 = vst [vmem:[#allocation33_spill] sm:$0xff] %v7011_v32  ;;  %v7014_v44 = vld [vmem:[%s5250_s5 + $0x4e8] sm:$0xff]  ;;  %v657_v0 = vunpack.c.l.bf16 %v7011_v32  ;;  %v8641_v32 = vunpack.c.l.bf16 %v6863_v9  ;;  %v1325_v4 = vadd.f32 %v529_v62, %v513_v11  ;;  %v1437_v3 = vadd.f32 %v561_v2, %v545_v28 }
 0x207   : > { %v7021_v40 = vld [vmem:[%s5250_s5 + $0x528] sm:$0xff]  ;;  %4502 = vmatmul.bf16.vlgmr.msra.gmra.mxu0 %v4038_v31  ;;  %v1101_v61 = vadd.f32 %v465_v7, %v8643_v51  ;;  %v1549_v5 = vadd.f32 %v593_v35, %v577_v63  ;;  %v1661_v36 = vadd.f32 %v625_v43, %v609_v17  ;;  %v1214_v22 = vrot.slane %v1213_v19, 4 }
 0x208   : > { %v7024_v50 = vld [vmem:[%s5250_s5 + $0x568] sm:$0xff]  ;;  %v989_v34 = vadd.f32 %v8642_v58, %v8641_v32  ;;  %v1773_v56 = vadd.f32 %v657_v0, %v641_v41  ;;  %v1326_v59 = vrot.slane %v1325_v4, 4  ;;  %v1438_v15 = vrot.slane %v1437_v3, 4 }
 0x209   : > { %v7027_v55 = vld [vmem:[%s5250_s5 + $0x5a8] sm:$0xff]  ;;  %v1102_v31 = vrot.slane %v1101_v61, 4  ;;  %v1550_v20 = vrot.slane %v1549_v5, 4  ;;  %v1662_v39 = vrot.slane %v1661_v36, 4  ;;  %v1215_v58 = vadd.f32 %v1214_v22, %v1213_v19 }
 0x20a   : > { %v7034_v37 = vld [vmem:[%s5250_s5 + $0x5e8] sm:$0xff]  ;;  %v990_v53 = vrot.slane %v989_v34, 4  ;;  %v1774_v9 = vrot.slane %v1773_v56, 4  ;;  %v1327_v32 = vadd.f32 %v1326_v59, %v1325_v4  ;;  %v1439_v38 = vadd.f32 %v1438_v15, %v1437_v3 }
 0x20b   : > { %v7037_v1 = vld [vmem:[%s5250_s5 + $0x628] sm:$0xff]  ;;  %v1103_v48 = vadd.f32 %v1102_v31, %v1101_v61  ;;  %v1551_v51 = vadd.f32 %v1550_v20, %v1549_v5  ;;  %v1663_v7 = vadd.f32 %v1662_v39, %v1661_v36  ;;  %v1216_v62 = vrot.slane %v1215_v58, 2 }
 0x20c   : > { %8633 = vst [vmem:[#allocation34_spill] sm:$0xff] %v7037_v1  ;;  %v7040_v23 = vld [vmem:[%s5250_s5 + $0x668] sm:$0xff]  ;;  %v991_v18 = vadd.f32 %v990_v53, %v989_v34  ;;  %v1775_v42 = vadd.f32 %v1774_v9, %v1773_v56  ;;  %v1328_v28 = vrot.slane %v1327_v32, 2  ;;  %v1440_v2 = vrot.slane %v1439_v38, 2 }
 0x20d   : > { %8634 = vst [vmem:[#allocation35_spill] sm:$0xff] %v7040_v23  ;;  %v7045_v60 = vld [vmem:[%s5250_s5 + $0x6a8] sm:$0xff]  ;;  %v1104_v11 = vrot.slane %v1103_v48, 2  ;;  %v1552_v63 = vrot.slane %v1551_v51, 2  ;;  %v1664_v35 = vrot.slane %v1663_v7, 2  ;;  %v1217_v0 = vadd.f32 %v1216_v62, %v1215_v58 }
 0x20e   : > { %8635 = vst [vmem:[#allocation36_spill] sm:$0xff] %v7045_v60  ;;  %v7048_v54 = vld [vmem:[%s5250_s5 + $0x6e8] sm:$0xff]  ;;  %v992_v45 = vrot.slane %v991_v18, 2  ;;  %v1776_v17 = vrot.slane %v1775_v42, 2  ;;  %v1329_v25 = vadd.f32 %v1328_v28, %v1327_v32  ;;  %v1441_v53 = vadd.f32 %v1440_v2, %v1439_v38 }
 0x20f   : > { %8636 = vst [vmem:[#allocation37_spill] sm:$0xff] %v7048_v54  ;;  %v7051_v26 = vld [vmem:[%s5250_s5 + $0x728] sm:$0xff]  ;;  %v1105_v41 = vadd.f32 %v1104_v11, %v1103_v48  ;;  %v1553_v61 = vadd.f32 %v1552_v63, %v1551_v51  ;;  %v1665_v22 = vadd.f32 %v1664_v35, %v1663_v7  ;;  %v1218_v39 = vrot.slane %v1217_v0, 1 }
 0x210   : > { %8637 = vst [vmem:[#allocation38_spill] sm:$0xff] %v7051_v26  ;;  %v7057_v57 = vld [vmem:[%s5250_s5 + $0x768] sm:$0xff]  ;;  %v993_v43 = vadd.f32 %v992_v45, %v991_v18  ;;  %v1777_v19 = vadd.f32 %v1776_v17, %v1775_v42  ;;  %v1330_v36 = vrot.slane %v1329_v25, 1  ;;  %v1442_v34 = vrot.slane %v1441_v53, 1 }
 0x211   : > { %8638 = vst [vmem:[#allocation39_spill] sm:$0xff] %v7057_v57  ;;  %v7060_v6 = vld [vmem:[%s5250_s5 + $0x7a8] sm:$0xff]  ;;  %v1106_v3 = vrot.slane %v1105_v41, 1  ;;  %v1554_v56 = vrot.slane %v1553_v61, 1  ;;  %v1666_v59 = vrot.slane %v1665_v22, 1  ;;  %v7091_v18 = vadd.f32 %v1218_v39, %v1217_v0 }
 0x212   : > { %8639 = vst [vmem:[#allocation40_spill] sm:$0xff] %v7060_v6  ;;  %v994_v15 = vrot.slane %v993_v43, 1  ;;  %v1778_v20 = vrot.slane %v1777_v19, 1  ;;  %v7093_v48 = vadd.f32 %v1330_v36, %v1329_v25  ;;  %v7095_v38 = vadd.f32 %v1442_v34, %v1441_v53 }
 0x213   : > { %v7089_v5 = vadd.f32 %v1106_v3, %v1105_v41  ;;  %v7097_v31 = vadd.f32 %v1554_v56, %v1553_v61  ;;  %v7099_v9 = vadd.f32 %v1666_v59, %v1665_v22  ;;  %v8644_v32 = vunpack.c.l.bf16 %v6995_v49 }
 0x214   : > { %v7087_v4 = vadd.f32 %v994_v15, %v993_v43  ;;  %v7101_v58 = vadd.f32 %v1778_v20, %v1777_v19  ;;  %v8645_v51 = vunpack.c.l.bf16 %v6998_v12  ;;  %v8646_v42 = vunpack.c.l.bf16 %v7001_v52 }
 0x215   : > { %v8647_v45 = vunpack.c.l.bf16 %v7014_v44  ;;  %v8648_v25 = vunpack.c.l.bf16 %v7021_v40  ;;  %v8649_v62 = vunpack.c.l.bf16 %v7024_v50  ;;  %v8650_v2 = vunpack.c.l.bf16 %v7027_v55 }
 0x216   : > { %v1885_v7 = vadd.f32 %v8645_v51, %v8644_v32  ;;  %v8651_v63 = vunpack.c.l.bf16 %v7034_v37  ;;  %v8652_v17 = vunpack.c.l.bf16 %v7037_v1  ;;  %v8653_v43 = vunpack.c.l.bf16 %v7040_v23 }
 0x217   : > { %v1997_v11 = vadd.f32 %v8647_v45, %v8646_v42  ;;  %v2109_v28 = vadd.f32 %v8649_v62, %v8648_v25  ;;  %v8654_v0 = vunpack.c.l.bf16 %v7045_v60  ;;  %v8655_v53 = vunpack.c.l.bf16 %v7048_v54 }
 0x218   : > { %v2221_v35 = vadd.f32 %v8651_v63, %v8650_v2  ;;  %v2333_v41 = vadd.f32 %v8653_v43, %v8652_v17  ;;  %v8656_v22 = vunpack.c.l.bf16 %v7051_v26  ;;  %v8657_v19 = vunpack.c.l.bf16 %v7057_v57 }
 0x219   : > { %v2445_v61 = vadd.f32 %v8655_v53, %v8654_v0  ;;  %v8658_v3 = vunpack.c.l.bf16 %v7060_v6  ;;  %v8659_v39 = vunpack.c.l.bf16 %v7063_v29  ;;  %v1886_v34 = vrot.slane %v1885_v7, 4 }
 0x21a   : > { %v2557_v15 = vadd.f32 %v8657_v19, %v8656_v22  ;;  %v1998_v56 = vrot.slane %v1997_v11, 4  ;;  %v2110_v59 = vrot.slane %v2109_v28, 4  ;;  %v2222_v20 = vrot.slane %v2221_v35, 4 }
 0x21b   : > { %v2669_v36 = vadd.f32 %v8659_v39, %v8658_v3  ;;  %v2334_v32 = vrot.slane %v2333_v41, 4  ;;  %v2446_v51 = vrot.slane %v2445_v61, 4  ;;  %v1887_v25 = vadd.f32 %v1886_v34, %v1885_v7 }
 0x21c   : > { %v2558_v42 = vrot.slane %v2557_v15, 4  ;;  %v1999_v62 = vadd.f32 %v1998_v56, %v1997_v11  ;;  %v2111_v2 = vadd.f32 %v2110_v59, %v2109_v28  ;;  %v2223_v63 = vadd.f32 %v2222_v20, %v2221_v35 }
 0x21d   : > { %v2670_v45 = vrot.slane %v2669_v36, 4  ;;  %v2335_v17 = vadd.f32 %v2334_v32, %v2333_v41  ;;  %v2447_v43 = vadd.f32 %v2446_v51, %v2445_v61  ;;  %v1888_v22 = vrot.slane %v1887_v25, 2 }
 0x21e   : > { %v2559_v0 = vadd.f32 %v2558_v42, %v2557_v15  ;;  %v2000_v19 = vrot.slane %v1999_v62, 2  ;;  %v2112_v29 = vrot.slane %v2111_v2, 2  ;;  %v2224_v3 = vrot.slane %v2223_v63, 2 }
 0x21f   : > { %v2671_v53 = vadd.f32 %v2670_v45, %v2669_v36  ;;  %v2336_v39 = vrot.slane %v2335_v17, 2  ;;  %v2448_v6 = vrot.slane %v2447_v43, 2  ;;  %v1889_v54 = vadd.f32 %v1888_v22, %v1887_v25 }
 0x220   : > { %v2560_v57 = vrot.slane %v2559_v0, 2  ;;  %v2001_v60 = vadd.f32 %v2000_v19, %v1999_v62  ;;  %v2113_v23 = vadd.f32 %v2112_v29, %v2111_v2  ;;  %v2225_v1 = vadd.f32 %v2224_v3, %v2223_v63 }
 0x221   : > { %v2672_v26 = vrot.slane %v2671_v53, 2  ;;  %v2337_v7 = vadd.f32 %v2336_v39, %v2335_v17  ;;  %v2449_v11 = vadd.f32 %v2448_v6, %v2447_v43  ;;  %v1890_v41 = vrot.slane %v1889_v54, 1 }
 0x222   : > { %v2561_v28 = vadd.f32 %v2560_v57, %v2559_v0  ;;  %v2002_v61 = vrot.slane %v2001_v60, 1  ;;  %v2114_v15 = vrot.slane %v2113_v23, 1  ;;  %v2226_v36 = vrot.slane %v2225_v1, 1 }
 0x223   : > { %v2673_v35 = vadd.f32 %v2672_v26, %v2671_v53  ;;  %v2338_v34 = vrot.slane %v2337_v7, 1  ;;  %v2450_v56 = vrot.slane %v2449_v11, 1  ;;  %v1891_v32 = vadd.f32 %v1890_v41, %v1889_v54 }
 0x224   : > { %v2562_v59 = vrot.slane %v2561_v28, 1  ;;  %v2003_v51 = vadd.f32 %v2002_v61, %v2001_v60  ;;  %v2115_v42 = vadd.f32 %v2114_v15, %v2113_v23  ;;  %v2227_v45 = vadd.f32 %v2226_v36, %v2225_v1 }
 0x225   : > { %v2674_v20 = vrot.slane %v2673_v35, 1  ;;  %v2339_v25 = vadd.f32 %v2338_v34, %v2337_v7  ;;  %v2451_v62 = vadd.f32 %v2450_v56, %v2449_v11  ;;  %v2721_v6 = vmul.f32 0.0625, %v7087_v4 }
 0x226   : > { %v2563_v29 = vadd.f32 %v2562_v59, %v2561_v28  ;;  %v2737_v26 = vmul.f32 0.0625, %v7089_v5  ;;  %v2753_v57 = vmul.f32 0.0625, %v7091_v18  ;;  %v2769_v63 = vmul.f32 0.0625, %v7093_v48 }
 0x227   : > { %v2675_v2 = vadd.f32 %v2674_v20, %v2673_v35  ;;  %v2785_v17 = vmul.f32 0.0625, %v7095_v38  ;;  %v2801_v43 = vmul.f32 0.0625, %v7097_v31  ;;  %v2817_v60 = vmul.f32 0.0625, %v7099_v9 }
 0x228   : > { %v2833_v1 = vmul.f32 0.0625, %v7101_v58  ;;  %v2849_v23 = vmul.f32 0.0625, %v1891_v32  ;;  %v2865_v54 = vmul.f32 0.0625, %v2003_v51  ;;  %v2881_v0 = vmul.f32 0.0625, %v2115_v42 }
 0x229   : > { %v2897_v53 = vmul.f32 0.0625, %v2227_v45  ;;  %v2913_v22 = vmul.f32 0.0625, %v2339_v25  ;;  %v2929_v4 = vmul.f32 0.0625, %v2451_v62  ;;  %v2945_v19 = vmul.f32 0.0625, %v2563_v29 }
 0x22a   : > { %v2961_v5 = vmul.f32 0.0625, %v2675_v2  ;;  %v2977_v3 = vpack.c.bf16 %v2721_v6, %v2721_v6  ;;  %v2993_v18 = vpack.c.bf16 %v2737_v26, %v2737_v26  ;;  %v3009_v39 = vpack.c.bf16 %v2753_v57, %v2753_v57 }
 0x22b   : > { %v3025_v48 = vpack.c.bf16 %v2769_v63, %v2769_v63  ;;  %v3041_v7 = vpack.c.bf16 %v2785_v17, %v2785_v17  ;;  %v3057_v38 = vpack.c.bf16 %v2801_v43, %v2801_v43  ;;  %v3073_v11 = vpack.c.bf16 %v2817_v60, %v2817_v60  ;;  %v5007_v60 = vld [vmem:[%s5250_s5 + $0x20] sm:$0xff] }
 0x22c   : > { %v3089_v31 = vpack.c.bf16 %v2833_v1, %v2833_v1  ;;  %v3105_v28 = vpack.c.bf16 %v2849_v23, %v2849_v23  ;;  %v3121_v9 = vpack.c.bf16 %v2865_v54, %v2865_v54  ;;  %v3137_v35 = vpack.c.bf16 %v2881_v0, %v2881_v0  ;;  %v5008_v23 = vld [vmem:[%s5250_s5 + $0x60] sm:$0xff] }
 0x22d   : > { %v3153_v58 = vpack.c.bf16 %v2897_v53, %v2897_v53  ;;  %v3169_v41 = vpack.c.bf16 %v2913_v22, %v2913_v22  ;;  %v3185_v61 = vpack.c.bf16 %v2929_v4, %v2929_v4  ;;  %v3201_v15 = vpack.c.bf16 %v2945_v19, %v2945_v19  ;;  %v8660_v22 = vld [vmem:[#allocation45_spill] sm:$0xff]  ;;  %v8661_v19 = vld [vmem:[#allocation2_spill] sm:$0xff] }
 0x22e   : > { %v3217_v36 = vpack.c.bf16 %v2961_v5, %v2961_v5  ;;  %v3553_v34 = vunpack.c.l.b16 %v2977_v3  ;;  %v3569_v56 = vunpack.c.l.b16 %v2993_v18  ;;  %v3585_v59 = vunpack.c.l.b16 %v3009_v39  ;;  %v8662_v39 = vld [vmem:[#allocation5_spill] sm:$0xff] }
 0x22f   : > { %v3601_v20 = vunpack.c.l.b16 %v3025_v48  ;;  %v3617_v32 = vunpack.c.l.b16 %v3041_v7  ;;  %v3633_v51 = vunpack.c.l.b16 %v3057_v38  ;;  %v3649_v42 = vunpack.c.l.b16 %v3073_v11  ;;  %v8663_v7 = vld [vmem:[#allocation6_spill] sm:$0xff] }
 0x230   : > { %v3665_v45 = vunpack.c.l.b16 %v3089_v31  ;;  %v3681_v25 = vunpack.c.l.b16 %v3105_v28  ;;  %v3697_v62 = vunpack.c.l.b16 %v3121_v9  ;;  %v3713_v29 = vunpack.c.l.b16 %v3137_v35  ;;  %v8664_v28 = vld [vmem:[#allocation3_spill] sm:$0xff]  ;;  %v8665_v35 = vld [vmem:[#allocation4_spill] sm:$0xff] }
 0x231   : > { %v3729_v2 = vunpack.c.l.b16 %v3153_v58  ;;  %v3745_v6 = vunpack.c.l.b16 %v3169_v41  ;;  %v3761_v26 = vunpack.c.l.b16 %v3185_v61  ;;  %v3777_v57 = vunpack.c.l.b16 %v3201_v15  ;;  %v8666_v15 = vld [vmem:[#allocation7_spill] sm:$0xff] }
 0x232   : > { %v3793_v63 = vunpack.c.l.b16 %v3217_v36  ;;  %v3876_v17 = vsel %vm3799_vm0, %v3569_v56, %v3553_v34  ;;  %v3988_v43 = vsel %vm3799_vm0, %v3697_v62, %v3681_v25  ;;  %v416_v1 = vunpack.c.h.bf16 %v5007_v60  ;;  %v8667_v34 = vld [vmem:[#allocation8_spill] sm:$0xff]  ;;  %v8668_v25 = vld [vmem:[#allocation9_spill] sm:$0xff]  ;;  %v8669_v62 = vld [vmem:[#allocation10_spill] sm:$0xff] }
 0x233   : > { %v432_v54 = vunpack.c.h.bf16 %v5008_v23  ;;  %v3877_v0 = vsel %vm3801_vm1, %v3585_v59, %v3876_v17  ;;  %v3989_v53 = vsel %vm3801_vm1, %v3713_v29, %v3988_v43  ;;  %v448_v4 = vunpack.c.h.bf16 %v8660_v22  ;;  %v8670_v17 = vld [vmem:[#allocation11_spill] sm:$0xff]  ;;  %v8671_v43 = vld [vmem:[#allocation12_spill] sm:$0xff]  ;;  %v8672_v23 = vld [vmem:[#allocation13_spill] sm:$0xff] }
 0x234   : > { %v464_v5 = vunpack.c.h.bf16 %v8661_v19  ;;  %v3878_v3 = vsel %vm3803_vm2, %v3601_v20, %v3877_v0  ;;  %v3990_v18 = vsel %vm3803_vm2, %v3729_v2, %v3989_v53  ;;  %v480_v48 = vunpack.c.h.bf16 %v8662_v39  ;;  %v8673_v53 = vld [vmem:[#allocation14_spill] sm:$0xff] }
 0x235   : > { %v496_v38 = vunpack.c.h.bf16 %v8663_v7  ;;  %v3879_v11 = vsel %vm3805_vm3, %v3617_v32, %v3878_v3  ;;  %v3991_v31 = vsel %vm3805_vm3, %v3745_v6, %v3990_v18  ;;  %v512_v9 = vunpack.c.h.bf16 %v8664_v28 }
 0x236   : > { %v528_v58 = vunpack.c.h.bf16 %v8665_v35  ;;  %v3880_v41 = vsel %vm3807_vm4, %v3633_v51, %v3879_v11  ;;  %v3992_v61 = vsel %vm3807_vm4, %v3761_v26, %v3991_v31  ;;  %v544_v36 = vunpack.c.h.bf16 %v8666_v15  ;;  %v8674_v35 = vld [vmem:[#allocation15_spill] sm:$0xff] }
 0x237   : > { %v560_v56 = vunpack.c.h.bf16 %v8667_v34  ;;  %v3881_v59 = vsel %vm3809_vm5, %v3649_v42, %v3880_v41  ;;  %v3993_v20 = vsel %vm3809_vm5, %v3777_v57, %v3992_v61  ;;  %v576_v32 = vunpack.c.h.bf16 %v8668_v25  ;;  %v8675_v61 = vld [vmem:[#allocation16_spill] sm:$0xff]  ;;  %v8676_v34 = vld [vmem:[#allocation17_spill] sm:$0xff] }
 0x238   : > { %v592_v29 = vunpack.c.h.bf16 %v8669_v62  ;;  %v3882_v2 = vsel %vm3811_vm6, %v3665_v45, %v3881_v59  ;;  %v3994_v6 = vsel %vm3811_vm6, %v3793_v63, %v3993_v20  ;;  %v608_v51 = vunpack.c.h.bf16 %v8670_v17  ;;  %v8677_v20 = vld [vmem:[#allocation18_spill] sm:$0xff] }
 0x239   : > { %v624_v26 = vunpack.c.h.bf16 %v8671_v43  ;;  %v4040_v60 = vpack.c.b16 %v3994_v6, %v3882_v2  ;;  %v640_v0 = vunpack.c.h.bf16 %v8672_v23  ;;  %v656_v22 = vunpack.c.h.bf16 %v8673_v53 }
 0x23a   : > { %v672_v42 = vunpack.c.h.bf16 %v6766_v14  ;;  %v688_v57 = vunpack.c.h.bf16 %v6769_v46  ;;  %v704_v19 = vunpack.c.h.bf16 %v6784_v10  ;;  %v720_v3 = vunpack.c.h.bf16 %v6788_v27 }
 0x23b   : > { %4530 = vmatmul.bf16.vlgmr.msra.gmra.mxu2 %v4040_v60  ;;  %v982_v62 = vadd.f32 %v432_v54, %v416_v1  ;;  %v1094_v2 = vadd.f32 %v464_v5, %v448_v4  ;;  %v1206_v6 = vadd.f32 %v496_v38, %v480_v48  ;;  %v1318_v17 = vadd.f32 %v528_v58, %v512_v9 }
 0x23c   : > { %v1430_v43 = vadd.f32 %v560_v56, %v544_v36  ;;  %v1542_v23 = vadd.f32 %v592_v29, %v576_v32  ;;  %v1654_v53 = vadd.f32 %v624_v26, %v608_v51  ;;  %v1766_v11 = vadd.f32 %v656_v22, %v640_v0 }
 0x23d   : > { %v983_v60 = vrot.slane %v982_v62, 4  ;;  %v1095_v31 = vrot.slane %v1094_v2, 4  ;;  %v1207_v7 = vrot.slane %v1206_v6, 4  ;;  %v1319_v28 = vrot.slane %v1318_v17, 4 }
 0x23e   : > { %v1431_v39 = vrot.slane %v1430_v43, 4  ;;  %v1543_v18 = vrot.slane %v1542_v23, 4  ;;  %v1655_v15 = vrot.slane %v1654_v53, 4  ;;  %v1767_v63 = vrot.slane %v1766_v11, 4 }
 0x23f   : > { %v984_v41 = vadd.f32 %v983_v60, %v982_v62  ;;  %v1096_v59 = vadd.f32 %v1095_v31, %v1094_v2  ;;  %v1208_v45 = vadd.f32 %v1207_v7, %v1206_v6  ;;  %v1320_v25 = vadd.f32 %v1319_v28, %v1318_v17 }
 0x240   : > { %v1432_v1 = vadd.f32 %v1431_v39, %v1430_v43  ;;  %v1544_v4 = vadd.f32 %v1543_v18, %v1542_v23  ;;  %v1656_v5 = vadd.f32 %v1655_v15, %v1654_v53  ;;  %v1768_v48 = vadd.f32 %v1767_v63, %v1766_v11 }
 0x241   : > { %v985_v54 = vrot.slane %v984_v41, 2  ;;  %v1097_v38 = vrot.slane %v1096_v59, 2  ;;  %v1209_v9 = vrot.slane %v1208_v45, 2  ;;  %v1321_v58 = vrot.slane %v1320_v25, 2 }
 0x242   : > { %v1433_v36 = vrot.slane %v1432_v1, 2  ;;  %v1545_v32 = vrot.slane %v1544_v4, 2  ;;  %v1657_v29 = vrot.slane %v1656_v5, 2  ;;  %v1769_v51 = vrot.slane %v1768_v48, 2 }
 0x243   : > { %v986_v56 = vadd.f32 %v985_v54, %v984_v41  ;;  %v1098_v26 = vadd.f32 %v1097_v38, %v1096_v59  ;;  %v1210_v0 = vadd.f32 %v1209_v9, %v1208_v45  ;;  %v1322_v22 = vadd.f32 %v1321_v58, %v1320_v25 }
 0x244   : > { %v1434_v62 = vadd.f32 %v1433_v36, %v1432_v1  ;;  %v1546_v7 = vadd.f32 %v1545_v32, %v1544_v4  ;;  %v1658_v28 = vadd.f32 %v1657_v29, %v1656_v5  ;;  %v1770_v39 = vadd.f32 %v1769_v51, %v1768_v48 }
 0x245   : > { %v987_v31 = vrot.slane %v986_v56, 1  ;;  %v1099_v2 = vrot.slane %v1098_v26, 1  ;;  %v1211_v18 = vrot.slane %v1210_v0, 1  ;;  %v1323_v15 = vrot.slane %v1322_v22, 1 }
 0x246   : > { %v1435_v63 = vrot.slane %v1434_v62, 1  ;;  %v1547_v6 = vrot.slane %v1546_v7, 1  ;;  %v1659_v17 = vrot.slane %v1658_v28, 1  ;;  %v1771_v41 = vrot.slane %v1770_v39, 1 }
 0x247   : > { %v7189_v11 = vadd.f32 %v987_v31, %v986_v56  ;;  %v7191_v43 = vadd.f32 %v1099_v2, %v1098_v26  ;;  %v7193_v60 = vadd.f32 %v1211_v18, %v1210_v0  ;;  %v7195_v45 = vadd.f32 %v1323_v15, %v1322_v22 }
 0x248   : > { %v7197_v59 = vadd.f32 %v1435_v63, %v1434_v62  ;;  %v7199_v25 = vadd.f32 %v1547_v6, %v1546_v7  ;;  %v7201_v23 = vadd.f32 %v1659_v17, %v1658_v28  ;;  %v7203_v53 = vadd.f32 %v1771_v41, %v1770_v39 }
 0x249   : > { %v1878_v1 = vadd.f32 %v688_v57, %v672_v42  ;;  %v1990_v54 = vadd.f32 %v720_v3, %v704_v19  ;;  %v8678_v4 = vunpack.c.h.bf16 %v6791_v16  ;;  %v8679_v5 = vunpack.c.h.bf16 %v6794_v13 }
 0x24a   : > { %v8680_v38 = vunpack.c.h.bf16 %v6801_v21  ;;  %v8681_v9 = vunpack.c.h.bf16 %v6804_v47  ;;  %v8682_v14 = vunpack.c.h.bf16 %v6807_v8  ;;  %v8683_v46 = vunpack.c.h.bf16 %v6817_v30 }
 0x24b   : > { %v2102_v48 = vadd.f32 %v8679_v5, %v8678_v4  ;;  %v1879_v57 = vrot.slane %v1878_v1, 4  ;;  %v8684_v10 = vunpack.c.h.bf16 %v6820_v33  ;;  %v8685_v27 = vunpack.c.h.bf16 %v6823_v24 }
 0x24c   : > { %v2214_v58 = vadd.f32 %v8681_v9, %v8680_v38  ;;  %v2326_v42 = vadd.f32 %v8683_v46, %v8682_v14  ;;  %v8686_v16 = vunpack.c.h.bf16 %v8674_v35  ;;  %v8687_v13 = vunpack.c.h.bf16 %v8675_v61 }
 0x24d   : > { %v2438_v19 = vadd.f32 %v8685_v27, %v8684_v10  ;;  %v8688_v21 = vunpack.c.h.bf16 %v8676_v34  ;;  %v8689_v47 = vunpack.c.h.bf16 %v8677_v20  ;;  %v1991_v8 = vrot.slane %v1990_v54, 4 }
 0x24e   : > { %v2550_v3 = vadd.f32 %v8687_v13, %v8686_v16  ;;  %v2103_v56 = vrot.slane %v2102_v48, 4  ;;  %v2215_v30 = vrot.slane %v2214_v58, 4  ;;  %v2327_v32 = vrot.slane %v2326_v42, 4 }
 0x24f   : > { %v2662_v36 = vadd.f32 %v8689_v47, %v8688_v21  ;;  %v1880_v29 = vadd.f32 %v1879_v57, %v1878_v1  ;;  %v2439_v51 = vrot.slane %v2438_v19, 4  ;;  %v1992_v24 = vadd.f32 %v1991_v8, %v1990_v54 }
 0x250   : > { %v2551_v33 = vrot.slane %v2550_v3, 4  ;;  %v2104_v0 = vadd.f32 %v2103_v56, %v2102_v48  ;;  %v2216_v22 = vadd.f32 %v2215_v30, %v2214_v58  ;;  %v2328_v35 = vadd.f32 %v2327_v32, %v2326_v42 }
 0x251   : > { %v2663_v26 = vrot.slane %v2662_v36, 4  ;;  %v1881_v62 = vrot.slane %v1880_v29, 2  ;;  %v2440_v61 = vadd.f32 %v2439_v51, %v2438_v19  ;;  %v1993_v34 = vrot.slane %v1992_v24, 2 }
 0x252   : > { %v2552_v31 = vadd.f32 %v2551_v33, %v2550_v3  ;;  %v2105_v28 = vrot.slane %v2104_v0, 2  ;;  %v2217_v20 = vrot.slane %v2216_v22, 2  ;;  %v2329_v39 = vrot.slane %v2328_v35, 2 }
 0x253   : > { %v2664_v7 = vadd.f32 %v2663_v26, %v2662_v36  ;;  %v1882_v2 = vadd.f32 %v1881_v62, %v1880_v29  ;;  %v2441_v18 = vrot.slane %v2440_v61, 2  ;;  %v1994_v6 = vadd.f32 %v1993_v34, %v1992_v24 }
 0x254   : > { %v2553_v15 = vrot.slane %v2552_v31, 2  ;;  %v2106_v17 = vadd.f32 %v2105_v28, %v2104_v0  ;;  %v2218_v41 = vadd.f32 %v2217_v20, %v2216_v22  ;;  %v2330_v1 = vadd.f32 %v2329_v39, %v2328_v35 }
 0x255   : > { %v2665_v63 = vrot.slane %v2664_v7, 2  ;;  %v1883_v54 = vrot.slane %v1882_v2, 1  ;;  %v2442_v4 = vadd.f32 %v2441_v18, %v2440_v61  ;;  %v1995_v38 = vrot.slane %v1994_v6, 1 }
 0x256   : > { %v2554_v5 = vadd.f32 %v2553_v15, %v2552_v31  ;;  %v2107_v9 = vrot.slane %v2106_v17, 1  ;;  %v2219_v58 = vrot.slane %v2218_v41, 1  ;;  %v2331_v14 = vrot.slane %v2330_v1, 1 }
 0x257   : > { %v2666_v48 = vadd.f32 %v2665_v63, %v2664_v7  ;;  %v1884_v46 = vadd.f32 %v1883_v54, %v1882_v2  ;;  %v2443_v42 = vrot.slane %v2442_v4, 1  ;;  %v1996_v27 = vadd.f32 %v1995_v38, %v1994_v6 }
 0x258   : > { %v2555_v57 = vrot.slane %v2554_v5, 1  ;;  %v2108_v19 = vadd.f32 %v2107_v9, %v2106_v17  ;;  %v2220_v16 = vadd.f32 %v2219_v58, %v2218_v41  ;;  %v2332_v13 = vadd.f32 %v2331_v14, %v2330_v1 }
 0x259   : > { %v2667_v10 = vrot.slane %v2666_v48, 1  ;;  %v2444_v3 = vadd.f32 %v2443_v42, %v2442_v4  ;;  %v2720_v36 = vmul.f32 0.0625, %v7189_v11  ;;  %v2736_v8 = vmul.f32 0.0625, %v7191_v43 }
 0x25a   : > { %v2556_v21 = vadd.f32 %v2555_v57, %v2554_v5  ;;  %v2752_v56 = vmul.f32 0.0625, %v7193_v60  ;;  %v2768_v30 = vmul.f32 0.0625, %v7195_v45  ;;  %v2784_v32 = vmul.f32 0.0625, %v7197_v59 }
 0x25b   : > { %v2668_v47 = vadd.f32 %v2667_v10, %v2666_v48  ;;  %v2800_v29 = vmul.f32 0.0625, %v7199_v25  ;;  %v2816_v51 = vmul.f32 0.0625, %v7201_v23  ;;  %v2832_v33 = vmul.f32 0.0625, %v7203_v53 }
 0x25c   : > { %v2848_v26 = vmul.f32 0.0625, %v1884_v46  ;;  %v2864_v24 = vmul.f32 0.0625, %v1996_v27  ;;  %v2880_v0 = vmul.f32 0.0625, %v2108_v19  ;;  %v2896_v22 = vmul.f32 0.0625, %v2220_v16  ;;  %v5009_v16 = vld [vmem:[%s5250_s5 + $0x28] sm:$0xff] }
 0x25d   : > { %v2912_v35 = vmul.f32 0.0625, %v2332_v13  ;;  %v2928_v11 = vmul.f32 0.0625, %v2444_v3  ;;  %v2944_v62 = vmul.f32 0.0625, %v2556_v21  ;;  %v2960_v43 = vmul.f32 0.0625, %v2668_v47  ;;  %v8690_v3 = vld [vmem:[#allocation19_spill] sm:$0xff] }
 0x25e   : > { %v2976_v61 = vpack.c.bf16 %v2720_v36, %v2720_v36  ;;  %v2992_v60 = vpack.c.bf16 %v2736_v8, %v2736_v8  ;;  %v3008_v31 = vpack.c.bf16 %v2752_v56, %v2752_v56  ;;  %v3024_v45 = vpack.c.bf16 %v2768_v30, %v2768_v30  ;;  %v8691_v8 = vld [vmem:[#allocation20_spill] sm:$0xff]  ;;  %v8692_v30 = vld [vmem:[#allocation21_spill] sm:$0xff] }
 0x25f   : > { %v3040_v7 = vpack.c.bf16 %v2784_v32, %v2784_v32  ;;  %v3056_v59 = vpack.c.bf16 %v2800_v29, %v2800_v29  ;;  %v3072_v34 = vpack.c.bf16 %v2816_v51, %v2816_v51  ;;  %v3088_v25 = vpack.c.bf16 %v2832_v33, %v2832_v33  ;;  %v8693_v33 = vld [vmem:[#allocation22_spill] sm:$0xff] }
 0x260   : > { %v3104_v28 = vpack.c.bf16 %v2848_v26, %v2848_v26  ;;  %v3120_v23 = vpack.c.bf16 %v2864_v24, %v2864_v24  ;;  %v3136_v20 = vpack.c.bf16 %v2880_v0, %v2880_v0  ;;  %v3152_v53 = vpack.c.bf16 %v2896_v22, %v2896_v22  ;;  %v8694_v24 = vld [vmem:[#allocation23_spill] sm:$0xff] }
 0x261   : > { %v3168_v39 = vpack.c.bf16 %v2912_v35, %v2912_v35  ;;  %v3184_v2 = vpack.c.bf16 %v2928_v11, %v2928_v11  ;;  %v3200_v18 = vpack.c.bf16 %v2944_v62, %v2944_v62  ;;  %v3216_v15 = vpack.c.bf16 %v2960_v43, %v2960_v43  ;;  %v8695_v11 = vld [vmem:[#allocation24_spill] sm:$0xff]  ;;  %v8696_v43 = vld [vmem:[#allocation25_spill] sm:$0xff] }
 0x262   : > { %v3552_v63 = vunpack.c.l.b16 %v2976_v61  ;;  %v3568_v6 = vunpack.c.l.b16 %v2992_v60  ;;  %v3584_v17 = vunpack.c.l.b16 %v3008_v31  ;;  %v3600_v41 = vunpack.c.l.b16 %v3024_v45  ;;  %v8697_v45 = vld [vmem:[#allocation26_spill] sm:$0xff] }
 0x263   : > { %v3616_v1 = vunpack.c.l.b16 %v3040_v7  ;;  %v3632_v54 = vunpack.c.l.b16 %v3056_v59  ;;  %v3648_v4 = vunpack.c.l.b16 %v3072_v34  ;;  %v3664_v5 = vunpack.c.l.b16 %v3088_v25  ;;  %v8698_v59 = vld [vmem:[#allocation27_spill] sm:$0xff] }
 0x264   : > { %v3680_v48 = vunpack.c.l.b16 %v3104_v28  ;;  %v3696_v38 = vunpack.c.l.b16 %v3120_v23  ;;  %v3712_v9 = vunpack.c.l.b16 %v3136_v20  ;;  %v3728_v58 = vunpack.c.l.b16 %v3152_v53  ;;  %v8699_v23 = vld [vmem:[#allocation28_spill] sm:$0xff]  ;;  %v8700_v53 = vld [vmem:[#allocation29_spill] sm:$0xff] }
 0x265   : > { %v3744_v14 = vunpack.c.l.b16 %v3168_v39  ;;  %v3760_v46 = vunpack.c.l.b16 %v3184_v2  ;;  %v3776_v42 = vunpack.c.l.b16 %v3200_v18  ;;  %v3792_v57 = vunpack.c.l.b16 %v3216_v15  ;;  %v8701_v18 = vld [vmem:[#allocation30_spill] sm:$0xff] }
 0x266   : > { %v3869_v10 = vsel %vm3799_vm0, %v3568_v6, %v3552_v63  ;;  %v3981_v19 = vsel %vm3799_vm0, %v3696_v38, %v3680_v48  ;;  %v418_v13 = vunpack.c.h.bf16 %v5009_v16  ;;  %v434_v21 = vunpack.c.h.bf16 %v8690_v3  ;;  %v8702_v63 = vld [vmem:[#allocation31_spill] sm:$0xff]  ;;  %v8707_v16 = vld [vmem:[#allocation36_spill] sm:$0xff] }
 0x267   : > { %v3870_v27 = vsel %vm3801_vm1, %v3584_v17, %v3869_v10  ;;  %v3982_v36 = vsel %vm3801_vm1, %v3712_v9, %v3981_v19  ;;  %v450_v56 = vunpack.c.h.bf16 %v8691_v8  ;;  %v466_v32 = vunpack.c.h.bf16 %v8692_v30  ;;  %v8703_v17 = vld [vmem:[#allocation32_spill] sm:$0xff]  ;;  %v8709_v8 = vld [vmem:[#allocation38_spill] sm:$0xff] }
 0x268   : > { %v3871_v47 = vsel %vm3803_vm2, %v3600_v41, %v3870_v27  ;;  %v3983_v51 = vsel %vm3803_vm2, %v3728_v58, %v3982_v36  ;;  %v482_v26 = vunpack.c.h.bf16 %v8693_v33  ;;  %v498_v0 = vunpack.c.h.bf16 %v8694_v24  ;;  %v8706_v27 = vld [vmem:[#allocation35_spill] sm:$0xff]  ;;  %v8711_v33 = vld [vmem:[#allocation40_spill] sm:$0xff] }
 0x269   : > { %v3872_v29 = vsel %vm3805_vm3, %v3616_v1, %v3871_v47  ;;  %v3984_v35 = vsel %vm3805_vm3, %v3744_v14, %v3983_v51  ;;  %v514_v62 = vunpack.c.h.bf16 %v8695_v11  ;;  %v530_v61 = vunpack.c.h.bf16 %v8696_v43  ;;  %v8708_v47 = vld [vmem:[#allocation37_spill] sm:$0xff] }
 0x26a   : > { %v3873_v22 = vsel %vm3807_vm4, %v3632_v54, %v3872_v29  ;;  %v3985_v31 = vsel %vm3807_vm4, %v3760_v46, %v3984_v35  ;;  %v546_v7 = vunpack.c.h.bf16 %v8697_v45  ;;  %v562_v34 = vunpack.c.h.bf16 %v8698_v59  ;;  %v8704_v54 = vld [vmem:[#allocation33_spill] sm:$0xff]  ;;  %v8710_v29 = vld [vmem:[#allocation39_spill] sm:$0xff] }
 0x26b   : > { %v3874_v60 = vsel %vm3809_vm5, %v3648_v4, %v3873_v22  ;;  %v3986_v28 = vsel %vm3809_vm5, %v3776_v42, %v3985_v31  ;;  %v578_v20 = vunpack.c.h.bf16 %v8699_v23  ;;  %v594_v39 = vunpack.c.h.bf16 %v8700_v53  ;;  %v8712_v22 = vld [vmem:[#allocation41_spill] sm:$0xff] }
 0x26c   : > { %v3875_v25 = vsel %vm3811_vm6, %v3664_v5, %v3874_v60  ;;  %v3987_v2 = vsel %vm3811_vm6, %v3792_v57, %v3986_v28  ;;  %v610_v15 = vunpack.c.h.bf16 %v8701_v18  ;;  %v626_v6 = vunpack.c.h.bf16 %v8702_v63  ;;  %v8705_v57 = vld [vmem:[#allocation34_spill] sm:$0xff] }
 0x26d   : > { %v642_v41 = vunpack.c.h.bf16 %v8703_v17  ;;  %v4039_v1 = vpack.c.b16 %v3987_v2, %v3875_v25  ;;  %v658_v4 = vunpack.c.h.bf16 %v8704_v54  ;;  %v674_v48 = vunpack.c.h.bf16 %v6995_v49 }
 0x26e   : > { %v690_v5 = vunpack.c.h.bf16 %v6998_v12  ;;  %v706_v38 = vunpack.c.h.bf16 %v7001_v52  ;;  %v722_v9 = vunpack.c.h.bf16 %v7014_v44  ;;  %v738_v58 = vunpack.c.h.bf16 %v7021_v40 }
 0x26f   : > { %v754_v14 = vunpack.c.h.bf16 %v7024_v50  ;;  %4516 = vmatmul.bf16.vlgmr.msra.gmra.mxu1 %v4039_v1  ;;  %v770_v46 = vunpack.c.h.bf16 %v7027_v55  ;;  %v786_v42 = vunpack.c.h.bf16 %v7034_v37  ;;  %v802_v10 = vunpack.c.h.bf16 %v8705_v57 }
 0x270   : > { %v818_v19 = vunpack.c.h.bf16 %v8706_v27  ;;  %v834_v3 = vunpack.c.h.bf16 %v8707_v16  ;;  %v850_v36 = vunpack.c.h.bf16 %v8708_v47  ;;  %v996_v11 = vadd.f32 %v434_v21, %v418_v13 }
 0x271   : > { %v1108_v43 = vadd.f32 %v466_v32, %v450_v56  ;;  %v1220_v60 = vadd.f32 %v498_v0, %v482_v26  ;;  %v1332_v31 = vadd.f32 %v530_v61, %v514_v62  ;;  %v1444_v45 = vadd.f32 %v562_v34, %v546_v7 }
 0x272   : > { %v1556_v59 = vadd.f32 %v594_v39, %v578_v20  ;;  %v997_v25 = vrot.slane %v996_v11, 4  ;;  %v1668_v23 = vadd.f32 %v626_v6, %v610_v15  ;;  %v1780_v53 = vadd.f32 %v658_v4, %v642_v41 }
 0x273   : > { %v1109_v28 = vrot.slane %v1108_v43, 4  ;;  %v1221_v2 = vrot.slane %v1220_v60, 4  ;;  %v1333_v18 = vrot.slane %v1332_v31, 4  ;;  %v1445_v63 = vrot.slane %v1444_v45, 4 }
 0x274   : > { %v1557_v17 = vrot.slane %v1556_v59, 4  ;;  %v998_v1 = vadd.f32 %v997_v25, %v996_v11  ;;  %v1669_v51 = vrot.slane %v1668_v23, 4  ;;  %v1781_v24 = vrot.slane %v1780_v53, 4 }
 0x275   : > { %v1110_v54 = vadd.f32 %v1109_v28, %v1108_v43  ;;  %v1222_v30 = vadd.f32 %v1221_v2, %v1220_v60  ;;  %v1334_v35 = vadd.f32 %v1333_v18, %v1332_v31  ;;  %v1446_v13 = vadd.f32 %v1445_v63, %v1444_v45 }
 0x276   : > { %v1558_v21 = vadd.f32 %v1557_v17, %v1556_v59  ;;  %v999_v56 = vrot.slane %v998_v1, 2  ;;  %v1670_v26 = vadd.f32 %v1669_v51, %v1668_v23  ;;  %v1782_v0 = vadd.f32 %v1781_v24, %v1780_v53 }
 0x277   : > { %v1111_v32 = vrot.slane %v1110_v54, 2  ;;  %v1223_v62 = vrot.slane %v1222_v30, 2  ;;  %v1335_v61 = vrot.slane %v1334_v35, 2  ;;  %v1447_v7 = vrot.slane %v1446_v13, 2 }
 0x278   : > { %v1559_v34 = vrot.slane %v1558_v21, 2  ;;  %v1000_v20 = vadd.f32 %v999_v56, %v998_v1  ;;  %v1671_v15 = vrot.slane %v1670_v26, 2  ;;  %v1783_v6 = vrot.slane %v1782_v0, 2 }
 0x279   : > { %v1112_v39 = vadd.f32 %v1111_v32, %v1110_v54  ;;  %v1224_v41 = vadd.f32 %v1223_v62, %v1222_v30  ;;  %v1336_v4 = vadd.f32 %v1335_v61, %v1334_v35  ;;  %v1448_v11 = vadd.f32 %v1447_v7, %v1446_v13 }
 0x27a   : > { %v1560_v43 = vadd.f32 %v1559_v34, %v1558_v21  ;;  %v1001_v60 = vrot.slane %v1000_v20, 1  ;;  %v1672_v45 = vadd.f32 %v1671_v15, %v1670_v26  ;;  %v1784_v59 = vadd.f32 %v1783_v6, %v1782_v0 }
 0x27b   : > { %v1113_v31 = vrot.slane %v1112_v39, 1  ;;  %v1225_v25 = vrot.slane %v1224_v41, 1  ;;  %v1337_v28 = vrot.slane %v1336_v4, 1  ;;  %v1449_v51 = vrot.slane %v1448_v11, 1 }
 0x27c   : > { %v1561_v24 = vrot.slane %v1560_v43, 1  ;;  %v7291_v23 = vadd.f32 %v1001_v60, %v1000_v20  ;;  %v1673_v2 = vrot.slane %v1672_v45, 1  ;;  %v1785_v18 = vrot.slane %v1784_v59, 1 }
 0x27d   : > { %v7293_v53 = vadd.f32 %v1113_v31, %v1112_v39  ;;  %v7295_v63 = vadd.f32 %v1225_v25, %v1224_v41  ;;  %v7297_v30 = vadd.f32 %v1337_v28, %v1336_v4  ;;  %v7299_v35 = vadd.f32 %v1449_v51, %v1448_v11 }
 0x27e   : > { %v7301_v17 = vadd.f32 %v1561_v24, %v1560_v43  ;;  %v7303_v1 = vadd.f32 %v1673_v2, %v1672_v45  ;;  %v7305_v54 = vadd.f32 %v1785_v18, %v1784_v59  ;;  %v1892_v13 = vadd.f32 %v690_v5, %v674_v48 }
 0x27f   : > { %v2004_v21 = vadd.f32 %v722_v9, %v706_v38  ;;  %v2116_v56 = vadd.f32 %v754_v14, %v738_v58  ;;  %v2228_v32 = vadd.f32 %v786_v42, %v770_v46  ;;  %v2340_v49 = vadd.f32 %v818_v19, %v802_v10 }
 0x280   : > { %v2452_v12 = vadd.f32 %v850_v36, %v834_v3  ;;  %v1893_v52 = vrot.slane %v1892_v13, 4  ;;  %v8713_v40 = vunpack.c.h.bf16 %v8709_v8  ;;  %v8714_v50 = vunpack.c.h.bf16 %v8710_v29 }
 0x281   : > { %v2005_v44 = vrot.slane %v2004_v21, 4  ;;  %v8715_v37 = vunpack.c.h.bf16 %v8711_v33  ;;  %v8716_v48 = vunpack.c.h.bf16 %v8712_v22  ;;  %v2117_v38 = vrot.slane %v2116_v56, 4 }
 0x282   : > { %v2564_v55 = vadd.f32 %v8714_v50, %v8713_v40  ;;  %v2229_v9 = vrot.slane %v2228_v32, 4  ;;  %v2341_v58 = vrot.slane %v2340_v49, 4  ;;  %v2453_v14 = vrot.slane %v2452_v12, 4 }
 0x283   : > { %v2676_v5 = vadd.f32 %v8716_v48, %v8715_v37  ;;  %v1894_v46 = vadd.f32 %v1893_v52, %v1892_v13  ;;  %v2006_v42 = vadd.f32 %v2005_v44, %v2004_v21  ;;  %v2118_v27 = vadd.f32 %v2117_v38, %v2116_v56 }
 0x284   : > { %v2565_v57 = vrot.slane %v2564_v55, 4  ;;  %v2230_v19 = vadd.f32 %v2229_v9, %v2228_v32  ;;  %v2342_v16 = vadd.f32 %v2341_v58, %v2340_v49  ;;  %v2454_v3 = vadd.f32 %v2453_v14, %v2452_v12 }
 0x285   : > { %v2677_v10 = vrot.slane %v2676_v5, 4  ;;  %v1895_v47 = vrot.slane %v1894_v46, 2  ;;  %v2007_v36 = vrot.slane %v2006_v42, 2  ;;  %v2119_v33 = vrot.slane %v2118_v27, 2 }
 0x286   : > { %v2566_v8 = vadd.f32 %v2565_v57, %v2564_v55  ;;  %v2231_v26 = vrot.slane %v2230_v19, 2  ;;  %v2343_v22 = vrot.slane %v2342_v16, 2  ;;  %v2455_v0 = vrot.slane %v2454_v3, 2 }
 0x287   : > { %v2678_v29 = vadd.f32 %v2677_v10, %v2676_v5  ;;  %v1896_v62 = vadd.f32 %v1895_v47, %v1894_v46  ;;  %v2008_v61 = vadd.f32 %v2007_v36, %v2006_v42  ;;  %v2120_v20 = vadd.f32 %v2119_v33, %v2118_v27 }
 0x288   : > { %v2567_v7 = vrot.slane %v2566_v8, 2  ;;  %v2232_v39 = vadd.f32 %v2231_v26, %v2230_v19  ;;  %v2344_v15 = vadd.f32 %v2343_v22, %v2342_v16  ;;  %v2456_v6 = vadd.f32 %v2455_v0, %v2454_v3 }
 0x289   : > { %v2679_v34 = vrot.slane %v2678_v29, 2  ;;  %v1897_v41 = vrot.slane %v1896_v62, 1  ;;  %v2009_v4 = vrot.slane %v2008_v61, 1  ;;  %v2121_v60 = vrot.slane %v2120_v20, 1 }
 0x28a   : > { %v2568_v11 = vadd.f32 %v2567_v7, %v2566_v8  ;;  %v2233_v31 = vrot.slane %v2232_v39, 1  ;;  %v2345_v45 = vrot.slane %v2344_v15, 1  ;;  %v2457_v59 = vrot.slane %v2456_v6, 1 }
 0x28b   : > { %v2680_v43 = vadd.f32 %v2679_v34, %v2678_v29  ;;  %v1898_v25 = vadd.f32 %v1897_v41, %v1896_v62  ;;  %v2010_v28 = vadd.f32 %v2009_v4, %v2008_v61  ;;  %v2122_v2 = vadd.f32 %v2121_v60, %v2120_v20  ;;  %v4853_v62 = vld [vmem:[%s8062_s1 + $0x130] sm:$0xf]  ;;  %v4861_v41 = vld [vmem:[%s8062_s1 + $0x138] sm:$0xf] }
 0x28c   : > { %v2569_v51 = vrot.slane %v2568_v11, 1  ;;  %v2234_v18 = vadd.f32 %v2233_v31, %v2232_v39  ;;  %v2346_v13 = vadd.f32 %v2345_v45, %v2344_v15  ;;  %v2458_v21 = vadd.f32 %v2457_v59, %v2456_v6  ;;  %v4980_v61 = vld [vmem:[%s8062_s1 + $0x16c] sm:$0xf0]  ;;  %v4972_v15 = vld [vmem:[%s8062_s1 + $0x134] sm:$0xf] }
 0x28d   : > { %v2681_v24 = vrot.slane %v2680_v43, 1  ;;  %v2722_v49 = vmul.f32 0.0625, %v7291_v23  ;;  %v2738_v12 = vmul.f32 0.0625, %v7293_v53  ;;  %v2754_v52 = vmul.f32 0.0625, %v7295_v63  ;;  %v4855_v6 = vld [vmem:[%s8062_s1 + $0x170] sm:$0xf0] }
 0x28e   : > { %v2570_v56 = vadd.f32 %v2569_v51, %v2568_v11  ;;  %v2770_v44 = vmul.f32 0.0625, %v7297_v30  ;;  %v2786_v40 = vmul.f32 0.0625, %v7299_v35  ;;  %v2802_v50 = vmul.f32 0.0625, %v7301_v17  ;;  %v4981_v31 = vld [vmem:[%s8062_s1 + $0x174] sm:$0xf0] }
 0x28f   : > { %v2682_v32 = vadd.f32 %v2681_v24, %v2680_v43  ;;  %v2818_v55 = vmul.f32 0.0625, %v7303_v1  ;;  %v2834_v37 = vmul.f32 0.0625, %v7305_v54  ;;  %v2850_v48 = vmul.f32 0.0625, %v1898_v25  ;;  %v4973_v45 = vld [vmem:[%s8062_s1 + $0x13c] sm:$0xf] }
 0x290   : > { %v2866_v5 = vmul.f32 0.0625, %v2010_v28  ;;  %v2882_v38 = vmul.f32 0.0625, %v2122_v2  ;;  %v2898_v9 = vmul.f32 0.0625, %v2234_v18  ;;  %v2914_v58 = vmul.f32 0.0625, %v2346_v13  ;;  %v4863_v59 = vld [vmem:[%s8062_s1 + $0x178] sm:$0xf0] }
 0x291   : > { %v2930_v23 = vmul.f32 0.0625, %v2458_v21  ;;  %v2946_v14 = vmul.f32 0.0625, %v2570_v56  ;;  %v2962_v53 = vmul.f32 0.0625, %v2682_v32  ;;  %v2978_v46 = vpack.c.bf16 %v2722_v49, %v2722_v49  ;;  %v7376_v2 = vld [vmem:[%s8062_s1 + $0xb0] sm:$0xf] }
 0x292   : > { %v2994_v63 = vpack.c.bf16 %v2738_v12, %v2738_v12  ;;  %v3010_v42 = vpack.c.bf16 %v2754_v52, %v2754_v52  ;;  %v3026_v30 = vpack.c.bf16 %v2770_v44, %v2770_v44  ;;  %v3042_v57 = vpack.c.bf16 %v2786_v40, %v2786_v40  ;;  %v7379_v18 = vld [vmem:[%s5250_s5 + $0x30] sm:$0xff] }
 0x293   : > { %v3058_v35 = vpack.c.bf16 %v2802_v50, %v2802_v50  ;;  %v3074_v10 = vpack.c.bf16 %v2818_v55, %v2818_v55  ;;  %v3090_v17 = vpack.c.bf16 %v2834_v37, %v2834_v37  ;;  %v3106_v27 = vpack.c.bf16 %v2850_v48, %v2850_v48  ;;  %8717 = vst [vmem:[#allocation42_spill] sm:$0xff] %v7379_v18  ;;  %v7386_v49 = vld [vmem:[%s8062_s1 + $0xec] sm:$0xf0]  ;;  %v7391_v12 = vld [vmem:[%s8062_s1 + $0xb4] sm:$0xf] }
 0x294   : > { %v3122_v1 = vpack.c.bf16 %v2866_v5, %v2866_v5  ;;  %v3138_v19 = vpack.c.bf16 %v2882_v38, %v2882_v38  ;;  %v3154_v54 = vpack.c.bf16 %v2898_v9, %v2898_v9  ;;  %v3170_v16 = vpack.c.bf16 %v2914_v58, %v2914_v58  ;;  %v7396_v52 = vld [vmem:[%s8062_s1 + $0xf0] sm:$0xf0]  ;;  %v7406_v48 = vld [vmem:[%s8062_s1 + $0xb8] sm:$0xf]  ;;  %v7416_v38 = vld [vmem:[%s8062_s1 + $0xbc] sm:$0xf] }
 0x295   : > { %v3186_v3 = vpack.c.bf16 %v2930_v23, %v2930_v23  ;;  %v3202_v47 = vpack.c.bf16 %v2946_v14, %v2946_v14  ;;  %v3218_v36 = vpack.c.bf16 %v2962_v53, %v2962_v53  ;;  %v3554_v8 = vunpack.c.l.b16 %v2978_v46  ;;  %v7399_v44 = vld [vmem:[%s5250_s5 + $0x70] sm:$0xff]  ;;  %v7411_v5 = vld [vmem:[%s8062_s1 + $0xf4] sm:$0xf0]  ;;  %v7423_v23 = vld [vmem:[%s8062_s1 + $0xf8] sm:$0xf0] }
 0x296   : > { %v3570_v29 = vunpack.c.l.b16 %v2994_v63  ;;  %v3586_v33 = vunpack.c.l.b16 %v3010_v42  ;;  %v3602_v26 = vunpack.c.l.b16 %v3026_v30  ;;  %v3618_v22 = vunpack.c.l.b16 %v3042_v57  ;;  %v7428_v14 = vld [vmem:[%s8062_s1 + $0x30] sm:$0xf]  ;;  %v7443_v30 = vld [vmem:[%s8062_s1 + $0x34] sm:$0xf] }
 0x297   : > { %v3634_v0 = vunpack.c.l.b16 %v3058_v35  ;;  %v3650_v7 = vunpack.c.l.b16 %v3074_v10  ;;  %v3666_v34 = vunpack.c.l.b16 %v3090_v17  ;;  %v3682_v20 = vunpack.c.l.b16 %v3106_v27  ;;  %v7433_v53 = vld [vmem:[%s8062_s1 + $0x6c] sm:$0xf0]  ;;  %v7448_v57 = vld [vmem:[%s8062_s1 + $0x70] sm:$0xf0]  ;;  %v7453_v35 = vld [vmem:[%s8062_s1 + $0x38] sm:$0xf] }
 0x298   : > { %v3698_v39 = vunpack.c.l.b16 %v3122_v1  ;;  %v3714_v4 = vunpack.c.l.b16 %v3138_v19  ;;  %v3730_v11 = vunpack.c.l.b16 %v3154_v54  ;;  %v3746_v43 = vunpack.c.l.b16 %v3170_v16  ;;  %v7436_v46 = vld [vmem:[%s5250_s5 + $0xb0] sm:$0xff] }
 0x299   : > { %v3762_v60 = vunpack.c.l.b16 %v3186_v3  ;;  %v3778_v25 = vunpack.c.l.b16 %v3202_v47  ;;  %v3794_v28 = vunpack.c.l.b16 %v3218_v36  ;;  %v3883_v51 = vsel %vm3799_vm0, %v3570_v29, %v3554_v8  ;;  %v7456_v10 = vld [vmem:[%s5250_s5 + $0xf0] sm:$0xff]  ;;  %v7474_v3 = vld [vmem:[%s8062_s1 + $0x74] sm:$0xf0]  ;;  %v7479_v47 = vld [vmem:[%s8062_s1 + $0x3c] sm:$0xf] }
 0x29a   : > { %v3995_v24 = vsel %vm3799_vm0, %v3698_v39, %v3682_v20  ;;  %v3884_v13 = vsel %vm3801_vm1, %v3586_v33, %v3883_v51  ;;  %v4854_v56 = vor.u32 %v4980_v61, %v4853_v62  ;;  %v4858_v32 = vor.u32 %v4972_v15, %v4855_v6  ;;  %v7459_v17 = vld [vmem:[%s5250_s5 + $0x130] sm:$0xff]  ;;  %v7484_v36 = vld [vmem:[%s8062_s1 + $0x78] sm:$0xf0] }
 0x29b   : > { %v3996_v21 = vsel %vm3801_vm1, %v3714_v4, %v3995_v24  ;;  %v3885_v40 = vsel %vm3803_vm2, %v3602_v26, %v3884_v13  ;;  %v4862_v55 = vor.u32 %v4981_v31, %v4861_v41  ;;  %v4866_v37 = vor.u32 %v4973_v45, %v4863_v59  ;;  %v7462_v27 = vld [vmem:[%s5250_s5 + $0x170] sm:$0xff] }
 0x29c   : > { %v3997_v50 = vsel %vm3803_vm2, %v3730_v11, %v3996_v21  ;;  %v3886_v9 = vsel %vm3805_vm3, %v3618_v22, %v3885_v40  ;;  %4555 = vmatpush.bf16.xpose.msrb.mxu0 %v4854_v56  ;;  %4569 = vmatpush.bf16.xpose.msrb.mxu1 %v4858_v32  ;;  %v7465_v1 = vld [vmem:[%s5250_s5 + $0x1b0] sm:$0xff]  ;;  %v4790_v16 = vor.u32 %v7386_v49, %v7376_v2  ;;  %v419_v29 = vunpack.c.l.bf16 %v7379_v18 }
 0x29d   : > { %v3998_v58 = vsel %vm3805_vm3, %v3746_v43, %v3997_v50  ;;  %v3887_v63 = vsel %vm3807_vm4, %v3634_v0, %v3886_v9  ;;  %4583 = vmatpush.bf16.xpose.msrb.mxu2 %v4862_v55  ;;  %4597 = vmatpush.bf16.xpose.msrb.mxu3 %v4866_v37  ;;  %v7487_v8 = vld [vmem:[%s5250_s5 + $0x1f0] sm:$0xff]  ;;  %v4794_v22 = vor.u32 %v7391_v12, %v7396_v52  ;;  %v467_v13 = vunpack.c.l.bf16 %v7456_v10 }
 0x29e   : > { %v3999_v42 = vsel %vm3807_vm4, %v3762_v60, %v3998_v58  ;;  %v3888_v19 = vsel %vm3809_vm5, %v3650_v7, %v3887_v63  ;;  %v7495_v0 = vld [vmem:[%s5250_s5 + $0x230] sm:$0xff]  ;;  %v435_v7 = vunpack.c.l.bf16 %v7399_v44  ;;  %v4802_v39 = vor.u32 %v7416_v38, %v7423_v23 }
 0x29f   : > { %v4000_v54 = vsel %vm3809_vm5, %v3778_v25, %v3999_v42  ;;  %v3889_v33 = vsel %vm3811_vm6, %v3666_v34, %v3888_v19  ;;  %v7498_v62 = vld [vmem:[%s5250_s5 + $0x270] sm:$0xff]  ;;  %v4798_v34 = vor.u32 %v7411_v5, %v7406_v48  ;;  %v483_v21 = vunpack.c.l.bf16 %v7459_v17 }
 0x2a0   : > { %v4001_v26 = vsel %vm3811_vm6, %v3794_v28, %v4000_v54  ;;  %v7501_v61 = vld [vmem:[%s5250_s5 + $0x2b0] sm:$0xff]  ;;  %v451_v28 = vunpack.c.l.bf16 %v7436_v46  ;;  %v499_v56 = vunpack.c.l.bf16 %v7462_v27  ;;  %v515_v32 = vunpack.c.l.bf16 %v7465_v1 }
 0x2a1   : > { %v4041_v20 = vpack.c.b16 %v4001_v26, %v3889_v33  ;;  %v7511_v6 = vld [vmem:[%s5250_s5 + $0x2f0] sm:$0xff]  ;;  %v531_v40 = vunpack.c.l.bf16 %v7487_v8  ;;  %v547_v50 = vunpack.c.l.bf16 %v7495_v0  ;;  %v563_v55 = vunpack.c.l.bf16 %v7498_v62 }
 0x2a2   : > { %8718 = vst [vmem:[#allocation43_spill] sm:$0xff] %v7511_v6  ;;  %v7514_v41 = vld [vmem:[%s5250_s5 + $0x330] sm:$0xff]  ;;  %v579_v37 = vunpack.c.l.bf16 %v7501_v61  ;;  %v595_v9 = vunpack.c.l.bf16 %v7511_v6  ;;  %v1003_v26 = vadd.f32 %v435_v7, %v419_v29  ;;  %v1115_v33 = vadd.f32 %v467_v13, %v451_v28 }
 0x2a3   : > { %8719 = vst [vmem:[#allocation44_spill] sm:$0xff] %v7514_v41  ;;  %v7517_v4 = vld [vmem:[%s5250_s5 + $0x430] sm:$0xff]  ;;  %4544 = vmatmul.bf16.vlgmr.msra.gmra.mxu3 %v4041_v20  ;;  %v611_v58 = vunpack.c.l.bf16 %v7514_v41  ;;  %v1227_v43 = vadd.f32 %v499_v56, %v483_v21  ;;  %v1451_v15 = vadd.f32 %v563_v55, %v547_v50  ;;  %v8730_v29 = vor.u32 %v7443_v30, %v7448_v57 }
 0x2a4   : > { %v7520_v11 = vld [vmem:[%s5250_s5 + $0x470] sm:$0xff]  ;;  %4556 = vmatpush.bf16.xpose.msrb.mxu0 %v4790_v16  ;;  %4570 = vmatpush.bf16.xpose.msrb.mxu1 %v4794_v22  ;;  %v1339_v22 = vadd.f32 %v531_v40, %v515_v32  ;;  %v1563_v20 = vadd.f32 %v595_v9, %v579_v37  ;;  %v8729_v16 = vor.u32 %v7433_v53, %v7428_v14 }
 0x2a5   : > { %v7529_v45 = vld [vmem:[%s5250_s5 + $0x370] sm:$0xff]  ;;  %4584 = vmatpush.bf16.xpose.msrb.mxu2 %v4798_v34  ;;  %4598 = vmatpush.bf16.xpose.msrb.mxu3 %v4802_v39  ;;  %v1004_v39 = vrot.slane %v1003_v26, 4  ;;  %v1228_v31 = vrot.slane %v1227_v43, 4  ;;  %v1452_v41 = vrot.slane %v1451_v15, 4  ;;  %v8731_v56 = vor.u32 %v7474_v3, %v7453_v35 }
 0x2a6   : > { %8720 = vst [vmem:[#allocation45_spill] sm:$0xff] %v7529_v45  ;;  %v7532_v59 = vld [vmem:[%s5250_s5 + $0x3b0] sm:$0xff]  ;;  %v627_v23 = vunpack.c.l.bf16 %v7529_v45  ;;  %v1340_v60 = vrot.slane %v1339_v22, 4  ;;  %v1564_v54 = vrot.slane %v1563_v20, 4  ;;  %v8732_v32 = vor.u32 %v7479_v47, %v7484_v36 }
 0x2a7   : > { %8721 = vst [vmem:[#allocation2_spill] sm:$0xff] %v7532_v59  ;;  %v7535_v25 = vld [vmem:[%s5250_s5 + $0x4b0] sm:$0xff]  ;;  %v643_v63 = vunpack.c.l.bf16 %v7532_v59  ;;  %v1116_v59 = vrot.slane %v1115_v33, 4  ;;  %v1005_v7 = vadd.f32 %v1004_v39, %v1003_v26  ;;  %v1229_v13 = vadd.f32 %v1228_v31, %v1227_v43 }
 0x2a8   : > { %v7539_v51 = vld [vmem:[%s5250_s5 + $0x3f0] sm:$0xff]  ;;  %v1341_v53 = vadd.f32 %v1340_v60, %v1339_v22  ;;  %v1453_v40 = vadd.f32 %v1452_v41, %v1451_v15  ;;  %v1565_v30 = vadd.f32 %v1564_v54, %v1563_v20 }
 0x2a9   : > { %8722 = vst [vmem:[#allocation5_spill] sm:$0xff] %v7539_v51  ;;  %v7542_v24 = vld [vmem:[%s5250_s5 + $0x4f0] sm:$0xff]  ;;  %v659_v19 = vunpack.c.l.bf16 %v7539_v51  ;;  %v1675_v51 = vadd.f32 %v627_v23, %v611_v58  ;;  %v1117_v28 = vadd.f32 %v1116_v59, %v1115_v33  ;;  %v1006_v57 = vrot.slane %v1005_v7, 2 }
 0x2aa   : > { %v7545_v2 = vld [vmem:[%s5250_s5 + $0x530] sm:$0xff]  ;;  %v1230_v43 = vrot.slane %v1229_v13, 2  ;;  %v1342_v50 = vrot.slane %v1341_v53, 2  ;;  %v1454_v55 = vrot.slane %v1453_v40, 2  ;;  %v1566_v37 = vrot.slane %v1565_v30, 2 }
 0x2ab   : > { %v7552_v49 = vld [vmem:[%s5250_s5 + $0x570] sm:$0xff]  ;;  %v1787_v45 = vadd.f32 %v659_v19, %v643_v63  ;;  %v1676_v6 = vrot.slane %v1675_v51, 4  ;;  %v1118_v59 = vrot.slane %v1117_v28, 2  ;;  %v1007_v47 = vadd.f32 %v1006_v57, %v1005_v7 }
 0x2ac   : > { %v7555_v12 = vld [vmem:[%s5250_s5 + $0x5b0] sm:$0xff]  ;;  %4557 = vmatpush.bf16.xpose.msrb.mxu0 %v8729_v16  ;;  %4571 = vmatpush.bf16.xpose.msrb.mxu1 %v8730_v29  ;;  %v1231_v58 = vadd.f32 %v1230_v43, %v1229_v13  ;;  %v1343_v15 = vadd.f32 %v1342_v50, %v1341_v53  ;;  %v7620_v41 = vadd.f32 %v1454_v55, %v1453_v40  ;;  %v8736_v53 = vunpack.c.l.bf16 %v7517_v4 }
 0x2ad   : > { %v7558_v52 = vld [vmem:[%s5250_s5 + $0x5f0] sm:$0xff]  ;;  %v1788_v21 = vrot.slane %v1787_v45, 4  ;;  %4585 = vmatpush.bf16.xpose.msrb.mxu2 %v8731_v56  ;;  %4599 = vmatpush.bf16.xpose.msrb.mxu3 %v8732_v32  ;;  %v1677_v31 = vadd.f32 %v1676_v6, %v1675_v51  ;;  %v1119_v36 = vadd.f32 %v1118_v59, %v1117_v28  ;;  %v7622_v63 = vadd.f32 %v1566_v37, %v1565_v30 }
 0x2ae   : > { %8723 = vst [vmem:[#allocation6_spill] sm:$0xff] %v7558_v52  ;;  %v7565_v48 = vld [vmem:[%s5250_s5 + $0x630] sm:$0xff]  ;;  %v1008_v51 = vrot.slane %v1007_v47, 1  ;;  %v1232_v54 = vrot.slane %v1231_v58, 1  ;;  %v1344_v26 = vrot.slane %v1343_v15, 1  ;;  %v1456_v39 = vrot.slane %v7620_v41, 1 }
 0x2af   : > { %8724 = vst [vmem:[#allocation3_spill] sm:$0xff] %v7565_v48  ;;  %v7568_v5 = vld [vmem:[%s5250_s5 + $0x670] sm:$0xff]  ;;  %v1789_v35 = vadd.f32 %v1788_v21, %v1787_v45  ;;  %v1678_v23 = vrot.slane %v1677_v31, 2  ;;  %v1120_v19 = vrot.slane %v1119_v36, 1  ;;  %v1568_v29 = vrot.slane %v7622_v63, 1 }
 0x2b0   : > { %8725 = vst [vmem:[#allocation4_spill] sm:$0xff] %v7568_v5  ;;  %v7571_v38 = vld [vmem:[%s5250_s5 + $0x6b0] sm:$0xff]  ;;  %v1009_v28 = vadd.f32 %v1008_v51, %v1007_v47  ;;  %v7634_v21 = vadd.f32 %v1232_v54, %v1231_v58  ;;  %v7637_v32 = vadd.f32 %v1344_v26, %v1343_v15  ;;  %v8737_v40 = vunpack.c.l.bf16 %v7520_v11 }
 0x2b1   : > { %8726 = vst [vmem:[#allocation7_spill] sm:$0xff] %v7571_v38  ;;  %v7578_v42 = vld [vmem:[%s5250_s5 + $0x6f0] sm:$0xff]  ;;  %v1790_v6 = vrot.slane %v1789_v35, 2  ;;  %v7624_v45 = vadd.f32 %v1678_v23, %v1677_v31  ;;  %v1121_v13 = vadd.f32 %v1120_v19, %v1119_v36  ;;  %v8738_v57 = vunpack.c.l.bf16 %v7535_v25 }
 0x2b2   : > { %8727 = vst [vmem:[#allocation8_spill] sm:$0xff] %v7578_v42  ;;  %v7596_v34 = vld [vmem:[%s5250_s5 + $0x730] sm:$0xff]  ;;  %v1899_v30 = vadd.f32 %v8737_v40, %v8736_v53  ;;  %v8739_v59 = vunpack.c.l.bf16 %v7542_v24  ;;  %v8740_v31 = vunpack.c.l.bf16 %v7545_v2  ;;  %v8741_v50 = vunpack.c.l.bf16 %v7552_v49 }
 0x2b3   : > { %8728 = vst [vmem:[#allocation9_spill] sm:$0xff] %v7596_v34  ;;  %v867_v14 = vunpack.c.l.bf16 %v7596_v34  ;;  %v7612_v3 = vld [vmem:[%s5250_s5 + $0x770] sm:$0xff]  ;;  %v7628_v22 = vadd.f32 %v1790_v6, %v1789_v35  ;;  %v1680_v56 = vrot.slane %v7624_v45, 1  ;;  %v8742_v35 = vunpack.c.l.bf16 %v7555_v12 }
 0x2b4   : > { %8733 = vst [vmem:[#allocation10_spill] sm:$0xff] %v7612_v3  ;;  %v7615_v9 = vld [vmem:[%s5250_s5 + $0x7b0] sm:$0xff]  ;;  %v883_v16 = vunpack.c.l.bf16 %v7612_v3  ;;  %v2011_v43 = vadd.f32 %v8739_v59, %v8738_v57  ;;  %v2123_v55 = vadd.f32 %v8741_v50, %v8740_v31  ;;  %v8743_v47 = vunpack.c.l.bf16 %v7558_v52 }
 0x2b5   : > { %8734 = vst [vmem:[#allocation11_spill] sm:$0xff] %v7615_v9  ;;  %v7618_v60 = vld [vmem:[%s5250_s5 + $0x7f0] sm:$0xff]  ;;  %v899_v33 = vunpack.c.l.bf16 %v7615_v9  ;;  %v1792_v37 = vrot.slane %v7628_v22, 1  ;;  %v8744_v58 = vunpack.c.l.bf16 %v7565_v48  ;;  %v8745_v23 = vunpack.c.l.bf16 %v7568_v5 }
 0x2b6   : > { %8735 = vst [vmem:[#allocation12_spill] sm:$0xff] %v7618_v60  ;;  %v915_v20 = vunpack.c.l.bf16 %v7618_v60  ;;  %v2235_v36 = vadd.f32 %v8743_v47, %v8742_v35  ;;  %v8746_v6 = vunpack.c.l.bf16 %v7571_v38  ;;  %v8747_v51 = vunpack.c.l.bf16 %v7578_v42 }
 0x2b7   : > { %v2347_v15 = vadd.f32 %v8745_v23, %v8744_v58  ;;  %v1900_v54 = vrot.slane %v1899_v30, 4  ;;  %v2012_v26 = vrot.slane %v2011_v43, 4  ;;  %v2124_v53 = vrot.slane %v2123_v55, 4 }
 0x2b8   : > { %v2459_v19 = vadd.f32 %v8747_v51, %v8746_v6  ;;  %v2571_v40 = vadd.f32 %v883_v16, %v867_v14  ;;  %v2236_v57 = vrot.slane %v2235_v36, 4  ;;  %v2683_v50 = vadd.f32 %v915_v20, %v899_v33 }
 0x2b9   : > { %v2348_v59 = vrot.slane %v2347_v15, 4  ;;  %v1901_v7 = vadd.f32 %v1900_v54, %v1899_v30  ;;  %v2013_v35 = vadd.f32 %v2012_v26, %v2011_v43  ;;  %v2125_v47 = vadd.f32 %v2124_v53, %v2123_v55 }
 0x2ba   : > { %v2460_v31 = vrot.slane %v2459_v19, 4  ;;  %v2572_v60 = vrot.slane %v2571_v40, 4  ;;  %v2237_v9 = vadd.f32 %v2236_v57, %v2235_v36  ;;  %v2684_v23 = vrot.slane %v2683_v50, 4 }
 0x2bb   : > { %v2349_v3 = vadd.f32 %v2348_v59, %v2347_v15  ;;  %v1902_v34 = vrot.slane %v1901_v7, 2  ;;  %v2014_v18 = vrot.slane %v2013_v35, 2  ;;  %v2126_v42 = vrot.slane %v2125_v47, 2 }
 0x2bc   : > { %v2461_v58 = vadd.f32 %v2460_v31, %v2459_v19  ;;  %v2573_v6 = vadd.f32 %v2572_v60, %v2571_v40  ;;  %v2238_v51 = vrot.slane %v2237_v9, 2  ;;  %v2685_v14 = vadd.f32 %v2684_v23, %v2683_v50 }
 0x2bd   : > { %v2350_v38 = vrot.slane %v2349_v3, 2  ;;  %v1903_v16 = vadd.f32 %v1902_v34, %v1901_v7  ;;  %v2015_v48 = vadd.f32 %v2014_v18, %v2013_v35  ;;  %v2127_v52 = vadd.f32 %v2126_v42, %v2125_v47 }
 0x2be   : > { %v2462_v5 = vrot.slane %v2461_v58, 2  ;;  %v2574_v33 = vrot.slane %v2573_v6, 2  ;;  %v2239_v20 = vadd.f32 %v2238_v51, %v2237_v9  ;;  %v2686_v55 = vrot.slane %v2685_v14, 2 }
 0x2bf   : > { %v2351_v30 = vadd.f32 %v2350_v38, %v2349_v3  ;;  %v1904_v36 = vrot.slane %v1903_v16, 1  ;;  %v2016_v15 = vrot.slane %v2015_v48, 1  ;;  %v2128_v19 = vrot.slane %v2127_v52, 1 }
 0x2c0   : > { %v2463_v43 = vadd.f32 %v2462_v5, %v2461_v58  ;;  %v2575_v54 = vadd.f32 %v2574_v33, %v2573_v6  ;;  %v2240_v26 = vrot.slane %v2239_v20, 1  ;;  %v2687_v60 = vadd.f32 %v2686_v55, %v2685_v14 }
 0x2c1   : > { %v2352_v53 = vrot.slane %v2351_v30, 1  ;;  %v1457_v40 = vadd.f32 %v1456_v39, %v7620_v41  ;;  %v1905_v59 = vadd.f32 %v1904_v36, %v1903_v16  ;;  %v2017_v31 = vadd.f32 %v2016_v15, %v2015_v48 }
 0x2c2   : > { %v2464_v57 = vrot.slane %v2463_v43, 1  ;;  %v2576_v34 = vrot.slane %v2575_v54, 1  ;;  %v2129_v18 = vadd.f32 %v2128_v19, %v2127_v52  ;;  %v2241_v42 = vadd.f32 %v2240_v26, %v2239_v20 }
 0x2c3   : > { %v2353_v7 = vadd.f32 %v2352_v53, %v2351_v30  ;;  %v2688_v9 = vrot.slane %v2687_v60, 1  ;;  %v1569_v5 = vadd.f32 %v1568_v29, %v7622_v63  ;;  %v2723_v3 = vmul.f32 0.0625, %v1009_v28 }
 0x2c4   : > { %v2465_v38 = vadd.f32 %v2464_v57, %v2463_v43  ;;  %v2739_v50 = vmul.f32 0.0625, %v1121_v13  ;;  %v1681_v35 = vadd.f32 %v1680_v56, %v7624_v45  ;;  %v1793_v47 = vadd.f32 %v1792_v37, %v7628_v22 }
 0x2c5   : > { %v2577_v58 = vadd.f32 %v2576_v34, %v2575_v54  ;;  %v2755_v23 = vmul.f32 0.0625, %v7634_v21  ;;  %v2689_v41 = vadd.f32 %v2688_v9, %v2687_v60  ;;  %v2771_v48 = vmul.f32 0.0625, %v7637_v32 }
 0x2c6   : > { %v2851_v39 = vmul.f32 0.0625, %v1905_v59  ;;  %v2867_v52 = vmul.f32 0.0625, %v2017_v31  ;;  %v2787_v6 = vmul.f32 0.0625, %v1457_v40  ;;  %v2883_v51 = vmul.f32 0.0625, %v2129_v18 }
 0x2c7   : > { %v2899_v14 = vmul.f32 0.0625, %v2241_v42  ;;  %v2915_v16 = vmul.f32 0.0625, %v2353_v7  ;;  %v2803_v63 = vmul.f32 0.0625, %v1569_v5  ;;  %v2931_v29 = vmul.f32 0.0625, %v2465_v38 }
 0x2c8   : > { %v2979_v28 = vpack.c.bf16 %v2723_v3, %v2723_v3  ;;  %v2995_v13 = vpack.c.bf16 %v2739_v50, %v2739_v50  ;;  %v2819_v33 = vmul.f32 0.0625, %v1681_v35  ;;  %v2835_v45 = vmul.f32 0.0625, %v1793_v47 }
 0x2c9   : > { %v2947_v56 = vmul.f32 0.0625, %v2577_v58  ;;  %v3011_v22 = vpack.c.bf16 %v2755_v23, %v2755_v23  ;;  %v2963_v37 = vmul.f32 0.0625, %v2689_v41  ;;  %v3027_v20 = vpack.c.bf16 %v2771_v48, %v2771_v48 }
 0x2ca   : > { %v3107_v21 = vpack.c.bf16 %v2851_v39, %v2851_v39  ;;  %v3123_v30 = vpack.c.bf16 %v2867_v52, %v2867_v52  ;;  %v3043_v43 = vpack.c.bf16 %v2787_v6, %v2787_v6  ;;  %v3139_v32 = vpack.c.bf16 %v2883_v51, %v2883_v51 }
 0x2cb   : > { %v3155_v55 = vpack.c.bf16 %v2899_v14, %v2899_v14  ;;  %v3171_v36 = vpack.c.bf16 %v2915_v16, %v2915_v16  ;;  %v3059_v15 = vpack.c.bf16 %v2803_v63, %v2803_v63  ;;  %v3187_v19 = vpack.c.bf16 %v2931_v29, %v2931_v29 }
 0x2cc   : > { %v3555_v54 = vunpack.c.l.b16 %v2979_v28  ;;  %v3571_v26 = vunpack.c.l.b16 %v2995_v13  ;;  %v3075_v53 = vpack.c.bf16 %v2819_v33, %v2819_v33  ;;  %v3091_v57 = vpack.c.bf16 %v2835_v45, %v2835_v45 }
 0x2cd   : > { %v3203_v60 = vpack.c.bf16 %v2947_v56, %v2947_v56  ;;  %v3587_v40 = vunpack.c.l.b16 %v3011_v22  ;;  %v3219_v59 = vpack.c.bf16 %v2963_v37, %v2963_v37  ;;  %v3603_v31 = vunpack.c.l.b16 %v3027_v20 }
 0x2ce   : > { %v3683_v34 = vunpack.c.l.b16 %v3107_v21  ;;  %v3699_v18 = vunpack.c.l.b16 %v3123_v30  ;;  %v3619_v42 = vunpack.c.l.b16 %v3043_v43  ;;  %v3715_v7 = vunpack.c.l.b16 %v3139_v32  ;;  %v8748_v43 = vld [vmem:[#allocation43_spill] sm:$0xff] }
 0x2cf   : > { %v3731_v9 = vunpack.c.l.b16 %v3155_v55  ;;  %v3747_v5 = vunpack.c.l.b16 %v3171_v36  ;;  %v3635_v38 = vunpack.c.l.b16 %v3059_v15  ;;  %v3763_v3 = vunpack.c.l.b16 %v3187_v19  ;;  %v8749_v55 = vld [vmem:[#allocation44_spill] sm:$0xff] }
 0x2d0   : > { %v3890_v50 = vsel %vm3799_vm0, %v3571_v26, %v3555_v54  ;;  %v4002_v35 = vsel %vm3799_vm0, %v3699_v18, %v3683_v34  ;;  %v3651_v47 = vunpack.c.l.b16 %v3075_v53  ;;  %v3779_v58 = vunpack.c.l.b16 %v3203_v60  ;;  %v8752_v54 = vld [vmem:[#allocation5_spill] sm:$0xff]  ;;  %v8755_v18 = vld [vmem:[#allocation4_spill] sm:$0xff] }
 0x2d1   : > { %v3891_v23 = vsel %vm3801_vm1, %v3587_v40, %v3890_v50  ;;  %v4003_v41 = vsel %vm3801_vm1, %v3715_v7, %v4002_v35  ;;  %v3667_v48 = vunpack.c.l.b16 %v3091_v57  ;;  %v3795_v39 = vunpack.c.l.b16 %v3219_v59  ;;  %v8753_v40 = vld [vmem:[#allocation6_spill] sm:$0xff]  ;;  %v8756_v7 = vld [vmem:[#allocation7_spill] sm:$0xff] }
 0x2d2   : > { %v3892_v52 = vsel %vm3803_vm2, %v3603_v31, %v3891_v23  ;;  %v4004_v6 = vsel %vm3803_vm2, %v3731_v9, %v4003_v41  ;;  %v436_v16 = vunpack.c.h.bf16 %v7399_v44  ;;  %v452_v63 = vunpack.c.h.bf16 %v7436_v46  ;;  %v8754_v31 = vld [vmem:[#allocation3_spill] sm:$0xff] }
 0x2d3   : > { %v3893_v51 = vsel %vm3805_vm3, %v3619_v42, %v3892_v52  ;;  %v4005_v14 = vsel %vm3805_vm3, %v3747_v5, %v4004_v6  ;;  %v468_v13 = vunpack.c.h.bf16 %v7456_v10  ;;  %v484_v33 = vunpack.c.h.bf16 %v7459_v17  ;;  %v8757_v5 = vld [vmem:[#allocation8_spill] sm:$0xff] }
 0x2d4   : > { %v3894_v29 = vsel %vm3807_vm4, %v3635_v38, %v3893_v51  ;;  %v4006_v28 = vsel %vm3807_vm4, %v3763_v3, %v4005_v14  ;;  %v500_v22 = vunpack.c.h.bf16 %v7462_v27  ;;  %v516_v37 = vunpack.c.h.bf16 %v7465_v1  ;;  %v8750_v27 = vld [vmem:[#allocation45_spill] sm:$0xff]  ;;  %v8751_v1 = vld [vmem:[#allocation2_spill] sm:$0xff] }
 0x2d5   : > { %v3895_v45 = vsel %vm3809_vm5, %v3651_v47, %v3894_v29  ;;  %v4007_v56 = vsel %vm3809_vm5, %v3779_v58, %v4006_v28  ;;  %v532_v20 = vunpack.c.h.bf16 %v7487_v8  ;;  %v548_v21 = vunpack.c.h.bf16 %v7495_v0  ;;  %v8758_v3 = vld [vmem:[#allocation42_spill] sm:$0xff] }
 0x2d6   : > { %v3896_v44 = vsel %vm3811_vm6, %v3667_v48, %v3895_v45  ;;  %v4008_v46 = vsel %vm3811_vm6, %v3795_v39, %v4007_v56  ;;  %v564_v10 = vunpack.c.h.bf16 %v7498_v62  ;;  %v580_v17 = vunpack.c.h.bf16 %v7501_v61 }
 0x2d7   : > { %v4042_v30 = vpack.c.b16 %v4008_v46, %v3896_v44  ;;  %v596_v32 = vunpack.c.h.bf16 %v8748_v43  ;;  %v612_v36 = vunpack.c.h.bf16 %v8749_v55  ;;  %v628_v15 = vunpack.c.h.bf16 %v8750_v27 }
 0x2d8   : > { %v644_v19 = vunpack.c.h.bf16 %v8751_v1  ;;  %v660_v26 = vunpack.c.h.bf16 %v8752_v54  ;;  %v676_v8 = vunpack.c.h.bf16 %v7517_v4  ;;  %v692_v0 = vunpack.c.h.bf16 %v7520_v11 }
 0x2d9   : > { %4558 = vmatmul.bf16.vlgmr.msrb.gmra.mxu0 %v4042_v30  ;;  %v708_v53 = vunpack.c.h.bf16 %v7535_v25  ;;  %v724_v62 = vunpack.c.h.bf16 %v7542_v24  ;;  %v740_v61 = vunpack.c.h.bf16 %v7545_v2  ;;  %v756_v57 = vunpack.c.h.bf16 %v7552_v49 }
 0x2da   : > { %v772_v60 = vunpack.c.h.bf16 %v7555_v12  ;;  %v788_v59 = vunpack.c.h.bf16 %v8753_v40  ;;  %v804_v34 = vunpack.c.h.bf16 %v8754_v31  ;;  %v820_v42 = vunpack.c.h.bf16 %v8755_v18 }
 0x2db   : > { %v836_v9 = vunpack.c.h.bf16 %v8756_v7  ;;  %v852_v38 = vunpack.c.h.bf16 %v8757_v5  ;;  %v8759_v50 = vunpack.c.h.bf16 %v8758_v3  ;;  %v1122_v47 = vadd.f32 %v468_v13, %v452_v63 }
 0x2dc   : > { %v1234_v58 = vadd.f32 %v500_v22, %v484_v33  ;;  %v1346_v23 = vadd.f32 %v532_v20, %v516_v37  ;;  %v1458_v41 = vadd.f32 %v564_v10, %v548_v21  ;;  %v1570_v48 = vadd.f32 %v596_v32, %v580_v17 }
 0x2dd   : > { %v1010_v35 = vadd.f32 %v436_v16, %v8759_v50  ;;  %v1682_v39 = vadd.f32 %v628_v15, %v612_v36  ;;  %v1794_v52 = vadd.f32 %v660_v26, %v644_v19  ;;  %v1123_v51 = vrot.slane %v1122_v47, 4 }
 0x2de   : > { %v1235_v14 = vrot.slane %v1234_v58, 4  ;;  %v1347_v29 = vrot.slane %v1346_v23, 4  ;;  %v1459_v28 = vrot.slane %v1458_v41, 4  ;;  %v1571_v45 = vrot.slane %v1570_v48, 4 }
 0x2df   : > { %v1011_v6 = vrot.slane %v1010_v35, 4  ;;  %v1683_v56 = vrot.slane %v1682_v39, 4  ;;  %v1795_v44 = vrot.slane %v1794_v52, 4  ;;  %v1124_v30 = vadd.f32 %v1123_v51, %v1122_v47  ;;  %v8763_v51 = vld [vmem:[#allocation12_spill] sm:$0xff] }
 0x2e0   : > { %v1236_v43 = vadd.f32 %v1235_v14, %v1234_v58  ;;  %v1348_v55 = vadd.f32 %v1347_v29, %v1346_v23  ;;  %v1460_v16 = vadd.f32 %v1459_v28, %v1458_v41  ;;  %v1572_v63 = vadd.f32 %v1571_v45, %v1570_v48  ;;  %v8760_v23 = vld [vmem:[#allocation9_spill] sm:$0xff]  ;;  %v8761_v48 = vld [vmem:[#allocation10_spill] sm:$0xff] }
 0x2e1   : > { %v1012_v46 = vadd.f32 %v1011_v6, %v1010_v35  ;;  %v1684_v13 = vadd.f32 %v1683_v56, %v1682_v39  ;;  %v1796_v33 = vadd.f32 %v1795_v44, %v1794_v52  ;;  %v1125_v37 = vrot.slane %v1124_v30, 2  ;;  %v8762_v52 = vld [vmem:[#allocation11_spill] sm:$0xff] }
 0x2e2   : > { %v1237_v20 = vrot.slane %v1236_v43, 2  ;;  %v1349_v21 = vrot.slane %v1348_v55, 2  ;;  %v1461_v10 = vrot.slane %v1460_v16, 2  ;;  %v1573_v17 = vrot.slane %v1572_v63, 2 }
 0x2e3   : > { %v1013_v22 = vrot.slane %v1012_v46, 2  ;;  %v1685_v32 = vrot.slane %v1684_v13, 2  ;;  %v1797_v36 = vrot.slane %v1796_v33, 2  ;;  %v1126_v15 = vadd.f32 %v1125_v37, %v1124_v30 }
 0x2e4   : > { %v1238_v1 = vadd.f32 %v1237_v20, %v1236_v43  ;;  %v1350_v19 = vadd.f32 %v1349_v21, %v1348_v55  ;;  %v7713_v54 = vadd.f32 %v1461_v10, %v1460_v16  ;;  %v7715_v26 = vadd.f32 %v1573_v17, %v1572_v63 }
 0x2e5   : > { %v1014_v27 = vadd.f32 %v1013_v22, %v1012_v46  ;;  %v7717_v5 = vadd.f32 %v1685_v32, %v1684_v13  ;;  %v7719_v3 = vadd.f32 %v1797_v36, %v1796_v33  ;;  %v1127_v35 = vrot.slane %v1126_v15, 1 }
 0x2e6   : > { %v1239_v47 = vrot.slane %v1238_v1, 1  ;;  %v1351_v58 = vrot.slane %v1350_v19, 1  ;;  %v868_v41 = vunpack.c.h.bf16 %v8760_v23  ;;  %v884_v39 = vunpack.c.h.bf16 %v8761_v48 }
 0x2e7   : > { %v1015_v50 = vrot.slane %v1014_v27, 1  ;;  %v900_v6 = vunpack.c.h.bf16 %v8762_v52  ;;  %v916_v14 = vunpack.c.h.bf16 %v8763_v51  ;;  %v1463_v29 = vrot.slane %v7713_v54, 1 }
 0x2e8   : > { %v1575_v28 = vrot.slane %v7715_v26, 1  ;;  %v1687_v45 = vrot.slane %v7717_v5, 1  ;;  %v1799_v56 = vrot.slane %v7719_v3, 1  ;;  %v1128_v46 = vadd.f32 %v1127_v35, %v1126_v15 }
 0x2e9   : > { %v1016_v44 = vadd.f32 %v1015_v50, %v1014_v27  ;;  %v7729_v30 = vadd.f32 %v1239_v47, %v1238_v1  ;;  %v7731_v43 = vadd.f32 %v1351_v58, %v1350_v19  ;;  %v1906_v55 = vadd.f32 %v692_v0, %v676_v8 }
 0x2ea   : > { %v2018_v16 = vadd.f32 %v724_v62, %v708_v53  ;;  %v2130_v63 = vadd.f32 %v756_v57, %v740_v61  ;;  %v2242_v13 = vadd.f32 %v788_v59, %v772_v60  ;;  %v2354_v4 = vadd.f32 %v820_v42, %v804_v34 }
 0x2eb   : > { %v2466_v11 = vadd.f32 %v852_v38, %v836_v9  ;;  %v2578_v25 = vadd.f32 %v884_v39, %v868_v41  ;;  %v2690_v24 = vadd.f32 %v916_v14, %v900_v6  ;;  %v1907_v8 = vrot.slane %v1906_v55, 4 }
 0x2ec   : > { %v2019_v2 = vrot.slane %v2018_v16, 4  ;;  %v2131_v0 = vrot.slane %v2130_v63, 4  ;;  %v2243_v49 = vrot.slane %v2242_v13, 4  ;;  %v2355_v53 = vrot.slane %v2354_v4, 4 }
 0x2ed   : > { %v2467_v62 = vrot.slane %v2466_v11, 4  ;;  %v2579_v12 = vrot.slane %v2578_v25, 4  ;;  %v2691_v61 = vrot.slane %v2690_v24, 4  ;;  %v1908_v57 = vadd.f32 %v1907_v8, %v1906_v55 }
 0x2ee   : > { %v2020_v60 = vadd.f32 %v2019_v2, %v2018_v16  ;;  %v2132_v40 = vadd.f32 %v2131_v0, %v2130_v63  ;;  %v2244_v59 = vadd.f32 %v2243_v49, %v2242_v13  ;;  %v2356_v31 = vadd.f32 %v2355_v53, %v2354_v4 }
 0x2ef   : > { %v2468_v18 = vadd.f32 %v2467_v62, %v2466_v11  ;;  %v2580_v34 = vadd.f32 %v2579_v12, %v2578_v25  ;;  %v2692_v42 = vadd.f32 %v2691_v61, %v2690_v24  ;;  %v1909_v7 = vrot.slane %v1908_v57, 2 }
 0x2f0   : > { %v2021_v9 = vrot.slane %v2020_v60, 2  ;;  %v2133_v38 = vrot.slane %v2132_v40, 2  ;;  %v2245_v33 = vrot.slane %v2244_v59, 2  ;;  %v2357_v22 = vrot.slane %v2356_v31, 2 }
 0x2f1   : > { %v2469_v37 = vrot.slane %v2468_v18, 2  ;;  %v2581_v20 = vrot.slane %v2580_v34, 2  ;;  %v2693_v21 = vrot.slane %v2692_v42, 2  ;;  %v1910_v10 = vadd.f32 %v1909_v7, %v1908_v57 }
 0x2f2   : > { %v2022_v17 = vadd.f32 %v2021_v9, %v2020_v60  ;;  %v2134_v32 = vadd.f32 %v2133_v38, %v2132_v40  ;;  %v2246_v36 = vadd.f32 %v2245_v33, %v2244_v59  ;;  %v2358_v27 = vadd.f32 %v2357_v22, %v2356_v31 }
 0x2f3   : > { %v2470_v15 = vadd.f32 %v2469_v37, %v2468_v18  ;;  %v2582_v1 = vadd.f32 %v2581_v20, %v2580_v34  ;;  %v2694_v19 = vadd.f32 %v2693_v21, %v2692_v42  ;;  %v1911_v50 = vrot.slane %v1910_v10, 1 }
 0x2f4   : > { %v2023_v35 = vrot.slane %v2022_v17, 1  ;;  %v2135_v47 = vrot.slane %v2134_v32, 1  ;;  %v2247_v58 = vrot.slane %v2246_v36, 1  ;;  %v2359_v23 = vrot.slane %v2358_v27, 1 }
 0x2f5   : > { %v2471_v41 = vrot.slane %v2470_v15, 1  ;;  %v2583_v48 = vrot.slane %v2582_v1, 1  ;;  %v2695_v39 = vrot.slane %v2694_v19, 1  ;;  %v1912_v52 = vadd.f32 %v1911_v50, %v1910_v10  ;;  %v7762_v50 = vld [vmem:[%s5250_s5 + $0x38] sm:$0xff] }
 0x2f6   : > { %v2024_v6 = vadd.f32 %v2023_v35, %v2022_v17  ;;  %v2136_v51 = vadd.f32 %v2135_v47, %v2134_v32  ;;  %v2248_v14 = vadd.f32 %v2247_v58, %v2246_v36  ;;  %v1464_v55 = vadd.f32 %v1463_v29, %v7713_v54  ;;  %v7765_v35 = vld [vmem:[%s5250_s5 + $0x78] sm:$0xff] }
 0x2f7   : > { %v1576_v16 = vadd.f32 %v1575_v28, %v7715_v26  ;;  %v1688_v63 = vadd.f32 %v1687_v45, %v7717_v5  ;;  %v2360_v13 = vadd.f32 %v2359_v23, %v2358_v27  ;;  %v1800_v4 = vadd.f32 %v1799_v56, %v7719_v3 }
 0x2f8   : > { %v2472_v11 = vadd.f32 %v2471_v41, %v2470_v15  ;;  %v2724_v25 = vmul.f32 0.0625, %v1016_v44  ;;  %v2740_v24 = vmul.f32 0.0625, %v1128_v46  ;;  %v2584_v8 = vadd.f32 %v2583_v48, %v2582_v1  ;;  %v7770_v48 = vld [vmem:[%s5250_s5 + $0xb8] sm:$0xff] }
 0x2f9   : > { %v2696_v2 = vadd.f32 %v2695_v39, %v2694_v19  ;;  %v2756_v0 = vmul.f32 0.0625, %v7729_v30  ;;  %v2772_v49 = vmul.f32 0.0625, %v7731_v43  ;;  %v2852_v53 = vmul.f32 0.0625, %v1912_v52  ;;  %v7773_v39 = vld [vmem:[%s5250_s5 + $0xf8] sm:$0xff] }
 0x2fa   : > { %v2868_v62 = vmul.f32 0.0625, %v2024_v6  ;;  %v2884_v12 = vmul.f32 0.0625, %v2136_v51  ;;  %v2900_v54 = vmul.f32 0.0625, %v2248_v14  ;;  %v2788_v29 = vmul.f32 0.0625, %v1464_v55  ;;  %v7778_v55 = vld [vmem:[%s5250_s5 + $0x138] sm:$0xff] }
 0x2fb   : > { %v2804_v26 = vmul.f32 0.0625, %v1576_v16  ;;  %v2820_v28 = vmul.f32 0.0625, %v1688_v63  ;;  %v2916_v5 = vmul.f32 0.0625, %v2360_v13  ;;  %v2836_v45 = vmul.f32 0.0625, %v1800_v4  ;;  %v7781_v16 = vld [vmem:[%s5250_s5 + $0x178] sm:$0xff] }
 0x2fc   : > { %v2932_v61 = vmul.f32 0.0625, %v2472_v11  ;;  %v2980_v3 = vpack.c.bf16 %v2724_v25, %v2724_v25  ;;  %v2996_v56 = vpack.c.bf16 %v2740_v24, %v2740_v24  ;;  %v2948_v44 = vmul.f32 0.0625, %v2584_v8  ;;  %v7786_v4 = vld [vmem:[%s5250_s5 + $0x1b8] sm:$0xff] }
 0x2fd   : > { %v2964_v46 = vmul.f32 0.0625, %v2696_v2  ;;  %v3012_v57 = vpack.c.bf16 %v2756_v0, %v2756_v0  ;;  %v3028_v60 = vpack.c.bf16 %v2772_v49, %v2772_v49  ;;  %v3108_v40 = vpack.c.bf16 %v2852_v53, %v2852_v53  ;;  %v7789_v11 = vld [vmem:[%s5250_s5 + $0x1f8] sm:$0xff] }
 0x2fe   : > { %v3124_v30 = vpack.c.bf16 %v2868_v62, %v2868_v62  ;;  %v3140_v59 = vpack.c.bf16 %v2884_v12, %v2884_v12  ;;  %v3156_v43 = vpack.c.bf16 %v2900_v54, %v2900_v54  ;;  %v3044_v31 = vpack.c.bf16 %v2788_v29, %v2788_v29  ;;  %v7796_v0 = vld [vmem:[%s5250_s5 + $0x238] sm:$0xff] }
 0x2ff   : > { %v3060_v18 = vpack.c.bf16 %v2804_v26, %v2804_v26  ;;  %v3076_v34 = vpack.c.bf16 %v2820_v28, %v2820_v28  ;;  %v3172_v42 = vpack.c.bf16 %v2916_v5, %v2916_v5  ;;  %v3092_v7 = vpack.c.bf16 %v2836_v45, %v2836_v45  ;;  %v7799_v49 = vld [vmem:[%s5250_s5 + $0x278] sm:$0xff] }
 0x300   : > { %v3188_v9 = vpack.c.bf16 %v2932_v61, %v2932_v61  ;;  %v3556_v38 = vunpack.c.l.b16 %v2980_v3  ;;  %v3572_v33 = vunpack.c.l.b16 %v2996_v56  ;;  %v3204_v22 = vpack.c.bf16 %v2948_v44, %v2948_v44  ;;  %v7802_v53 = vld [vmem:[%s5250_s5 + $0x2b8] sm:$0xff] }
 0x301   : > { %v3220_v37 = vpack.c.bf16 %v2964_v46, %v2964_v46  ;;  %v3588_v20 = vunpack.c.l.b16 %v3012_v57  ;;  %v3604_v21 = vunpack.c.l.b16 %v3028_v60  ;;  %v3684_v10 = vunpack.c.l.b16 %v3108_v40  ;;  %v7805_v62 = vld [vmem:[%s5250_s5 + $0x438] sm:$0xff] }
 0x302   : > { %v3700_v17 = vunpack.c.l.b16 %v3124_v30  ;;  %v3716_v32 = vunpack.c.l.b16 %v3140_v59  ;;  %v3732_v36 = vunpack.c.l.b16 %v3156_v43  ;;  %v3620_v27 = vunpack.c.l.b16 %v3044_v31  ;;  %v7812_v28 = vld [vmem:[%s5250_s5 + $0x2f8] sm:$0xff] }
 0x303   : > { %v3636_v15 = vunpack.c.l.b16 %v3060_v18  ;;  %v3652_v1 = vunpack.c.l.b16 %v3076_v34  ;;  %v3748_v19 = vunpack.c.l.b16 %v3172_v42  ;;  %v3668_v47 = vunpack.c.l.b16 %v3092_v7  ;;  %v7815_v5 = vld [vmem:[%s5250_s5 + $0x338] sm:$0xff] }
 0x304   : > { %v3764_v58 = vunpack.c.l.b16 %v3188_v9  ;;  %v3897_v23 = vsel %vm3799_vm0, %v3572_v33, %v3556_v38  ;;  %v4009_v41 = vsel %vm3799_vm0, %v3700_v17, %v3684_v10  ;;  %v3780_v52 = vunpack.c.l.b16 %v3204_v22  ;;  %v7818_v45 = vld [vmem:[%s5250_s5 + $0x478] sm:$0xff] }
 0x305   : > { %v3796_v6 = vunpack.c.l.b16 %v3220_v37  ;;  %v3898_v51 = vsel %vm3801_vm1, %v3588_v20, %v3897_v23  ;;  %v4010_v14 = vsel %vm3801_vm1, %v3716_v32, %v4009_v41  ;;  %v421_v25 = vunpack.c.l.bf16 %v7762_v50  ;;  %8764 = vst [vmem:[#allocation13_spill] sm:$0xff] %v7818_v45  ;;  %v7821_v61 = vld [vmem:[%s5250_s5 + $0x4b8] sm:$0xff] }
 0x306   : > { %v3899_v63 = vsel %vm3803_vm2, %v3604_v21, %v3898_v51  ;;  %v4011_v13 = vsel %vm3803_vm2, %v3732_v36, %v4010_v14  ;;  %v437_v24 = vunpack.c.l.bf16 %v7765_v35  ;;  %v453_v12 = vunpack.c.l.bf16 %v7770_v48  ;;  %8765 = vst [vmem:[#allocation14_spill] sm:$0xff] %v7821_v61  ;;  %v7828_v57 = vld [vmem:[%s5250_s5 + $0x378] sm:$0xff] }
 0x307   : > { %v3900_v8 = vsel %vm3805_vm3, %v3620_v27, %v3899_v63  ;;  %v4012_v2 = vsel %vm3805_vm3, %v3748_v19, %v4011_v13  ;;  %v469_v54 = vunpack.c.l.bf16 %v7773_v39  ;;  %v485_v3 = vunpack.c.l.bf16 %v7778_v55  ;;  %v7831_v60 = vld [vmem:[%s5250_s5 + $0x3b8] sm:$0xff] }
 0x308   : > { %v3901_v29 = vsel %vm3807_vm4, %v3636_v15, %v3900_v8  ;;  %v4013_v26 = vsel %vm3807_vm4, %v3764_v58, %v4012_v2  ;;  %v501_v56 = vunpack.c.l.bf16 %v7781_v16  ;;  %v7834_v40 = vld [vmem:[%s5250_s5 + $0x3f8] sm:$0xff]  ;;  %v517_v30 = vunpack.c.l.bf16 %v7786_v4 }
 0x309   : > { %v3902_v44 = vsel %vm3809_vm5, %v3652_v1, %v3901_v29  ;;  %v4014_v46 = vsel %vm3809_vm5, %v3780_v52, %v4013_v26  ;;  %v533_v59 = vunpack.c.l.bf16 %v7789_v11  ;;  %v7841_v18 = vld [vmem:[%s5250_s5 + $0x4f8] sm:$0xff]  ;;  %v549_v7 = vunpack.c.l.bf16 %v7796_v0 }
 0x30a   : > { %v3903_v43 = vsel %vm3811_vm6, %v3668_v47, %v3902_v44  ;;  %v4015_v31 = vsel %vm3811_vm6, %v3796_v6, %v4014_v46  ;;  %8766 = vst [vmem:[#allocation15_spill] sm:$0xff] %v7841_v18  ;;  %v7844_v34 = vld [vmem:[%s5250_s5 + $0x538] sm:$0xff]  ;;  %v565_v9 = vunpack.c.l.bf16 %v7799_v49  ;;  %v581_v20 = vunpack.c.l.bf16 %v7802_v53 }
 0x30b   : > { %8767 = vst [vmem:[#allocation16_spill] sm:$0xff] %v7844_v34  ;;  %v7847_v42 = vld [vmem:[%s5250_s5 + $0x578] sm:$0xff]  ;;  %v4043_v38 = vpack.c.b16 %v4015_v31, %v3903_v43  ;;  %v597_v21 = vunpack.c.l.bf16 %v7812_v28  ;;  %v613_v10 = vunpack.c.l.bf16 %v7815_v5  ;;  %v629_v27 = vunpack.c.l.bf16 %v7828_v57 }
 0x30c   : > { %8768 = vst [vmem:[#allocation17_spill] sm:$0xff] %v7847_v42  ;;  %v7852_v33 = vld [vmem:[%s5250_s5 + $0x5b8] sm:$0xff]  ;;  %v645_v15 = vunpack.c.l.bf16 %v7831_v60  ;;  %v661_v1 = vunpack.c.l.bf16 %v7834_v40  ;;  %v677_v19 = vunpack.c.l.bf16 %v7805_v62  ;;  %v1017_v2 = vadd.f32 %v437_v24, %v421_v25 }
 0x30d   : > { %8769 = vst [vmem:[#allocation18_spill] sm:$0xff] %v7852_v33  ;;  %v7855_v22 = vld [vmem:[%s5250_s5 + $0x5f8] sm:$0xff]  ;;  %4572 = vmatmul.bf16.vlgmr.msrb.gmra.mxu1 %v4043_v38  ;;  %v1129_v29 = vadd.f32 %v469_v54, %v453_v12  ;;  %v1241_v26 = vadd.f32 %v501_v56, %v485_v3  ;;  %v1353_v44 = vadd.f32 %v533_v59, %v517_v30 }
 0x30e   : > { %8770 = vst [vmem:[#allocation19_spill] sm:$0xff] %v7855_v22  ;;  %v7858_v37 = vld [vmem:[%s5250_s5 + $0x638] sm:$0xff]  ;;  %v1465_v46 = vadd.f32 %v565_v9, %v549_v7  ;;  %v1018_v43 = vrot.slane %v1017_v2, 4  ;;  %v1577_v31 = vadd.f32 %v597_v21, %v581_v20  ;;  %v1689_v38 = vadd.f32 %v629_v27, %v613_v10 }
 0x30f   : > { %8771 = vst [vmem:[#allocation20_spill] sm:$0xff] %v7858_v37  ;;  %v7864_v17 = vld [vmem:[%s5250_s5 + $0x678] sm:$0xff]  ;;  %v1801_v52 = vadd.f32 %v661_v1, %v645_v15  ;;  %v1130_v6 = vrot.slane %v1129_v29, 4  ;;  %v1242_v41 = vrot.slane %v1241_v26, 4  ;;  %v1354_v51 = vrot.slane %v1353_v44, 4 }
 0x310   : > { %8772 = vst [vmem:[#allocation21_spill] sm:$0xff] %v7864_v17  ;;  %v7867_v32 = vld [vmem:[%s5250_s5 + $0x6b8] sm:$0xff]  ;;  %v1466_v23 = vrot.slane %v1465_v46, 4  ;;  %v1019_v14 = vadd.f32 %v1018_v43, %v1017_v2  ;;  %v1578_v63 = vrot.slane %v1577_v31, 4  ;;  %v1690_v58 = vrot.slane %v1689_v38, 4 }
 0x311   : > { %8773 = vst [vmem:[#allocation22_spill] sm:$0xff] %v7867_v32  ;;  %v7870_v36 = vld [vmem:[%s5250_s5 + $0x6f8] sm:$0xff]  ;;  %v1802_v13 = vrot.slane %v1801_v52, 4  ;;  %v1131_v47 = vadd.f32 %v1130_v6, %v1129_v29  ;;  %v1243_v8 = vadd.f32 %v1242_v41, %v1241_v26  ;;  %v1355_v25 = vadd.f32 %v1354_v51, %v1353_v44 }
 0x312   : > { %8774 = vst [vmem:[#allocation23_spill] sm:$0xff] %v7870_v36  ;;  %v1467_v24 = vadd.f32 %v1466_v23, %v1465_v46  ;;  %v1020_v12 = vrot.slane %v1019_v14, 2  ;;  %v1579_v54 = vadd.f32 %v1578_v63, %v1577_v31  ;;  %v1691_v3 = vadd.f32 %v1690_v58, %v1689_v38  ;;  %v7888_v20 = vld [vmem:[%s5250_s5 + $0x738] sm:$0xff] }
 0x313   : > { %v1803_v56 = vadd.f32 %v1802_v13, %v1801_v52  ;;  %v1132_v30 = vrot.slane %v1131_v47, 2  ;;  %v1244_v59 = vrot.slane %v1243_v8, 2  ;;  %v1356_v7 = vrot.slane %v1355_v25, 2  ;;  %8775 = vst [vmem:[#allocation24_spill] sm:$0xff] %v7888_v20  ;;  %v7891_v1 = vld [vmem:[%s5250_s5 + $0x778] sm:$0xff] }
 0x314   : > { %v1468_v9 = vrot.slane %v1467_v24, 2  ;;  %v1021_v21 = vadd.f32 %v1020_v12, %v1019_v14  ;;  %v1580_v10 = vrot.slane %v1579_v54, 2  ;;  %v1692_v27 = vrot.slane %v1691_v3, 2  ;;  %8776 = vst [vmem:[#allocation25_spill] sm:$0xff] %v7891_v1  ;;  %v7894_v41 = vld [vmem:[%s5250_s5 + $0x7b8] sm:$0xff] }
 0x315   : > { %v1804_v15 = vrot.slane %v1803_v56, 2  ;;  %8777 = vst [vmem:[#allocation26_spill] sm:$0xff] %v7894_v41  ;;  %v7897_v23 = vld [vmem:[%s5250_s5 + $0x7f8] sm:$0xff]  ;;  %v1133_v6 = vadd.f32 %v1132_v30, %v1131_v47  ;;  %v1245_v51 = vadd.f32 %v1244_v59, %v1243_v8  ;;  %v1357_v58 = vadd.f32 %v1356_v7, %v1355_v25  ;;  %s4673_s5 = sshll.u32 %s4665_s10, 1 }
 0x316   : > { %8778 = vst [vmem:[#allocation27_spill] sm:$0xff] %v7897_v23  ;;  %v7899_v52 = vadd.f32 %v1468_v9, %v1467_v24  ;;  %v1022_v63 = vrot.slane %v1021_v21, 1  ;;  %v7901_v13 = vadd.f32 %v1580_v10, %v1579_v54  ;;  %v7903_v2 = vadd.f32 %v1692_v27, %v1691_v3  ;;  %p145_p4 = scmp.lt.s32.totalorder %s4673_s5, 3 }
 0x317   : > { %v7905_v14 = vadd.f32 %v1804_v15, %v1803_v56  ;;  %v869_v29 = vunpack.c.l.bf16 %v7888_v20  ;;  %v1134_v26 = vrot.slane %v1133_v6, 1  ;;  %v1246_v44 = vrot.slane %v1245_v51, 1 }
 0x318   : > { %v1358_v46 = vrot.slane %v1357_v58, 1  ;;  %v885_v43 = vunpack.c.l.bf16 %v7891_v1  ;;  %v901_v47 = vunpack.c.l.bf16 %v7894_v41  ;;  %v917_v8 = vunpack.c.l.bf16 %v7897_v23  ;;  %s8808_s5 = smov (!%p145_p4, %s4673_s5), 3 }
 0x319   : > { %v1470_v31 = vrot.slane %v7899_v52, 1  ;;  %v7912_v38 = vadd.f32 %v1022_v63, %v1021_v21  ;;  %v1582_v25 = vrot.slane %v7901_v13, 1  ;;  %v1694_v24 = vrot.slane %v7903_v2, 1  ;;  %s4674_s19 = sshll.u32 %s8808_s5, 3 }
 0x31a   : > { %v1806_v12 = vrot.slane %v7905_v14, 1  ;;  %v1135_v54 = vadd.f32 %v1134_v26, %v1133_v6  ;;  %v1247_v3 = vadd.f32 %v1246_v44, %v1245_v51  ;;  %v7917_v56 = vadd.f32 %v1358_v46, %v1357_v58  ;;  %s148_s10 = scalar_lea.vmem %s8063_s2, %s4674_s19 }
 0x31b   : > { %v8779_v30 = vunpack.c.l.bf16 %v7818_v45  ;;  %v8780_v7 = vunpack.c.l.bf16 %v7821_v61  ;;  %v8781_v9 = vunpack.c.l.bf16 %v7841_v18  ;;  %v8782_v10 = vunpack.c.l.bf16 %v7844_v34 }
 0x31c   : > { %v8783_v27 = vunpack.c.l.bf16 %v7847_v42  ;;  %v8784_v6 = vunpack.c.l.bf16 %v7852_v33  ;;  %v8785_v51 = vunpack.c.l.bf16 %v7855_v22  ;;  %v8786_v63 = vunpack.c.l.bf16 %v7858_v37 }
 0x31d   : > { %v1913_v59 = vadd.f32 %v8779_v30, %v677_v19  ;;  %v2025_v21 = vadd.f32 %v8781_v9, %v8780_v7  ;;  %v8787_v26 = vunpack.c.l.bf16 %v7864_v17  ;;  %v8788_v46 = vunpack.c.l.bf16 %v7867_v32 }
 0x31e   : > { %v2137_v15 = vadd.f32 %v8783_v27, %v8782_v10  ;;  %v2249_v58 = vadd.f32 %v8785_v51, %v8784_v6  ;;  %v8789_v30 = vunpack.c.l.bf16 %v7870_v36  ;;  %v2585_v9 = vadd.f32 %v885_v43, %v869_v29 }
 0x31f   : > { %v2361_v19 = vadd.f32 %v8787_v26, %v8786_v63  ;;  %v1914_v44 = vrot.slane %v1913_v59, 4  ;;  %v2697_v23 = vadd.f32 %v917_v8, %v901_v47  ;;  %v2026_v41 = vrot.slane %v2025_v21, 4 }
 0x320   : > { %v2473_v7 = vadd.f32 %v8789_v30, %v8788_v46  ;;  %v2138_v10 = vrot.slane %v2137_v15, 4  ;;  %v2250_v27 = vrot.slane %v2249_v58, 4  ;;  %v2586_v6 = vrot.slane %v2585_v9, 4 }
 0x321   : > { %v2362_v1 = vrot.slane %v2361_v19, 4  ;;  %v1915_v20 = vadd.f32 %v1914_v44, %v1913_v59  ;;  %v2698_v51 = vrot.slane %v2697_v23, 4  ;;  %v2027_v37 = vadd.f32 %v2026_v41, %v2025_v21 }
 0x322   : > { %v2474_v22 = vrot.slane %v2473_v7, 4  ;;  %v2139_v33 = vadd.f32 %v2138_v10, %v2137_v15  ;;  %v2251_v17 = vadd.f32 %v2250_v27, %v2249_v58  ;;  %v2587_v32 = vadd.f32 %v2586_v6, %v2585_v9 }
 0x323   : > { %v2363_v63 = vadd.f32 %v2362_v1, %v2361_v19  ;;  %v1916_v26 = vrot.slane %v1915_v20, 2  ;;  %v2699_v34 = vadd.f32 %v2698_v51, %v2697_v23  ;;  %v2028_v36 = vrot.slane %v2027_v37, 2 }
 0x324   : > { %v2475_v42 = vadd.f32 %v2474_v22, %v2473_v7  ;;  %v2140_v46 = vrot.slane %v2139_v33, 2  ;;  %v2252_v29 = vrot.slane %v2251_v17, 2  ;;  %v2588_v30 = vrot.slane %v2587_v32, 2 }
 0x325   : > { %v2364_v43 = vrot.slane %v2363_v63, 2  ;;  %v1917_v47 = vadd.f32 %v1916_v26, %v1915_v20  ;;  %v2700_v18 = vrot.slane %v2699_v34, 2  ;;  %v2029_v59 = vadd.f32 %v2028_v36, %v2027_v37 }
 0x326   : > { %v2476_v8 = vrot.slane %v2475_v42, 2  ;;  %v2141_v44 = vadd.f32 %v2140_v46, %v2139_v33  ;;  %v2253_v61 = vadd.f32 %v2252_v29, %v2251_v17  ;;  %v2589_v15 = vadd.f32 %v2588_v30, %v2587_v32 }
 0x327   : > { %v2365_v45 = vadd.f32 %v2364_v43, %v2363_v63  ;;  %v1918_v41 = vrot.slane %v1917_v47, 1  ;;  %v2701_v1 = vadd.f32 %v2700_v18, %v2699_v34  ;;  %v2030_v58 = vrot.slane %v2029_v59, 1 }
 0x328   : > { %v2477_v21 = vadd.f32 %v2476_v8, %v2475_v42  ;;  %v2142_v22 = vrot.slane %v2141_v44, 1  ;;  %v2254_v19 = vrot.slane %v2253_v61, 1  ;;  %v2590_v10 = vrot.slane %v2589_v15, 1 }
 0x329   : > { %v2366_v23 = vrot.slane %v2365_v45, 1  ;;  %v1919_v7 = vadd.f32 %v1918_v41, %v1917_v47  ;;  %v2702_v27 = vrot.slane %v2701_v1, 1  ;;  %v1471_v20 = vadd.f32 %v1470_v31, %v7899_v52 }
 0x32a   : > { %v2478_v9 = vrot.slane %v2477_v21, 1  ;;  %v2031_v6 = vadd.f32 %v2030_v58, %v2029_v59  ;;  %v2143_v51 = vadd.f32 %v2142_v22, %v2141_v44  ;;  %v2255_v37 = vadd.f32 %v2254_v19, %v2253_v61 }
 0x32b   : > { %v1583_v33 = vadd.f32 %v1582_v25, %v7901_v13  ;;  %v1695_v17 = vadd.f32 %v1694_v24, %v7903_v2  ;;  %v2367_v42 = vadd.f32 %v2366_v23, %v2365_v45  ;;  %v2725_v18 = vmul.f32 0.0625, %v7912_v38 }
 0x32c   : > { %v1807_v34 = vadd.f32 %v1806_v12, %v7905_v14  ;;  %v2479_v32 = vadd.f32 %v2478_v9, %v2477_v21  ;;  %v2741_v36 = vmul.f32 0.0625, %v1135_v54  ;;  %v2757_v63 = vmul.f32 0.0625, %v1247_v3 }
 0x32d   : > { %v2591_v26 = vadd.f32 %v2590_v10, %v2589_v15  ;;  %v2703_v46 = vadd.f32 %v2702_v27, %v2701_v1  ;;  %v2773_v29 = vmul.f32 0.0625, %v7917_v56  ;;  %v2853_v52 = vmul.f32 0.0625, %v1919_v7 }
 0x32e   : > { %v2789_v31 = vmul.f32 0.0625, %v1471_v20  ;;  %v2869_v43 = vmul.f32 0.0625, %v2031_v6  ;;  %v2885_v61 = vmul.f32 0.0625, %v2143_v51  ;;  %v2901_v47 = vmul.f32 0.0625, %v2255_v37 }
 0x32f   : > { %v2805_v13 = vmul.f32 0.0625, %v1583_v33  ;;  %v2821_v25 = vmul.f32 0.0625, %v1695_v17  ;;  %v2917_v2 = vmul.f32 0.0625, %v2367_v42  ;;  %v2981_v45 = vpack.c.bf16 %v2725_v18, %v2725_v18 }
 0x330   : > { %v2837_v24 = vmul.f32 0.0625, %v1807_v34  ;;  %v2933_v38 = vmul.f32 0.0625, %v2479_v32  ;;  %v2997_v8 = vpack.c.bf16 %v2741_v36, %v2741_v36  ;;  %v3013_v14 = vpack.c.bf16 %v2757_v63, %v2757_v63 }
 0x331   : > { %v2949_v12 = vmul.f32 0.0625, %v2591_v26  ;;  %v2965_v54 = vmul.f32 0.0625, %v2703_v46  ;;  %v3029_v3 = vpack.c.bf16 %v2773_v29, %v2773_v29  ;;  %v3109_v30 = vpack.c.bf16 %v2853_v52, %v2853_v52 }
 0x332   : > { %v3045_v59 = vpack.c.bf16 %v2789_v31, %v2789_v31  ;;  %v3125_v44 = vpack.c.bf16 %v2869_v43, %v2869_v43  ;;  %v3141_v56 = vpack.c.bf16 %v2885_v61, %v2885_v61  ;;  %v3157_v41 = vpack.c.bf16 %v2901_v47, %v2901_v47 }
 0x333   : > { %v3061_v21 = vpack.c.bf16 %v2805_v13, %v2805_v13  ;;  %v3077_v15 = vpack.c.bf16 %v2821_v25, %v2821_v25  ;;  %v3173_v1 = vpack.c.bf16 %v2917_v2, %v2917_v2  ;;  %v3557_v58 = vunpack.c.l.b16 %v2981_v45 }
 0x334   : > { %v3093_v22 = vpack.c.bf16 %v2837_v24, %v2837_v24  ;;  %v3189_v19 = vpack.c.bf16 %v2933_v38, %v2933_v38  ;;  %v3573_v23 = vunpack.c.l.b16 %v2997_v8  ;;  %v3589_v7 = vunpack.c.l.b16 %v3013_v14 }
 0x335   : > { %v3205_v9 = vpack.c.bf16 %v2949_v12, %v2949_v12  ;;  %v3221_v10 = vpack.c.bf16 %v2965_v54, %v2965_v54  ;;  %v3605_v27 = vunpack.c.l.b16 %v3029_v3  ;;  %v3685_v20 = vunpack.c.l.b16 %v3109_v30 }
 0x336   : > { %v3621_v6 = vunpack.c.l.b16 %v3045_v59  ;;  %v3701_v51 = vunpack.c.l.b16 %v3125_v44  ;;  %v3717_v37 = vunpack.c.l.b16 %v3141_v56  ;;  %v3733_v33 = vunpack.c.l.b16 %v3157_v41 }
 0x337   : > { %v3637_v17 = vunpack.c.l.b16 %v3061_v21  ;;  %v3653_v42 = vunpack.c.l.b16 %v3077_v15  ;;  %v3749_v18 = vunpack.c.l.b16 %v3173_v1  ;;  %v3904_v34 = vsel %vm3799_vm0, %v3573_v23, %v3557_v58  ;;  %v8790_v21 = vld [vmem:[#allocation13_spill] sm:$0xff]  ;;  %v8792_v1 = vld [vmem:[#allocation15_spill] sm:$0xff]  ;;  %v8793_v58 = vld [vmem:[#allocation16_spill] sm:$0xff] }
 0x338   : > { %v3669_v32 = vunpack.c.l.b16 %v3093_v22  ;;  %v3765_v36 = vunpack.c.l.b16 %v3189_v19  ;;  %v3905_v63 = vsel %vm3801_vm1, %v3589_v7, %v3904_v34  ;;  %v4016_v26 = vsel %vm3799_vm0, %v3701_v51, %v3685_v20 }
 0x339   : > { %v3781_v46 = vunpack.c.l.b16 %v3205_v9  ;;  %v3797_v29 = vunpack.c.l.b16 %v3221_v10  ;;  %v3906_v52 = vsel %vm3803_vm2, %v3605_v27, %v3905_v63  ;;  %v4017_v31 = vsel %vm3801_vm1, %v3717_v37, %v4016_v26  ;;  %v8799_v27 = vld [vmem:[#allocation22_spill] sm:$0xff] }
 0x33a   : > { %v3907_v43 = vsel %vm3805_vm3, %v3621_v6, %v3906_v52  ;;  %v4018_v61 = vsel %vm3803_vm2, %v3733_v33, %v4017_v31  ;;  %v422_v47 = vunpack.c.h.bf16 %v7762_v50  ;;  %v438_v13 = vunpack.c.h.bf16 %v7765_v35  ;;  %v8800_v6 = vld [vmem:[#allocation23_spill] sm:$0xff] }
 0x33b   : > { %v3908_v25 = vsel %vm3807_vm4, %v3637_v17, %v3907_v43  ;;  %v4019_v2 = vsel %vm3805_vm3, %v3749_v18, %v4018_v61  ;;  %v454_v45 = vunpack.c.h.bf16 %v7770_v48  ;;  %v470_v24 = vunpack.c.h.bf16 %v7773_v39 }
 0x33c   : > { %v3909_v38 = vsel %vm3809_vm5, %v3653_v42, %v3908_v25  ;;  %v4020_v8 = vsel %vm3807_vm4, %v3765_v36, %v4019_v2  ;;  %v486_v14 = vunpack.c.h.bf16 %v7778_v55  ;;  %v502_v12 = vunpack.c.h.bf16 %v7781_v16 }
 0x33d   : > { %v3910_v50 = vsel %vm3811_vm6, %v3669_v32, %v3909_v38  ;;  %v4021_v35 = vsel %vm3809_vm5, %v3781_v46, %v4020_v8  ;;  %v518_v54 = vunpack.c.h.bf16 %v7786_v4  ;;  %v534_v3 = vunpack.c.h.bf16 %v7789_v11 }
 0x33e   : > { %v4022_v48 = vsel %vm3811_vm6, %v3797_v29, %v4021_v35  ;;  %v550_v39 = vunpack.c.h.bf16 %v7796_v0  ;;  %v566_v30 = vunpack.c.h.bf16 %v7799_v49  ;;  %v582_v59 = vunpack.c.h.bf16 %v7802_v53  ;;  %v8791_v0 = vld [vmem:[#allocation14_spill] sm:$0xff] }
 0x33f   : > { %v4044_v44 = vpack.c.b16 %v4022_v48, %v3910_v50  ;;  %v598_v55 = vunpack.c.h.bf16 %v7812_v28  ;;  %v614_v16 = vunpack.c.h.bf16 %v7815_v5  ;;  %v630_v56 = vunpack.c.h.bf16 %v7828_v57  ;;  %v8794_v28 = vld [vmem:[#allocation17_spill] sm:$0xff]  ;;  %v8795_v5 = vld [vmem:[#allocation18_spill] sm:$0xff]  ;;  %v8796_v57 = vld [vmem:[#allocation19_spill] sm:$0xff] }
 0x340   : > { %v646_v41 = vunpack.c.h.bf16 %v7831_v60  ;;  %v662_v4 = vunpack.c.h.bf16 %v7834_v40  ;;  %v678_v11 = vunpack.c.h.bf16 %v7805_v62  ;;  %v694_v15 = vunpack.c.h.bf16 %v8790_v21  ;;  %v8797_v60 = vld [vmem:[#allocation20_spill] sm:$0xff]  ;;  %v8798_v40 = vld [vmem:[#allocation21_spill] sm:$0xff] }
 0x341   : > { %4586 = vmatmul.bf16.vlgmr.msrb.gmra.mxu2 %v4044_v44  ;;  %v710_v49 = vunpack.c.h.bf16 %v8791_v0  ;;  %v726_v53 = vunpack.c.h.bf16 %v8792_v1  ;;  %v742_v22 = vunpack.c.h.bf16 %v8793_v58  ;;  %v758_v19 = vunpack.c.h.bf16 %v8794_v28 }
 0x342   : > { %v774_v23 = vunpack.c.h.bf16 %v8795_v5  ;;  %v790_v7 = vunpack.c.h.bf16 %v8796_v57  ;;  %v806_v9 = vunpack.c.h.bf16 %v8797_v60  ;;  %v822_v10 = vunpack.c.h.bf16 %v8798_v40 }
 0x343   : > { %v838_v20 = vunpack.c.h.bf16 %v8799_v27  ;;  %v854_v51 = vunpack.c.h.bf16 %v8800_v6  ;;  %v1024_v37 = vadd.f32 %v438_v13, %v422_v47  ;;  %v1136_v33 = vadd.f32 %v470_v24, %v454_v45 }
 0x344   : > { %v1248_v17 = vadd.f32 %v502_v12, %v486_v14  ;;  %v1360_v42 = vadd.f32 %v534_v3, %v518_v54  ;;  %v1472_v18 = vadd.f32 %v566_v30, %v550_v39  ;;  %v1584_v34 = vadd.f32 %v598_v55, %v582_v59 }
 0x345   : > { %v1025_v32 = vrot.slane %v1024_v37, 4  ;;  %v1137_v36 = vrot.slane %v1136_v33, 4  ;;  %v1696_v63 = vadd.f32 %v630_v56, %v614_v16  ;;  %v1808_v26 = vadd.f32 %v662_v4, %v646_v41 }
 0x346   : > { %v1249_v46 = vrot.slane %v1248_v17, 4  ;;  %v1361_v29 = vrot.slane %v1360_v42, 4  ;;  %v1473_v52 = vrot.slane %v1472_v18, 4  ;;  %v1585_v31 = vrot.slane %v1584_v34, 4 }
 0x347   : > { %v1026_v43 = vadd.f32 %v1025_v32, %v1024_v37  ;;  %v1138_v61 = vadd.f32 %v1137_v36, %v1136_v33  ;;  %v1697_v25 = vrot.slane %v1696_v63, 4  ;;  %v1809_v2 = vrot.slane %v1808_v26, 4  ;;  %v8801_v33 = vld [vmem:[#allocation24_spill] sm:$0xff]  ;;  %v8803_v36 = vld [vmem:[#allocation26_spill] sm:$0xff] }
 0x348   : > { %v1250_v38 = vadd.f32 %v1249_v46, %v1248_v17  ;;  %v1362_v8 = vadd.f32 %v1361_v29, %v1360_v42  ;;  %v1474_v47 = vadd.f32 %v1473_v52, %v1472_v18  ;;  %v1586_v13 = vadd.f32 %v1585_v31, %v1584_v34  ;;  %v8802_v42 = vld [vmem:[#allocation25_spill] sm:$0xff] }
 0x349   : > { %v1027_v45 = vrot.slane %v1026_v43, 2  ;;  %v1139_v24 = vrot.slane %v1138_v61, 2  ;;  %v1698_v14 = vadd.f32 %v1697_v25, %v1696_v63  ;;  %v1810_v12 = vadd.f32 %v1809_v2, %v1808_v26  ;;  %v8804_v26 = vld [vmem:[#allocation27_spill] sm:$0xff] }
 0x34a   : > { %v1251_v50 = vrot.slane %v1250_v38, 2  ;;  %v1363_v35 = vrot.slane %v1362_v8, 2  ;;  %v1475_v54 = vrot.slane %v1474_v47, 2  ;;  %v1587_v3 = vrot.slane %v1586_v13, 2 }
 0x34b   : > { %v1028_v48 = vadd.f32 %v1027_v45, %v1026_v43  ;;  %v1140_v39 = vadd.f32 %v1139_v24, %v1138_v61  ;;  %v1699_v30 = vrot.slane %v1698_v14, 2  ;;  %v1811_v59 = vrot.slane %v1810_v12, 2 }
 0x34c   : > { %v1252_v44 = vadd.f32 %v1251_v50, %v1250_v38  ;;  %v1364_v55 = vadd.f32 %v1363_v35, %v1362_v8  ;;  %v7991_v16 = vadd.f32 %v1475_v54, %v1474_v47  ;;  %v7993_v56 = vadd.f32 %v1587_v3, %v1586_v13 }
 0x34d   : > { %v1029_v41 = vrot.slane %v1028_v48, 1  ;;  %v1141_v4 = vrot.slane %v1140_v39, 1  ;;  %v7995_v6 = vadd.f32 %v1699_v30, %v1698_v14  ;;  %v7997_v37 = vadd.f32 %v1811_v59, %v1810_v12 }
 0x34e   : > { %v870_v17 = vunpack.c.h.bf16 %v8801_v33  ;;  %v886_v18 = vunpack.c.h.bf16 %v8802_v42  ;;  %v1253_v34 = vrot.slane %v1252_v44, 1  ;;  %v1365_v32 = vrot.slane %v1364_v55, 1 }
 0x34f   : > { %v902_v63 = vunpack.c.h.bf16 %v8803_v36  ;;  %v918_v46 = vunpack.c.h.bf16 %v8804_v26  ;;  %v1477_v29 = vrot.slane %v7991_v16, 1  ;;  %v1589_v52 = vrot.slane %v7993_v56, 1 }
 0x350   : > { %v1030_v31 = vadd.f32 %v1029_v41, %v1028_v48  ;;  %v1142_v43 = vadd.f32 %v1141_v4, %v1140_v39  ;;  %v1701_v61 = vrot.slane %v7995_v6, 1  ;;  %v1813_v25 = vrot.slane %v7997_v37, 1 }
 0x351   : > { %v8007_v2 = vadd.f32 %v1253_v34, %v1252_v44  ;;  %v8009_v38 = vadd.f32 %v1365_v32, %v1364_v55  ;;  %v1920_v8 = vadd.f32 %v694_v15, %v678_v11  ;;  %v2032_v47 = vadd.f32 %v726_v53, %v710_v49 }
 0x352   : > { %v2144_v13 = vadd.f32 %v758_v19, %v742_v22  ;;  %v2256_v45 = vadd.f32 %v790_v7, %v774_v23  ;;  %v2368_v62 = vadd.f32 %v822_v10, %v806_v9  ;;  %v2480_v11 = vadd.f32 %v854_v51, %v838_v20 }
 0x353   : > { %v1921_v21 = vrot.slane %v1920_v8, 4  ;;  %v2033_v15 = vrot.slane %v2032_v47, 4  ;;  %v2592_v0 = vadd.f32 %v886_v18, %v870_v17  ;;  %v2704_v49 = vadd.f32 %v918_v46, %v902_v63 }
 0x354   : > { %v2145_v1 = vrot.slane %v2144_v13, 4  ;;  %v2257_v53 = vrot.slane %v2256_v45, 4  ;;  %v2369_v58 = vrot.slane %v2368_v62, 4  ;;  %v2481_v22 = vrot.slane %v2480_v11, 4 }
 0x355   : > { %v1922_v28 = vadd.f32 %v1921_v21, %v1920_v8  ;;  %v2034_v19 = vadd.f32 %v2033_v15, %v2032_v47  ;;  %v2593_v5 = vrot.slane %v2592_v0, 4  ;;  %v2705_v23 = vrot.slane %v2704_v49, 4 }
 0x356   : > { %v2146_v57 = vadd.f32 %v2145_v1, %v2144_v13  ;;  %v2258_v7 = vadd.f32 %v2257_v53, %v2256_v45  ;;  %v2370_v60 = vadd.f32 %v2369_v58, %v2368_v62  ;;  %v2482_v40 = vadd.f32 %v2481_v22, %v2480_v11 }
 0x357   : > { %v1923_v9 = vrot.slane %v1922_v28, 2  ;;  %v2035_v10 = vrot.slane %v2034_v19, 2  ;;  %v2594_v27 = vadd.f32 %v2593_v5, %v2592_v0  ;;  %v2706_v20 = vadd.f32 %v2705_v23, %v2704_v49 }
 0x358   : > { %v2147_v51 = vrot.slane %v2146_v57, 2  ;;  %v2259_v24 = vrot.slane %v2258_v7, 2  ;;  %v2371_v14 = vrot.slane %v2370_v60, 2  ;;  %v2483_v12 = vrot.slane %v2482_v40, 2 }
 0x359   : > { %v1924_v50 = vadd.f32 %v1923_v9, %v1922_v28  ;;  %v2036_v35 = vadd.f32 %v2035_v10, %v2034_v19  ;;  %v2595_v54 = vrot.slane %v2594_v27, 2  ;;  %v2707_v3 = vrot.slane %v2706_v20, 2 }
 0x35a   : > { %v2148_v48 = vadd.f32 %v2147_v51, %v2146_v57  ;;  %v2260_v39 = vadd.f32 %v2259_v24, %v2258_v7  ;;  %v2372_v30 = vadd.f32 %v2371_v14, %v2370_v60  ;;  %v2484_v59 = vadd.f32 %v2483_v12, %v2482_v40 }
 0x35b   : > { %v1925_v44 = vrot.slane %v1924_v50, 1  ;;  %v2037_v55 = vrot.slane %v2036_v35, 1  ;;  %v2596_v41 = vadd.f32 %v2595_v54, %v2594_v27  ;;  %v2708_v4 = vadd.f32 %v2707_v3, %v2706_v20 }
 0x35c   : > { %v2149_v33 = vrot.slane %v2148_v48, 1  ;;  %v2261_v17 = vrot.slane %v2260_v39, 1  ;;  %v2373_v42 = vrot.slane %v2372_v30, 1  ;;  %v2485_v18 = vrot.slane %v2484_v59, 1 }
 0x35d   : > { %v1926_v34 = vadd.f32 %v1925_v44, %v1924_v50  ;;  %v2038_v32 = vadd.f32 %v2037_v55, %v2036_v35  ;;  %v2597_v36 = vrot.slane %v2596_v41, 1  ;;  %v2709_v63 = vrot.slane %v2708_v4, 1 }
 0x35e   : > { %v1478_v26 = vadd.f32 %v1477_v29, %v7991_v16  ;;  %v2150_v46 = vadd.f32 %v2149_v33, %v2148_v48  ;;  %v2262_v8 = vadd.f32 %v2261_v17, %v2260_v39  ;;  %v2374_v47 = vadd.f32 %v2373_v42, %v2372_v30 }
 0x35f   : > { %v1590_v13 = vadd.f32 %v1589_v52, %v7993_v56  ;;  %v2486_v45 = vadd.f32 %v2485_v18, %v2484_v59  ;;  %v2726_v62 = vmul.f32 0.0625, %v1030_v31  ;;  %v2742_v11 = vmul.f32 0.0625, %v1142_v43 }
 0x360   : > { %v1702_v21 = vadd.f32 %v1701_v61, %v7995_v6  ;;  %v1814_v15 = vadd.f32 %v1813_v25, %v7997_v37  ;;  %v2598_v0 = vadd.f32 %v2597_v36, %v2596_v41  ;;  %v2758_v49 = vmul.f32 0.0625, %v8007_v2 }
 0x361   : > { %v2710_v1 = vadd.f32 %v2709_v63, %v2708_v4  ;;  %v2774_v53 = vmul.f32 0.0625, %v8009_v38  ;;  %v2854_v58 = vmul.f32 0.0625, %v1926_v34  ;;  %v2870_v16 = vmul.f32 0.0625, %v2038_v32 }
 0x362   : > { %v2790_v29 = vmul.f32 0.0625, %v1478_v26  ;;  %v2886_v22 = vmul.f32 0.0625, %v2150_v46  ;;  %v2902_v28 = vmul.f32 0.0625, %v2262_v8  ;;  %v2918_v19 = vmul.f32 0.0625, %v2374_v47 }
 0x363   : > { %v2806_v56 = vmul.f32 0.0625, %v1590_v13  ;;  %v2934_v52 = vmul.f32 0.0625, %v2486_v45  ;;  %v2982_v31 = vpack.c.bf16 %v2726_v62, %v2726_v62  ;;  %v2998_v43 = vpack.c.bf16 %v2742_v11, %v2742_v11 }
 0x364   : > { %v2822_v5 = vmul.f32 0.0625, %v1702_v21  ;;  %v2838_v6 = vmul.f32 0.0625, %v1814_v15  ;;  %v2950_v61 = vmul.f32 0.0625, %v2598_v0  ;;  %v3014_v37 = vpack.c.bf16 %v2758_v49, %v2758_v49  ;;  %v4391_v15 = vpop.f32.mrf.mxu0  ;;  %v4405_v0 = vpop.f32.mrf.mxu1 }
 0x365   : > { %v2966_v25 = vmul.f32 0.0625, %v2710_v1  ;;  %v3030_v23 = vpack.c.bf16 %v2774_v53, %v2774_v53  ;;  %v3110_v2 = vpack.c.bf16 %v2854_v58, %v2854_v58  ;;  %v3126_v57 = vpack.c.bf16 %v2870_v16, %v2870_v16  ;;  %v4419_v49 = vpop.f32.mrf.mxu2  ;;  %v4433_v53 = vpop.f32.mrf.mxu3 }
 0x366   : > { %v3046_v7 = vpack.c.bf16 %v2790_v29, %v2790_v29  ;;  %v3142_v38 = vpack.c.bf16 %v2886_v22, %v2886_v22  ;;  %v3158_v60 = vpack.c.bf16 %v2902_v28, %v2902_v28  ;;  %v3174_v40 = vpack.c.bf16 %v2918_v19, %v2918_v19 }
 0x367   : > { %v3062_v9 = vpack.c.bf16 %v2806_v56, %v2806_v56  ;;  %v3190_v10 = vpack.c.bf16 %v2934_v52, %v2934_v52  ;;  %v3558_v27 = vunpack.c.l.b16 %v2982_v31  ;;  %v3574_v20 = vunpack.c.l.b16 %v2998_v43 }
 0x368   : > { %v3078_v51 = vpack.c.bf16 %v2822_v5, %v2822_v5  ;;  %v3094_v24 = vpack.c.bf16 %v2838_v6, %v2838_v6  ;;  %v3206_v14 = vpack.c.bf16 %v2950_v61, %v2950_v61  ;;  %v3590_v12 = vunpack.c.l.b16 %v3014_v37 }
 0x369   : > { %v3222_v50 = vpack.c.bf16 %v2966_v25, %v2966_v25  ;;  %v3606_v35 = vunpack.c.l.b16 %v3030_v23  ;;  %v3686_v54 = vunpack.c.l.b16 %v3110_v2  ;;  %v3702_v3 = vunpack.c.l.b16 %v3126_v57 }
 0x36a   : > { %v3622_v48 = vunpack.c.l.b16 %v3046_v7  ;;  %v3718_v39 = vunpack.c.l.b16 %v3142_v38  ;;  %v3734_v30 = vunpack.c.l.b16 %v3158_v60  ;;  %v3750_v59 = vunpack.c.l.b16 %v3174_v40 }
 0x36b   : > { %v3638_v44 = vunpack.c.l.b16 %v3062_v9  ;;  %v3766_v55 = vunpack.c.l.b16 %v3190_v10  ;;  %v3911_v41 = vsel %vm3799_vm0, %v3574_v20, %v3558_v27  ;;  %v4023_v4 = vsel %vm3799_vm0, %v3702_v3, %v3686_v54 }
 0x36c   : > { %v3654_v33 = vunpack.c.l.b16 %v3078_v51  ;;  %v3782_v17 = vunpack.c.l.b16 %v3206_v14  ;;  %v3912_v42 = vsel %vm3801_vm1, %v3590_v12, %v3911_v41  ;;  %v4024_v18 = vsel %vm3801_vm1, %v3718_v39, %v4023_v4  ;;  %v4393_v1 = vpop.f32.mrf.mxu0  ;;  %v4407_v58 = vpop.f32.mrf.mxu1 }
 0x36d   : > { %v3670_v34 = vunpack.c.l.b16 %v3094_v24  ;;  %v3798_v32 = vunpack.c.l.b16 %v3222_v50  ;;  %v3913_v36 = vsel %vm3803_vm2, %v3606_v35, %v3912_v42  ;;  %v4025_v63 = vsel %vm3803_vm2, %v3734_v30, %v4024_v18  ;;  %v4421_v16 = vpop.f32.mrf.mxu2  ;;  %v4435_v28 = vpop.f32.mrf.mxu3 }
 0x36e   : > { %v3914_v26 = vsel %vm3805_vm3, %v3622_v48, %v3913_v36  ;;  %v4026_v46 = vsel %vm3805_vm3, %v3750_v59, %v4025_v63  ;;  %v4406_v22 = vadd.f32 %v4405_v0, %v4391_v15  ;;  %v4408_v6 = vadd.f32 %v4407_v58, %v4393_v1 }
 0x36f   : > { %v3915_v8 = vsel %vm3807_vm4, %v3638_v44, %v3914_v26  ;;  %v4027_v47 = vsel %vm3807_vm4, %v3766_v55, %v4026_v46 }
 0x370   : > { %v3916_v13 = vsel %vm3809_vm5, %v3654_v33, %v3915_v8  ;;  %v4028_v45 = vsel %vm3809_vm5, %v3782_v17, %v4027_v47  ;;  %v4420_v52 = vadd.f32 %v4419_v49, %v4406_v22  ;;  %v4422_v2 = vadd.f32 %v4421_v16, %v4408_v6 }
 0x371   : > { %v3917_v62 = vsel %vm3811_vm6, %v3670_v34, %v3916_v13  ;;  %v4029_v11 = vsel %vm3811_vm6, %v3798_v32, %v4028_v45 }
 0x372   : > { %v4045_v21 = vpack.c.b16 %v4029_v11, %v3917_v62  ;;  %v4434_v43 = vadd.f32 %v4433_v53, %v4420_v52  ;;  %v4436_v7 = vadd.f32 %v4435_v28, %v4422_v2 }
 0x374   : > { %4600 = vmatmul.bf16.vlgmr.msrb.gmra.mxu3 %v4045_v21  ;;  %v4447_v29 = vpop.f32.mrf.mxu0  ;;  %v4461_v19 = vpop.f32.mrf.mxu1 }
 0x375   : > { %v4475_v56 = vpop.f32.mrf.mxu2  ;;  %v4489_v5 = vpop.f32.mrf.mxu3  ;;  %v4448_v61 = vadd.f32 %v4447_v29, %v4434_v43 }
 0x377   : > { %v4462_v57 = vadd.f32 %v4461_v19, %v4448_v61 }
 0x379   : > { %v4476_v38 = vadd.f32 %v4475_v56, %v4462_v57 }
 0x37b   : > { %v4490_v27 = vadd.f32 %v4489_v5, %v4476_v38 }
 0x37c   : > { %v4449_v31 = vpop.f32.mrf.mxu0  ;;  %v4463_v37 = vpop.f32.mrf.mxu1 }
 0x37d   : > { %v4477_v25 = vpop.f32.mrf.mxu2  ;;  %v4491_v60 = vpop.f32.mrf.mxu3  ;;  %v4450_v10 = vadd.f32 %v4449_v31, %v4436_v7 }
 0x37f   : > { %v4464_v51 = vadd.f32 %v4463_v37, %v4450_v10 }
 0x381   : > { %v4478_v14 = vadd.f32 %v4477_v25, %v4464_v51 }
 0x383   : > { %v4492_v3 = vadd.f32 %v4491_v60, %v4478_v14 }
 0x384   : > { %v4503_v23 = vpop.f32.mrf.mxu0  ;;  %v4517_v40 = vpop.f32.mrf.mxu1 }
 0x385   : > { %v4531_v9 = vpop.f32.mrf.mxu2  ;;  %v4504_v24 = vadd.f32 %v4503_v23, %v4490_v27  ;;  %v4545_v12 = vpop.f32.mrf.mxu3 }
 0x387   : > { %v4518_v50 = vadd.f32 %v4517_v40, %v4504_v24 }
 0x389   : > { %v4532_v48 = vadd.f32 %v4531_v9, %v4518_v50 }
 0x38b   : > { %v4546_v59 = vadd.f32 %v4545_v12, %v4532_v48 }
 0x38c   : > { %v4505_v20 = vpop.f32.mrf.mxu0  ;;  %v4519_v35 = vpop.f32.mrf.mxu1 }
 0x38d   : > { %v4533_v54 = vpop.f32.mrf.mxu2  ;;  %v4506_v30 = vadd.f32 %v4505_v20, %v4492_v3  ;;  %v4547_v55 = vpop.f32.mrf.mxu3 }
 0x38f   : > { %v4520_v44 = vadd.f32 %v4519_v35, %v4506_v30 }
 0x391   : > { %v4534_v17 = vadd.f32 %v4533_v54, %v4520_v44 }
 0x393   : > { %v4548_v34 = vadd.f32 %v4547_v55, %v4534_v17 }
 0x394   : > { %v4559_v39 = vpop.f32.mrf.mxu0  ;;  %v4573_v4 = vpop.f32.mrf.mxu1 }
 0x395   : > { %v4560_v41 = vadd.f32 %v4559_v39, %v4546_v59 }
 0x397   : > { %v4574_v42 = vadd.f32 %v4573_v4, %v4560_v41 }
 0x39c   : > { %v4561_v18 = vpop.f32.mrf.mxu0  ;;  %v4575_v46 = vpop.f32.mrf.mxu1 }
 0x39d   : > { %v4562_v36 = vadd.f32 %v4561_v18, %v4548_v34 }
 0x39f   : > { %v4576_v47 = vadd.f32 %v4575_v46, %v4562_v36 }
 0x3c4   : > { %v4587_v33 = vpop.f32.mrf.mxu2 }
 0x3c5   : > { %v4588_v32 = vadd.f32 %v4587_v33, %v4574_v42 }
 0x3cc   : > { %v4589_v8 = vpop.f32.mrf.mxu2 }
 0x3cd   : > { %v4590_v13 = vadd.f32 %v4589_v8, %v4576_v47 }
 0x3f7   : > { %v4601_v63 = vpop.f32.mrf.mxu3 }
 0x3f8   : > { %v4602_v26 = vadd.f32 %v4601_v63, %v4588_v32 }
 0x3fa   : > { %4607 = vst.msk [vmem:[%s148_s10] sm:$0xff] %vm4606_vm7, %v4602_v26 }
 0x3ff   : > { %v4603_v45 = vpop.f32.mrf.mxu3 }
 0x400   : > { %v4604_v62 = vadd.f32 %v4603_v45, %v4590_v13 }
 0x402   : > { %4608 = vst.msk [vmem:[%s148_s10 + $0x8] sm:$0xff] %vm4606_vm7, %v4604_v62 }
 0x403 PF: > { %s12_s9 = sadd.s32 1, %s5016_s9  }
 0x404   : > { %p9_p5 = scmp.ge.s32.totalorder %s12_s9, 4  }
 0x406   :  { %11 = sbr.rel (!%p9_p5) target bundleno = 1 (0x1), region = 58 }

</bundles_post_ra>
